<compile_context>
chip_gen: v5e
topology: v5e:2x2
jax: 0.10.0
libtpu: 0.0.40
codegen_flags: <defaults>
</compile_context>

<pallas_src>
import math

import jax
import jax.numpy as jnp
from jax import lax
from jax.experimental import pallas as pl
from jax.experimental.pallas import tpu as pltpu

PS_DEGREE = 12  # Taylor degree of exp(A / 2^s); remainder < 1/13! for ||A/2^s||_1 <= 1
_INV_FACT = [1.0 / math.factorial(k) for k in range(PS_DEGREE + 1)]


# ----------------------------------------------------------------------------
# Kernel: rescaled matrix exponential of one channel's block-diagonal matrix
#         exp(A) = (exp(A / 2^s))^(2^s),   s prefetched per channel
# ----------------------------------------------------------------------------
def _expm_kernel(s_ref, ar_ref, ai_ref, ore_ref, oim_ref, er_sc, ei_sc):
    c = pl.program_id(0)
    s = s_ref[c]                      # int32 squaring count for this channel (SMEM)

    ar = ar_ref[0]                    # (M, M) real part, already scaled by 2^-s
    ai = ai_ref[0]                    # (M, M) imag part
    m = ar.shape[-1]

    def dot(a, b):
        # float32 operands -> Mosaic native f32 MXU path (explicit precision choice:
        # we do NOT demote to bf16 because error compounds over up to 2^s squarings).
        return jnp.dot(a, b, preferred_element_type=jnp.float32)

    def cmm(pr, pi, psum, qr, qi, qsum):
        # 3-multiply (Karatsuba) complex matmul P @ Q.
        m1 = dot(pr, qr)
        m2 = dot(pi, qi)
        m3 = dot(psum, qsum)
        return m1 - m2, m3 - m1 - m2

    eye = jnp.eye(m, dtype=jnp.float32)

    # --- exp(A/2^s) via Paterson-Stockmeyer, degree 12, chunk size q = 3 -----
    #   p(A) = B0 + A^3 (B1 + A^3 (B2 + A^3 (B3 + c12 * A^3))),
    #   B_j  = c_{3j} I + c_{3j+1} A + c_{3j+2} A^2,   c_k = 1/k!
    # Only 5 complex matmuls total (A^2, A^3, 3 Horner steps).
    asum = ar + ai
    a2r, a2i = cmm(ar, ai, asum, ar, ai, asum)              # A^2
    a2sum = a2r + a2i
    a3r, a3i = cmm(a2r, a2i, a2sum, ar, ai, asum)           # A^3
    a3sum = a3r + a3i

    def chunk(j):
        br = (_INV_FACT[3 * j] * eye + _INV_FACT[3 * j + 1] * ar
              + _INV_FACT[3 * j + 2] * a2r)
        bi = _INV_FACT[3 * j + 1] * ai + _INV_FACT[3 * j + 2] * a2i
        return br, bi

    tr, ti = chunk(3)
    tr = tr + _INV_FACT[12] * a3r
    ti = ti + _INV_FACT[12] * a3i
    for j in (2, 1, 0):                                     # 3 static Horner steps
        hr, hi = cmm(a3r, a3i, a3sum, tr, ti, tr + ti)
        br, bi = chunk(j)
        tr = br + hr
        ti = bi + hi

    er_sc[...] = tr
    ei_sc[...] = ti

    # --- E <- E^(2^s): dynamic trip count, no wasted predicated squarings ----
    @pl.loop(0, s)
    def _squarings(_):
        cr = er_sc[...]
        ci = ei_sc[...]
        csum = cr + ci
        rr, ri = cmm(cr, ci, csum, cr, ci, csum)
        er_sc[...] = rr
        ei_sc[...] = ri

    ore_ref[0] = er_sc[...]
    oim_ref[0] = ei_sc[...]


def expm_blockdiag(s_counts, a_re, a_im):
    """Matrix exp of C pre-scaled (M, M) block-diagonal complex matrices."""
    C, M, _ = a_re.shape
    blk = pl.BlockSpec((1, M, M), lambda c, s_ref: (c, 0, 0))
    grid_spec = pltpu.PrefetchScalarGridSpec(
        num_scalar_prefetch=1,
        grid=(C,),
        in_specs=[blk, blk],
        out_specs=(blk, blk),
        scratch_shapes=[pltpu.VMEM((M, M), jnp.float32),
                        pltpu.VMEM((M, M), jnp.float32)],
    )
    return pl.pallas_call(
        _expm_kernel,
        out_shape=(jax.ShapeDtypeStruct((C, M, M), jnp.float32),
                   jax.ShapeDtypeStruct((C, M, M), jnp.float32)),
        grid_spec=grid_spec,
        compiler_params=pltpu.CompilerParams(
            dimension_semantics=("parallel",)),
    )(s_counts, a_re, a_im)


# ----------------------------------------------------------------------------
# Full forward: frame (skew-Hermitian projection) -> dX@S -> rescaled expm
# ----------------------------------------------------------------------------
@jax.jit
def unitary_projection_forward(dX, A_re, A_im):
    N, _ = dX.shape
    _, C, H, _ = A_re.shape

    # unitary.frame:  A <- (A - conj(A)^T) / 2   (tiny XLA elementwise + transpose)
    s_re = 0.5 * (A_re - jnp.swapaxes(A_re, -1, -2))
    s_im = 0.5 * (A_im + jnp.swapaxes(A_im, -1, -2))

    # AX[c, n] = sum_k dX[n, k] * S[k, c]  — ~65 KFLOP, left to XLA where it fuses
    # with the packing below (a standalone pallas_call launch costs more).
    # TODO(synk): folding this contraction + the norm reduction into the pallas_call
    # would also remove one HBM round-trip of the (C, N, H, H) intermediates.
    x_re = jnp.einsum('nk,kcij->cnij', dX, s_re)
    x_im = jnp.einsum('nk,kcij->cnij', dX, s_im)

    # Per-channel scaling exponent: s = ceil(log2(max column 1-norm)) if > 1.
    absx = jnp.sqrt(x_re * x_re + x_im * x_im)
    norm = jnp.max(jnp.sum(absx, axis=-2), axis=(-2, -1))                # (C,)
    s_f = jnp.minimum(jnp.ceil(jnp.log2(jnp.maximum(norm, 1.0))), 60.0)
    s_counts = s_f.astype(jnp.int32)
    scale = jnp.exp2(-s_f).reshape(C, 1, 1, 1)                           # 2^-s

    # Pack each channel's N HxH matrices into one lane-dense (N*H, N*H) block-
    # diagonal operand; fold the 2^-s pre-scale into the same fused XLA op.
    eye_n = jnp.eye(N, dtype=jnp.float32)

    def pack(x):
        bd = jnp.einsum('cnij,nm->cnimj', x * scale, eye_n)
        return bd.reshape(C, N * H, N * H)

    o_re, o_im = expm_blockdiag(s_counts, pack(x_re), pack(x_im))        # (C, NH, NH)

    # Unpack the diagonal blocks back to (C, N, H, H) and assemble complex output.
    def unpack(y):
        return jnp.einsum('cnimj,nm->cnij', y.reshape(C, N, H, N, H), eye_n)

    out = lax.complex(unpack(o_re), unpack(o_im))                        # (C, N, H, H)
    return jnp.transpose(out, (1, 0, 2, 3))                              # (N, C, H, H)


if __name__ == "__main__":
    N, K, C, H = 8, 8, 2, 16   # batch, input_size, channels, hidden_size
    key = jax.random.PRNGKey(0)
    k1, k2, k3 = jax.random.split(key, 3)

    # Deterministic synthetic parameter (skew-Hermitian init analogue; forward
    # re-projects it through frame() anyway).
    g_re = jax.random.normal(k1, (K, C, H, H), dtype=jnp.float32)
    g_im = jax.random.normal(k2, (K, C, H, H), dtype=jnp.float32)
    A_re = 0.5 * (g_re - jnp.swapaxes(g_re, -1, -2))
    A_im = 0.5 * (g_im + jnp.swapaxes(g_im, -1, -2))
    dX = jax.random.normal(k3, (N, K), dtype=jnp.float32)

    out = jax.block_until_ready(unitary_projection_forward(dX, A_re, A_im))

    assert out.shape == (N, C, H, H) and out.dtype == jnp.complex64
    assert bool(jnp.all(jnp.isfinite(out.real)) & jnp.all(jnp.isfinite(out.imag)))
    # exp of a skew-Hermitian matrix is unitary: U^H U == I  (sanity check)
    uhu = jnp.einsum("ncji,ncjk->ncik", jnp.conj(out), out)
    eye = jnp.eye(H, dtype=jnp.complex64)
    assert float(jnp.max(jnp.abs(uhu - eye))) < 1e-2
    print("KERNEL_OK")
</pallas_src>

<mosaic_0001>
module attributes {stable_mosaic.version = 11 : i64} {
  func.func @_expm_kernel(%arg0: i32, %arg1: memref<2xi32, #tpu.memory_space<smem>>, %arg2: memref<1x128x128xf32, #tpu.memory_space<vmem>>, %arg3: memref<1x128x128xf32, #tpu.memory_space<vmem>>, %arg4: memref<1x128x128xf32, #tpu.memory_space<vmem>>, %arg5: memref<1x128x128xf32, #tpu.memory_space<vmem>>, %arg6: memref<128x128xf32, #tpu.memory_space<vmem>>, %arg7: memref<128x128xf32, #tpu.memory_space<vmem>>) attributes {dimension_semantics = [#tpu.dimension_semantics<parallel>], iteration_bounds = array<i64: 2>, scalar_prefetch = 1 : i64, scratch_operands = 2 : i64, tpu.core_type = #tpu.core_type<tc>, window_params = [{transform_indices = @transform_0, window_bounds = array<i64: 1, 128, 128>}, {transform_indices = @transform_1, window_bounds = array<i64: 1, 128, 128>}, {transform_indices = @transform_2, window_bounds = array<i64: 1, 128, 128>}, {transform_indices = @transform_3, window_bounds = array<i64: 1, 128, 128>}]} {
    %0 = arith.index_cast %arg0 : i32 to index
    %1 = memref.load %arg1[%0] : memref<2xi32, #tpu.memory_space<smem>>
    %c0 = arith.constant 0 : index
    %c0_0 = arith.constant 0 : index
    %c0_1 = arith.constant 0 : index
    %2 = vector.load %arg2[%c0, %c0_0, %c0_1] : memref<1x128x128xf32, #tpu.memory_space<vmem>>, vector<1x128x128xf32>
    %3 = vector.shape_cast %2 : vector<1x128x128xf32> to vector<128x128xf32>
    %c0_2 = arith.constant 0 : index
    %c0_3 = arith.constant 0 : index
    %c0_4 = arith.constant 0 : index
    %4 = vector.load %arg3[%c0_2, %c0_3, %c0_4] : memref<1x128x128xf32, #tpu.memory_space<vmem>>, vector<1x128x128xf32>
    %5 = vector.shape_cast %4 : vector<1x128x128xf32> to vector<128x128xf32>
    %6 = tpu.iota {dimensions = array<i32: 0>} : vector<128x128xi32>
    %7 = tpu.iota {dimensions = array<i32: 1>} : vector<128x128xi32>
    %c0_i32 = arith.constant 0 : i32
    %8 = vector.broadcast %c0_i32 : i32 to vector<128x128xi32>
    %9 = arith.addi %6, %8 : vector<128x128xi32>
    %10 = arith.cmpi eq, %9, %7 : vector<128x128xi32>
    %11 = arith.extui %10 : vector<128x128xi1> to vector<128x128xi32>
    %12 = arith.sitofp %11 : vector<128x128xi32> to vector<128x128xf32>
    %13 = arith.addf %3, %5 : vector<128x128xf32>
    %cst = arith.constant dense<0.000000e+00> : vector<128x128xf32>
    %14 = tpu.matmul %3, %3, %cst {dimension_numbers = #tpu.dot_dimension_numbers<[1], [0], [0], [1], [0, 0, 1, 1], [], []>} : vector<128x128xf32>, vector<128x128xf32>, vector<128x128xf32> -> vector<128x128xf32>
    %cst_5 = arith.constant dense<0.000000e+00> : vector<128x128xf32>
    %15 = tpu.matmul %5, %5, %cst_5 {dimension_numbers = #tpu.dot_dimension_numbers<[1], [0], [0], [1], [0, 0, 1, 1], [], []>} : vector<128x128xf32>, vector<128x128xf32>, vector<128x128xf32> -> vector<128x128xf32>
    %cst_6 = arith.constant dense<0.000000e+00> : vector<128x128xf32>
    %16 = tpu.matmul %13, %13, %cst_6 {dimension_numbers = #tpu.dot_dimension_numbers<[1], [0], [0], [1], [0, 0, 1, 1], [], []>} : vector<128x128xf32>, vector<128x128xf32>, vector<128x128xf32> -> vector<128x128xf32>
    %17 = arith.subf %14, %15 : vector<128x128xf32>
    %18 = arith.subf %16, %14 : vector<128x128xf32>
    %19 = arith.subf %18, %15 : vector<128x128xf32>
    %20 = arith.addf %17, %19 : vector<128x128xf32>
    %cst_7 = arith.constant dense<0.000000e+00> : vector<128x128xf32>
    %21 = tpu.matmul %17, %3, %cst_7 {dimension_numbers = #tpu.dot_dimension_numbers<[1], [0], [0], [1], [0, 0, 1, 1], [], []>} : vector<128x128xf32>, vector<128x128xf32>, vector<128x128xf32> -> vector<128x128xf32>
    %cst_8 = arith.constant dense<0.000000e+00> : vector<128x128xf32>
    %22 = tpu.matmul %19, %5, %cst_8 {dimension_numbers = #tpu.dot_dimension_numbers<[1], [0], [0], [1], [0, 0, 1, 1], [], []>} : vector<128x128xf32>, vector<128x128xf32>, vector<128x128xf32> -> vector<128x128xf32>
    %cst_9 = arith.constant dense<0.000000e+00> : vector<128x128xf32>
    %23 = tpu.matmul %20, %13, %cst_9 {dimension_numbers = #tpu.dot_dimension_numbers<[1], [0], [0], [1], [0, 0, 1, 1], [], []>} : vector<128x128xf32>, vector<128x128xf32>, vector<128x128xf32> -> vector<128x128xf32>
    %24 = arith.subf %21, %22 : vector<128x128xf32>
    %25 = arith.subf %23, %21 : vector<128x128xf32>
    %26 = arith.subf %25, %22 : vector<128x128xf32>
    %27 = arith.addf %24, %26 : vector<128x128xf32>
    %cst_10 = arith.constant 2.75573188E-6 : f32
    %28 = vector.broadcast %cst_10 : f32 to vector<128x128xf32>
    %29 = arith.mulf %28, %12 : vector<128x128xf32>
    %cst_11 = arith.constant 2.755732E-7 : f32
    %30 = vector.broadcast %cst_11 : f32 to vector<128x128xf32>
    %31 = arith.mulf %30, %3 : vector<128x128xf32>
    %32 = arith.addf %29, %31 : vector<128x128xf32>
    %cst_12 = arith.constant 2.50521079E-8 : f32
    %33 = vector.broadcast %cst_12 : f32 to vector<128x128xf32>
    %34 = arith.mulf %33, %17 : vector<128x128xf32>
    %35 = arith.addf %32, %34 : vector<128x128xf32>
    %cst_13 = arith.constant 2.755732E-7 : f32
    %36 = vector.broadcast %cst_13 : f32 to vector<128x128xf32>
    %37 = arith.mulf %36, %5 : vector<128x128xf32>
    %cst_14 = arith.constant 2.50521079E-8 : f32
    %38 = vector.broadcast %cst_14 : f32 to vector<128x128xf32>
    %39 = arith.mulf %38, %19 : vector<128x128xf32>
    %40 = arith.addf %37, %39 : vector<128x128xf32>
    %cst_15 = arith.constant 2.08767559E-9 : f32
    %41 = vector.broadcast %cst_15 : f32 to vector<128x128xf32>
    %42 = arith.mulf %41, %24 : vector<128x128xf32>
    %43 = arith.addf %35, %42 : vector<128x128xf32>
    %cst_16 = arith.constant 2.08767559E-9 : f32
    %44 = vector.broadcast %cst_16 : f32 to vector<128x128xf32>
    %45 = arith.mulf %44, %26 : vector<128x128xf32>
    %46 = arith.addf %40, %45 : vector<128x128xf32>
    %47 = arith.addf %43, %46 : vector<128x128xf32>
    %cst_17 = arith.constant dense<0.000000e+00> : vector<128x128xf32>
    %48 = tpu.matmul %24, %43, %cst_17 {dimension_numbers = #tpu.dot_dimension_numbers<[1], [0], [0], [1], [0, 0, 1, 1], [], []>} : vector<128x128xf32>, vector<128x128xf32>, vector<128x128xf32> -> vector<128x128xf32>
    %cst_18 = arith.constant dense<0.000000e+00> : vector<128x128xf32>
    %49 = tpu.matmul %26, %46, %cst_18 {dimension_numbers = #tpu.dot_dimension_numbers<[1], [0], [0], [1], [0, 0, 1, 1], [], []>} : vector<128x128xf32>, vector<128x128xf32>, vector<128x128xf32> -> vector<128x128xf32>
    %cst_19 = arith.constant dense<0.000000e+00> : vector<128x128xf32>
    %50 = tpu.matmul %27, %47, %cst_19 {dimension_numbers = #tpu.dot_dimension_numbers<[1], [0], [0], [1], [0, 0, 1, 1], [], []>} : vector<128x128xf32>, vector<128x128xf32>, vector<128x128xf32> -> vector<128x128xf32>
    %51 = arith.subf %48, %49 : vector<128x128xf32>
    %52 = arith.subf %50, %48 : vector<128x128xf32>
    %53 = arith.subf %52, %49 : vector<128x128xf32>
    %cst_20 = arith.constant 0.00138888892 : f32
    %54 = vector.broadcast %cst_20 : f32 to vector<128x128xf32>
    %55 = arith.mulf %54, %12 : vector<128x128xf32>
    %cst_21 = arith.constant 1.98412701E-4 : f32
    %56 = vector.broadcast %cst_21 : f32 to vector<128x128xf32>
    %57 = arith.mulf %56, %3 : vector<128x128xf32>
    %58 = arith.addf %55, %57 : vector<128x128xf32>
    %cst_22 = arith.constant 2.48015876E-5 : f32
    %59 = vector.broadcast %cst_22 : f32 to vector<128x128xf32>
    %60 = arith.mulf %59, %17 : vector<128x128xf32>
    %61 = arith.addf %58, %60 : vector<128x128xf32>
    %cst_23 = arith.constant 1.98412701E-4 : f32
    %62 = vector.broadcast %cst_23 : f32 to vector<128x128xf32>
    %63 = arith.mulf %62, %5 : vector<128x128xf32>
    %cst_24 = arith.constant 2.48015876E-5 : f32
    %64 = vector.broadcast %cst_24 : f32 to vector<128x128xf32>
    %65 = arith.mulf %64, %19 : vector<128x128xf32>
    %66 = arith.addf %63, %65 : vector<128x128xf32>
    %67 = arith.addf %61, %51 : vector<128x128xf32>
    %68 = arith.addf %66, %53 : vector<128x128xf32>
    %69 = arith.addf %67, %68 : vector<128x128xf32>
    %cst_25 = arith.constant dense<0.000000e+00> : vector<128x128xf32>
    %70 = tpu.matmul %24, %67, %cst_25 {dimension_numbers = #tpu.dot_dimension_numbers<[1], [0], [0], [1], [0, 0, 1, 1], [], []>} : vector<128x128xf32>, vector<128x128xf32>, vector<128x128xf32> -> vector<128x128xf32>
    %cst_26 = arith.constant dense<0.000000e+00> : vector<128x128xf32>
    %71 = tpu.matmul %26, %68, %cst_26 {dimension_numbers = #tpu.dot_dimension_numbers<[1], [0], [0], [1], [0, 0, 1, 1], [], []>} : vector<128x128xf32>, vector<128x128xf32>, vector<128x128xf32> -> vector<128x128xf32>
    %cst_27 = arith.constant dense<0.000000e+00> : vector<128x128xf32>
    %72 = tpu.matmul %27, %69, %cst_27 {dimension_numbers = #tpu.dot_dimension_numbers<[1], [0], [0], [1], [0, 0, 1, 1], [], []>} : vector<128x128xf32>, vector<128x128xf32>, vector<128x128xf32> -> vector<128x128xf32>
    %73 = arith.subf %70, %71 : vector<128x128xf32>
    %74 = arith.subf %72, %70 : vector<128x128xf32>
    %75 = arith.subf %74, %71 : vector<128x128xf32>
    %cst_28 = arith.constant 0.166666672 : f32
    %76 = vector.broadcast %cst_28 : f32 to vector<128x128xf32>
    %77 = arith.mulf %76, %12 : vector<128x128xf32>
    %cst_29 = arith.constant 0.0416666679 : f32
    %78 = vector.broadcast %cst_29 : f32 to vector<128x128xf32>
    %79 = arith.mulf %78, %3 : vector<128x128xf32>
    %80 = arith.addf %77, %79 : vector<128x128xf32>
    %cst_30 = arith.constant 0.00833333377 : f32
    %81 = vector.broadcast %cst_30 : f32 to vector<128x128xf32>
    %82 = arith.mulf %81, %17 : vector<128x128xf32>
    %83 = arith.addf %80, %82 : vector<128x128xf32>
    %cst_31 = arith.constant 0.0416666679 : f32
    %84 = vector.broadcast %cst_31 : f32 to vector<128x128xf32>
    %85 = arith.mulf %84, %5 : vector<128x128xf32>
    %cst_32 = arith.constant 0.00833333377 : f32
    %86 = vector.broadcast %cst_32 : f32 to vector<128x128xf32>
    %87 = arith.mulf %86, %19 : vector<128x128xf32>
    %88 = arith.addf %85, %87 : vector<128x128xf32>
    %89 = arith.addf %83, %73 : vector<128x128xf32>
    %90 = arith.addf %88, %75 : vector<128x128xf32>
    %91 = arith.addf %89, %90 : vector<128x128xf32>
    %cst_33 = arith.constant dense<0.000000e+00> : vector<128x128xf32>
    %92 = tpu.matmul %24, %89, %cst_33 {dimension_numbers = #tpu.dot_dimension_numbers<[1], [0], [0], [1], [0, 0, 1, 1], [], []>} : vector<128x128xf32>, vector<128x128xf32>, vector<128x128xf32> -> vector<128x128xf32>
    %cst_34 = arith.constant dense<0.000000e+00> : vector<128x128xf32>
    %93 = tpu.matmul %26, %90, %cst_34 {dimension_numbers = #tpu.dot_dimension_numbers<[1], [0], [0], [1], [0, 0, 1, 1], [], []>} : vector<128x128xf32>, vector<128x128xf32>, vector<128x128xf32> -> vector<128x128xf32>
    %cst_35 = arith.constant dense<0.000000e+00> : vector<128x128xf32>
    %94 = tpu.matmul %27, %91, %cst_35 {dimension_numbers = #tpu.dot_dimension_numbers<[1], [0], [0], [1], [0, 0, 1, 1], [], []>} : vector<128x128xf32>, vector<128x128xf32>, vector<128x128xf32> -> vector<128x128xf32>
    %95 = arith.subf %92, %93 : vector<128x128xf32>
    %96 = arith.subf %94, %92 : vector<128x128xf32>
    %97 = arith.subf %96, %93 : vector<128x128xf32>
    %cst_36 = arith.constant 1.000000e+00 : f32
    %98 = vector.broadcast %cst_36 : f32 to vector<128x128xf32>
    %99 = arith.mulf %98, %12 : vector<128x128xf32>
    %cst_37 = arith.constant 1.000000e+00 : f32
    %100 = vector.broadcast %cst_37 : f32 to vector<128x128xf32>
    %101 = arith.mulf %100, %3 : vector<128x128xf32>
    %102 = arith.addf %99, %101 : vector<128x128xf32>
    %cst_38 = arith.constant 5.000000e-01 : f32
    %103 = vector.broadcast %cst_38 : f32 to vector<128x128xf32>
    %104 = arith.mulf %103, %17 : vector<128x128xf32>
    %105 = arith.addf %102, %104 : vector<128x128xf32>
    %cst_39 = arith.constant 1.000000e+00 : f32
    %106 = vector.broadcast %cst_39 : f32 to vector<128x128xf32>
    %107 = arith.mulf %106, %5 : vector<128x128xf32>
    %cst_40 = arith.constant 5.000000e-01 : f32
    %108 = vector.broadcast %cst_40 : f32 to vector<128x128xf32>
    %109 = arith.mulf %108, %19 : vector<128x128xf32>
    %110 = arith.addf %107, %109 : vector<128x128xf32>
    %111 = arith.addf %105, %95 : vector<128x128xf32>
    %112 = arith.addf %110, %97 : vector<128x128xf32>
    %c0_41 = arith.constant 0 : index
    %c0_42 = arith.constant 0 : index
    %113 = vector.load %arg6[%c0_41, %c0_42] : memref<128x128xf32, #tpu.memory_space<vmem>>, vector<128x128xf32>
    tpu.vector_store %arg6[%c0_41, %c0_42], %111 {strides = array<i32>} : memref<128x128xf32, #tpu.memory_space<vmem>>, vector<128x128xf32>,
    %c0_43 = arith.constant 0 : index
    %c0_44 = arith.constant 0 : index
    %114 = vector.load %arg7[%c0_43, %c0_44] : memref<128x128xf32, #tpu.memory_space<vmem>>, vector<128x128xf32>
    tpu.vector_store %arg7[%c0_43, %c0_44], %112 {strides = array<i32>} : memref<128x128xf32, #tpu.memory_space<vmem>>, vector<128x128xf32>,
    %c0_i32_45 = arith.constant 0 : i32
    %115 = arith.subi %1, %c0_i32_45 : i32
    %c1_i32 = arith.constant 1 : i32
    %c1_i32_46 = arith.constant 1 : i32
    %116 = arith.subi %c1_i32, %c1_i32_46 : i32
    %117 = arith.addi %115, %116 : i32
    %c1_i32_47 = arith.constant 1 : i32
    %118 = arith.divsi %117, %c1_i32_47 : i32
    %c1_i32_48 = arith.constant 1 : i32
    %c0_i32_49 = arith.constant 0 : i32
    %c0_i32_50 = arith.constant 0 : i32
    %119 = arith.subi %118, %c0_i32_50 : i32
    %120 = arith.addi %c0_i32_50, %119 : i32
    %c1_i32_51 = arith.constant 1 : i32
    scf.for %arg8 = %c0_i32_50 to %120 step %c1_i32_51  : i32 {
      %129 = arith.muli %arg8, %c1_i32_48 : i32
      %130 = arith.addi %c0_i32_49, %129 : i32
      %c0_62 = arith.constant 0 : index
      %c0_63 = arith.constant 0 : index
      %131 = vector.load %arg6[%c0_62, %c0_63] : memref<128x128xf32, #tpu.memory_space<vmem>>, vector<128x128xf32>
      %c0_64 = arith.constant 0 : index
      %c0_65 = arith.constant 0 : index
      %132 = vector.load %arg7[%c0_64, %c0_65] : memref<128x128xf32, #tpu.memory_space<vmem>>, vector<128x128xf32>
      %133 = arith.addf %131, %132 : vector<128x128xf32>
      %cst_66 = arith.constant dense<0.000000e+00> : vector<128x128xf32>
      %134 = tpu.matmul %131, %131, %cst_66 {dimension_numbers = #tpu.dot_dimension_numbers<[1], [0], [0], [1], [0, 0, 1, 1], [], []>} : vector<128x128xf32>, vector<128x128xf32>, vector<128x128xf32> -> vector<128x128xf32>
      %cst_67 = arith.constant dense<0.000000e+00> : vector<128x128xf32>
      %135 = tpu.matmul %132, %132, %cst_67 {dimension_numbers = #tpu.dot_dimension_numbers<[1], [0], [0], [1], [0, 0, 1, 1], [], []>} : vector<128x128xf32>, vector<128x128xf32>, vector<128x128xf32> -> vector<128x128xf32>
      %cst_68 = arith.constant dense<0.000000e+00> : vector<128x128xf32>
      %136 = tpu.matmul %133, %133, %cst_68 {dimension_numbers = #tpu.dot_dimension_numbers<[1], [0], [0], [1], [0, 0, 1, 1], [], []>} : vector<128x128xf32>, vector<128x128xf32>, vector<128x128xf32> -> vector<128x128xf32>
      %137 = arith.subf %134, %135 : vector<128x128xf32>
      %138 = arith.subf %136, %134 : vector<128x128xf32>
      %139 = arith.subf %138, %135 : vector<128x128xf32>
      %c0_69 = arith.constant 0 : index
      %c0_70 = arith.constant 0 : index
      %140 = vector.load %arg6[%c0_69, %c0_70] : memref<128x128xf32, #tpu.memory_space<vmem>>, vector<128x128xf32>
      tpu.vector_store %arg6[%c0_69, %c0_70], %137 {strides = array<i32>} : memref<128x128xf32, #tpu.memory_space<vmem>>, vector<128x128xf32>,
      %c0_71 = arith.constant 0 : index
      %c0_72 = arith.constant 0 : index
      %141 = vector.load %arg7[%c0_71, %c0_72] : memref<128x128xf32, #tpu.memory_space<vmem>>, vector<128x128xf32>
      tpu.vector_store %arg7[%c0_71, %c0_72], %139 {strides = array<i32>} : memref<128x128xf32, #tpu.memory_space<vmem>>, vector<128x128xf32>,
    }
    %c0_52 = arith.constant 0 : index
    %c0_53 = arith.constant 0 : index
    %121 = vector.load %arg6[%c0_52, %c0_53] : memref<128x128xf32, #tpu.memory_space<vmem>>, vector<128x128xf32>
    %c0_54 = arith.constant 0 : index
    %c0_55 = arith.constant 0 : index
    %c0_56 = arith.constant 0 : index
    %122 = vector.load %arg4[%c0_54, %c0_55, %c0_56] : memref<1x128x128xf32, #tpu.memory_space<vmem>>, vector<1x128x128xf32>
    %123 = vector.shape_cast %122 : vector<1x128x128xf32> to vector<128x128xf32>
    %124 = vector.shape_cast %121 : vector<128x128xf32> to vector<1x128x128xf32>
    tpu.vector_store %arg4[%c0_54, %c0_55, %c0_56], %124 {strides = array<i32>} : memref<1x128x128xf32, #tpu.memory_space<vmem>>, vector<1x128x128xf32>,
    %c0_57 = arith.constant 0 : index
    %c0_58 = arith.constant 0 : index
    %125 = vector.load %arg7[%c0_57, %c0_58] : memref<128x128xf32, #tpu.memory_space<vmem>>, vector<128x128xf32>
    %c0_59 = arith.constant 0 : index
    %c0_60 = arith.constant 0 : index
    %c0_61 = arith.constant 0 : index
    %126 = vector.load %arg5[%c0_59, %c0_60, %c0_61] : memref<1x128x128xf32, #tpu.memory_space<vmem>>, vector<1x128x128xf32>
    %127 = vector.shape_cast %126 : vector<1x128x128xf32> to vector<128x128xf32>
    %128 = vector.shape_cast %125 : vector<128x128xf32> to vector<1x128x128xf32>
    tpu.vector_store %arg5[%c0_59, %c0_60, %c0_61], %128 {strides = array<i32>} : memref<1x128x128xf32, #tpu.memory_space<vmem>>, vector<1x128x128xf32>,
    return
  }
  func.func @transform_0(%arg0: i32, %arg1: memref<2xi32, #tpu.memory_space<smem>>) -> (i32, i32, i32) {
    %c0_i32 = arith.constant 0 : i32
    %c0_i32_0 = arith.constant 0 : i32
    %c0_i32_1 = arith.constant 0 : i32
    return %arg0, %c0_i32, %c0_i32_0 : i32, i32, i32
  }
  func.func @transform_1(%arg0: i32, %arg1: memref<2xi32, #tpu.memory_space<smem>>) -> (i32, i32, i32) {
    %c0_i32 = arith.constant 0 : i32
    %c0_i32_0 = arith.constant 0 : i32
    %c0_i32_1 = arith.constant 0 : i32
    return %arg0, %c0_i32, %c0_i32_0 : i32, i32, i32
  }
  func.func @transform_2(%arg0: i32, %arg1: memref<2xi32, #tpu.memory_space<smem>>) -> (i32, i32, i32) {
    %c0_i32 = arith.constant 0 : i32
    %c0_i32_0 = arith.constant 0 : i32
    %c0_i32_1 = arith.constant 0 : i32
    return %arg0, %c0_i32, %c0_i32_0 : i32, i32, i32
  }
  func.func @transform_3(%arg0: i32, %arg1: memref<2xi32, #tpu.memory_space<smem>>) -> (i32, i32, i32) {
    %c0_i32 = arith.constant 0 : i32
    %c0_i32_0 = arith.constant 0 : i32
    %c0_i32_1 = arith.constant 0 : i32
    return %arg0, %c0_i32, %c0_i32_0 : i32, i32, i32
  }
}

</mosaic_0001>

<bundles_post_ra>
// kernel: custom-call
= control target key start
LH: loop header
LB: loop body
LE: loop exit
PB: predicated region body
PF: predicated region fallthrough
CT: control target
= control target key end

     0   :  { %s811_s0 = inlined_call_operand.vmem [shape: f32[8,2,16,16], index: 0, kind: input, shape index: {}]   ;;  %s812_s2 = inlined_call_operand.vmem [shape: c64[8,2,16,16], index: 2, kind: output, shape index: {}]   ;;  %s813_s1 = inlined_call_operand.vmem [shape: f32[8,2,16,16], index: 1, kind: input, shape index: {}]  }
   0x1   :  { %v4_v0 = vld [vmem:[%s811_s0] sm:$0xff]  ;;  %v287_v1 = vld [vmem:[%s811_s0 + $0x8] sm:$0xff]  ;;  %v289_v2 = vld [vmem:[%s811_s0 + $0x10] sm:$0xff] }
   0x2   :  { %5 = vst [vmem:[%s812_s2] sm:$0xff] %v4_v0  ;;  %v291_v3 = vld [vmem:[%s811_s0 + $0x18] sm:$0xff]  ;;  %v293_v4 = vld [vmem:[%s811_s0 + $0x20] sm:$0xff]  ;;  %v295_v5 = vld [vmem:[%s811_s0 + $0x28] sm:$0xff] }
   0x3   :  { %288 = vst [vmem:[%s812_s2 + $0x8] sm:$0xff] %v287_v1  ;;  %v297_v6 = vld [vmem:[%s811_s0 + $0x30] sm:$0xff]  ;;  %v299_v7 = vld [vmem:[%s811_s0 + $0x38] sm:$0xff]  ;;  %v301_v8 = vld [vmem:[%s811_s0 + $0x40] sm:$0xff] }
   0x4   :  { %290 = vst [vmem:[%s812_s2 + $0x10] sm:$0xff] %v289_v2  ;;  %v303_v9 = vld [vmem:[%s811_s0 + $0x48] sm:$0xff]  ;;  %v305_v10 = vld [vmem:[%s811_s0 + $0x50] sm:$0xff]  ;;  %v307_v11 = vld [vmem:[%s811_s0 + $0x58] sm:$0xff] }
   0x5   :  { %292 = vst [vmem:[%s812_s2 + $0x18] sm:$0xff] %v291_v3  ;;  %v309_v12 = vld [vmem:[%s811_s0 + $0x60] sm:$0xff]  ;;  %v311_v13 = vld [vmem:[%s811_s0 + $0x68] sm:$0xff]  ;;  %v313_v14 = vld [vmem:[%s811_s0 + $0x70] sm:$0xff] }
   0x6   :  { %294 = vst [vmem:[%s812_s2 + $0x20] sm:$0xff] %v293_v4  ;;  %v315_v15 = vld [vmem:[%s811_s0 + $0x78] sm:$0xff]  ;;  %v317_v16 = vld [vmem:[%s811_s0 + $0x80] sm:$0xff]  ;;  %v319_v17 = vld [vmem:[%s811_s0 + $0x88] sm:$0xff] }
   0x7   :  { %296 = vst [vmem:[%s812_s2 + $0x28] sm:$0xff] %v295_v5  ;;  %v321_v18 = vld [vmem:[%s811_s0 + $0x90] sm:$0xff]  ;;  %v323_v19 = vld [vmem:[%s811_s0 + $0x98] sm:$0xff]  ;;  %v325_v20 = vld [vmem:[%s811_s0 + $0xa0] sm:$0xff] }
   0x8   :  { %298 = vst [vmem:[%s812_s2 + $0x30] sm:$0xff] %v297_v6  ;;  %v327_v21 = vld [vmem:[%s811_s0 + $0xa8] sm:$0xff]  ;;  %v329_v22 = vld [vmem:[%s811_s0 + $0xb0] sm:$0xff]  ;;  %v331_v23 = vld [vmem:[%s811_s0 + $0xb8] sm:$0xff] }
   0x9   :  { %300 = vst [vmem:[%s812_s2 + $0x38] sm:$0xff] %v299_v7  ;;  %v333_v24 = vld [vmem:[%s811_s0 + $0xc0] sm:$0xff]  ;;  %v335_v25 = vld [vmem:[%s811_s0 + $0xc8] sm:$0xff]  ;;  %v337_v26 = vld [vmem:[%s811_s0 + $0xd0] sm:$0xff] }
   0xa   :  { %302 = vst [vmem:[%s812_s2 + $0x40] sm:$0xff] %v301_v8  ;;  %v339_v27 = vld [vmem:[%s811_s0 + $0xd8] sm:$0xff]  ;;  %v341_v28 = vld [vmem:[%s811_s0 + $0xe0] sm:$0xff]  ;;  %v343_v29 = vld [vmem:[%s811_s0 + $0xe8] sm:$0xff] }
   0xb   :  { %304 = vst [vmem:[%s812_s2 + $0x48] sm:$0xff] %v303_v9  ;;  %v345_v30 = vld [vmem:[%s811_s0 + $0xf0] sm:$0xff]  ;;  %v347_v31 = vld [vmem:[%s811_s0 + $0xf8] sm:$0xff]  ;;  %v130_v32 = vld [vmem:[%s813_s1] sm:$0xff] }
   0xc   :  { %306 = vst [vmem:[%s812_s2 + $0x50] sm:$0xff] %v305_v10  ;;  %v350_v33 = vld [vmem:[%s813_s1 + $0x8] sm:$0xff]  ;;  %v352_v34 = vld [vmem:[%s813_s1 + $0x10] sm:$0xff]  ;;  %v354_v35 = vld [vmem:[%s813_s1 + $0x18] sm:$0xff] }
   0xd   :  { %308 = vst [vmem:[%s812_s2 + $0x58] sm:$0xff] %v307_v11  ;;  %v356_v36 = vld [vmem:[%s813_s1 + $0x20] sm:$0xff]  ;;  %v358_v37 = vld [vmem:[%s813_s1 + $0x28] sm:$0xff]  ;;  %v360_v38 = vld [vmem:[%s813_s1 + $0x30] sm:$0xff] }
   0xe   :  { %310 = vst [vmem:[%s812_s2 + $0x60] sm:$0xff] %v309_v12  ;;  %v362_v39 = vld [vmem:[%s813_s1 + $0x38] sm:$0xff]  ;;  %v364_v40 = vld [vmem:[%s813_s1 + $0x40] sm:$0xff]  ;;  %v366_v41 = vld [vmem:[%s813_s1 + $0x48] sm:$0xff] }
   0xf   :  { %312 = vst [vmem:[%s812_s2 + $0x68] sm:$0xff] %v311_v13  ;;  %v368_v42 = vld [vmem:[%s813_s1 + $0x50] sm:$0xff]  ;;  %v370_v43 = vld [vmem:[%s813_s1 + $0x58] sm:$0xff]  ;;  %v372_v44 = vld [vmem:[%s813_s1 + $0x60] sm:$0xff] }
  0x10   :  { %314 = vst [vmem:[%s812_s2 + $0x70] sm:$0xff] %v313_v14  ;;  %v374_v45 = vld [vmem:[%s813_s1 + $0x68] sm:$0xff]  ;;  %v376_v46 = vld [vmem:[%s813_s1 + $0x70] sm:$0xff]  ;;  %v378_v47 = vld [vmem:[%s813_s1 + $0x78] sm:$0xff] }
  0x11   :  { %316 = vst [vmem:[%s812_s2 + $0x78] sm:$0xff] %v315_v15  ;;  %v380_v48 = vld [vmem:[%s813_s1 + $0x80] sm:$0xff]  ;;  %v382_v49 = vld [vmem:[%s813_s1 + $0x88] sm:$0xff]  ;;  %v384_v50 = vld [vmem:[%s813_s1 + $0x90] sm:$0xff] }
  0x12   :  { %318 = vst [vmem:[%s812_s2 + $0x80] sm:$0xff] %v317_v16  ;;  %v386_v51 = vld [vmem:[%s813_s1 + $0x98] sm:$0xff]  ;;  %v388_v52 = vld [vmem:[%s813_s1 + $0xa0] sm:$0xff]  ;;  %v390_v53 = vld [vmem:[%s813_s1 + $0xa8] sm:$0xff] }
  0x13   :  { %320 = vst [vmem:[%s812_s2 + $0x88] sm:$0xff] %v319_v17  ;;  %v392_v54 = vld [vmem:[%s813_s1 + $0xb0] sm:$0xff]  ;;  %v394_v55 = vld [vmem:[%s813_s1 + $0xb8] sm:$0xff]  ;;  %v396_v56 = vld [vmem:[%s813_s1 + $0xc0] sm:$0xff] }
  0x14   :  { %322 = vst [vmem:[%s812_s2 + $0x90] sm:$0xff] %v321_v18  ;;  %v398_v57 = vld [vmem:[%s813_s1 + $0xc8] sm:$0xff]  ;;  %v400_v58 = vld [vmem:[%s813_s1 + $0xd0] sm:$0xff]  ;;  %v402_v59 = vld [vmem:[%s813_s1 + $0xd8] sm:$0xff] }
  0x15   :  { %324 = vst [vmem:[%s812_s2 + $0x98] sm:$0xff] %v323_v19  ;;  %v404_v60 = vld [vmem:[%s813_s1 + $0xe0] sm:$0xff]  ;;  %v406_v61 = vld [vmem:[%s813_s1 + $0xe8] sm:$0xff]  ;;  %v408_v62 = vld [vmem:[%s813_s1 + $0xf0] sm:$0xff] }
  0x16   :  { %326 = vst [vmem:[%s812_s2 + $0xa0] sm:$0xff] %v325_v20  ;;  %v410_v63 = vld [vmem:[%s813_s1 + $0xf8] sm:$0xff] }
  0x17   :  { %328 = vst [vmem:[%s812_s2 + $0xa8] sm:$0xff] %v327_v21 }
  0x18   :  { %330 = vst [vmem:[%s812_s2 + $0xb0] sm:$0xff] %v329_v22 }
  0x19   :  { %332 = vst [vmem:[%s812_s2 + $0xb8] sm:$0xff] %v331_v23 }
  0x1a   :  { %334 = vst [vmem:[%s812_s2 + $0xc0] sm:$0xff] %v333_v24 }
  0x1b   :  { %336 = vst [vmem:[%s812_s2 + $0xc8] sm:$0xff] %v335_v25 }
  0x1c   :  { %338 = vst [vmem:[%s812_s2 + $0xd0] sm:$0xff] %v337_v26 }
  0x1d   :  { %340 = vst [vmem:[%s812_s2 + $0xd8] sm:$0xff] %v339_v27 }
  0x1e   :  { %342 = vst [vmem:[%s812_s2 + $0xe0] sm:$0xff] %v341_v28 }
  0x1f   :  { %344 = vst [vmem:[%s812_s2 + $0xe8] sm:$0xff] %v343_v29 }
  0x20   :  { %346 = vst [vmem:[%s812_s2 + $0xf0] sm:$0xff] %v345_v30 }
  0x21   :  { %348 = vst [vmem:[%s812_s2 + $0xf8] sm:$0xff] %v347_v31 }
  0x22   :  { %349 = vst [vmem:[%s812_s2 + $0x100] sm:$0xff] %v130_v32 }
  0x23   :  { %351 = vst [vmem:[%s812_s2 + $0x108] sm:$0xff] %v350_v33 }
  0x24   :  { %353 = vst [vmem:[%s812_s2 + $0x110] sm:$0xff] %v352_v34 }
  0x25   :  { %355 = vst [vmem:[%s812_s2 + $0x118] sm:$0xff] %v354_v35 }
  0x26   :  { %357 = vst [vmem:[%s812_s2 + $0x120] sm:$0xff] %v356_v36 }
  0x27   :  { %359 = vst [vmem:[%s812_s2 + $0x128] sm:$0xff] %v358_v37 }
  0x28   :  { %361 = vst [vmem:[%s812_s2 + $0x130] sm:$0xff] %v360_v38 }
  0x29   :  { %363 = vst [vmem:[%s812_s2 + $0x138] sm:$0xff] %v362_v39 }
  0x2a   :  { %365 = vst [vmem:[%s812_s2 + $0x140] sm:$0xff] %v364_v40 }
  0x2b   :  { %367 = vst [vmem:[%s812_s2 + $0x148] sm:$0xff] %v366_v41 }
  0x2c   :  { %369 = vst [vmem:[%s812_s2 + $0x150] sm:$0xff] %v368_v42 }
  0x2d   :  { %371 = vst [vmem:[%s812_s2 + $0x158] sm:$0xff] %v370_v43 }
  0x2e   :  { %373 = vst [vmem:[%s812_s2 + $0x160] sm:$0xff] %v372_v44 }
  0x2f   :  { %375 = vst [vmem:[%s812_s2 + $0x168] sm:$0xff] %v374_v45 }
  0x30   :  { %377 = vst [vmem:[%s812_s2 + $0x170] sm:$0xff] %v376_v46 }
  0x31   :  { %379 = vst [vmem:[%s812_s2 + $0x178] sm:$0xff] %v378_v47 }
  0x32   :  { %381 = vst [vmem:[%s812_s2 + $0x180] sm:$0xff] %v380_v48 }
  0x33   :  { %383 = vst [vmem:[%s812_s2 + $0x188] sm:$0xff] %v382_v49 }
  0x34   :  { %385 = vst [vmem:[%s812_s2 + $0x190] sm:$0xff] %v384_v50 }
  0x35   :  { %387 = vst [vmem:[%s812_s2 + $0x198] sm:$0xff] %v386_v51 }
  0x36   :  { %389 = vst [vmem:[%s812_s2 + $0x1a0] sm:$0xff] %v388_v52 }
  0x37   :  { %391 = vst [vmem:[%s812_s2 + $0x1a8] sm:$0xff] %v390_v53 }
  0x38   :  { %393 = vst [vmem:[%s812_s2 + $0x1b0] sm:$0xff] %v392_v54 }
  0x39   :  { %395 = vst [vmem:[%s812_s2 + $0x1b8] sm:$0xff] %v394_v55 }
  0x3a   :  { %397 = vst [vmem:[%s812_s2 + $0x1c0] sm:$0xff] %v396_v56 }
  0x3b   :  { %399 = vst [vmem:[%s812_s2 + $0x1c8] sm:$0xff] %v398_v57 }
  0x3c   :  { %401 = vst [vmem:[%s812_s2 + $0x1d0] sm:$0xff] %v400_v58 }
  0x3d   :  { %403 = vst [vmem:[%s812_s2 + $0x1d8] sm:$0xff] %v402_v59 }
  0x3e   :  { %405 = vst [vmem:[%s812_s2 + $0x1e0] sm:$0xff] %v404_v60 }
  0x3f   :  { %407 = vst [vmem:[%s812_s2 + $0x1e8] sm:$0xff] %v406_v61 }
  0x40   :  { %409 = vst [vmem:[%s812_s2 + $0x1f0] sm:$0xff] %v408_v62 }
  0x41   :  { %411 = vst [vmem:[%s812_s2 + $0x1f8] sm:$0xff] %v410_v63 }

// kernel: unitary_projection_forward.1
= control target key start
LH: loop header
LB: loop body
LE: loop exit
PB: predicated region body
PF: predicated region fallthrough
CT: control target
= control target key end

     0   :  { %s3022_s18 = smov [#allocation5]   ;;  %s5397_s0 = inlined_call_operand.vmem [shape: s32[2], index: 0, kind: input, shape index: {}]   ;;  %s5398_s1 = inlined_call_operand.vmem [shape: f32[2,128,128], index: 1, kind: input, shape index: {}]   ;;  %s5399_s2 = inlined_call_operand.vmem [shape: f32[2,128,128], index: 2, kind: input, shape index: {}]   ;;  %s5400_s3 = inlined_call_operand.vmem [shape: f32[2,128,128], index: 3, kind: output, shape index: {0}]   ;;  %s5401_s4 = inlined_call_operand.vmem [shape: f32[2,128,128], index: 4, kind: output, shape index: {1}]  }
   0x1   :  { %s11_s17 = sshll.u32 %s5397_s0, 4  ;;  %s12_s17 = int_to_ptr.vmem [resolvable:$true] %s11_s17 }
   0x2   :  { %14 = dma.vmem_to_smem %s12_s17, 16, %s3022_s18, [#allocation4] }
   0x3   :  { %3012 = dma.done.wait [#allocation4], 16 }
   0x4   :  { %3013 = vsyncadd [#allocation4], 4294967280 }
   0x5   :  { %17 = sfence }
   0x6   :  { %s3052_s19 = smov 0  }
   0x7 LB: > { %s2778_s20 = sadd.s32 4294967295, %s3016_s19   ;;  %p2782_p0 = scmp.ge.s32.totalorder %s3016_s19, 1  ;;  %s3016_s19 = sphi %s3052_s19, %s23_s19  }
   0x8   : > { %p159_p1 = scmp.lt.s32.totalorder %s3016_s19, 3 }
   0xa   : > { %p160_p2 = pnand %p2782_p0, %p159_p1 }
   0xc   : > { %163 = sbr.rel (%p160_p2) target bundleno = 1674 (0x68a), region = 28 }
  0x11   : > { %p193_p3 = scmp.lt.s32.totalorder %s2778_s20, 1  ;;  %s3060_s0 = sld [smem:[#allocation5 + %s2778_s20]] }
  0x13   : > { %s6311_s20 = smov (!%p193_p3, %s2778_s20), 1 }
  0x14   : > { %s2810_s21 = sshll.u32 %s6311_s20, 7 }
  0x15   : > { %s3065_s24 = scalar_lea.vmem %s5398_s1, %s2810_s21  ;;  %s3070_s27 = scalar_lea.vmem %s5400_s3, %s2810_s21 }
  0x16   : > { %s3075_s30 = scalar_lea.vmem %s5401_s4, %s2810_s21  ;;  %v3078_v0 = vld [vmem:[%s3065_s24 + $0x78] sm:$0xff]  ;;  %v3081_v1 = vld [vmem:[%s3065_s24 + $0x70] sm:$0xff]  ;;  %v3086_v2 = vld [vmem:[%s3065_s24 + $0x68] sm:$0xff]  ;;  %s3091_s7 = scalar_lea.vmem %s5399_s2, %s2810_s21 }
  0x17   : > { %329 = vmatpush.msra.mxu0 %v3078_v0  ;;  %2814 = vmatpush.msra.mxu3 %v3078_v0  ;;  %v3096_v3 = vld [vmem:[%s3065_s24 + $0x60] sm:$0xff]  ;;  %v3100_v4 = vld [vmem:[%s3091_s7 + $0x78] sm:$0xff]  ;;  %v3109_v6 = vld [vmem:[%s3091_s7 + $0x70] sm:$0xff]  ;;  %p2807_p4 = scmp.le.s32.totalorder %s3060_s0, 0 }
  0x18   : > { %v3104_v5 = vld [vmem:[%s3065_s24 + $0x58] sm:$0xff]  ;;  %2830 = vmatpush.msra.mxu1 %v3100_v4  ;;  %v3113_v7 = vld [vmem:[%s3065_s24 + $0x50] sm:$0xff]  ;;  %v3118_v8 = vld [vmem:[%s3091_s7 + $0x68] sm:$0xff]  ;;  %v3215_v29 = vadd.f32 %v3100_v4, %v3078_v0  ;;  %v3226_v31 = vadd.f32 %v3109_v6, %v3081_v1  ;;  %s5101_s8 = smov (!%p2807_p4), 0  }
  0x19   : > { %330 = vmatpush.msra.mxu0 %v3081_v1  ;;  %2815 = vmatpush.msra.mxu3 %v3081_v1  ;;  %v3122_v9 = vld [vmem:[%s3065_s24 + $0x48] sm:$0xff]  ;;  %v3127_v10 = vld [vmem:[%s3091_s7 + $0x60] sm:$0xff]  ;;  %v3136_v12 = vld [vmem:[%s3091_s7 + $0x58] sm:$0xff]  ;;  %v3237_v33 = vadd.f32 %v3118_v8, %v3086_v2 }
  0x1a   : > { %2831 = vmatpush.msra.mxu1 %v3109_v6  ;;  %v3131_v11 = vld [vmem:[%s3065_s24 + $0x40] sm:$0xff]  ;;  %v3140_v13 = vld [vmem:[%s3065_s24 + $0x38] sm:$0xff]  ;;  %v3145_v14 = vld [vmem:[%s3091_s7 + $0x50] sm:$0xff]  ;;  %2846 = vmatpush.msra.mxu2 %v3215_v29  ;;  %v3248_v35 = vadd.f32 %v3127_v10, %v3096_v3  ;;  %v3256_v36 = vadd.f32 %v3136_v12, %v3104_v5 }
  0x1b   : > { %331 = vmatpush.msra.mxu0 %v3086_v2  ;;  %2816 = vmatpush.msra.mxu3 %v3086_v2  ;;  %v3149_v15 = vld [vmem:[%s3065_s24 + $0x30] sm:$0xff]  ;;  %v3154_v16 = vld [vmem:[%s3091_s7 + $0x48] sm:$0xff]  ;;  %v3163_v18 = vld [vmem:[%s3091_s7 + $0x40] sm:$0xff]  ;;  %v3264_v37 = vadd.f32 %v3145_v14, %v3113_v7 }
  0x1c   : > { %2832 = vmatpush.msra.mxu1 %v3118_v8  ;;  %v3158_v17 = vld [vmem:[%s3065_s24 + $0x28] sm:$0xff]  ;;  %v3167_v19 = vld [vmem:[%s3065_s24 + $0x20] sm:$0xff]  ;;  %v3172_v20 = vld [vmem:[%s3091_s7 + $0x38] sm:$0xff]  ;;  %2847 = vmatpush.msra.mxu2 %v3226_v31  ;;  %v3272_v38 = vadd.f32 %v3154_v16, %v3122_v9  ;;  %v3280_v39 = vadd.f32 %v3163_v18, %v3131_v11 }
  0x1d   : > { %332 = vmatpush.msra.mxu0 %v3096_v3  ;;  %2817 = vmatpush.msra.mxu3 %v3096_v3  ;;  %v3176_v21 = vld [vmem:[%s3065_s24 + $0x18] sm:$0xff]  ;;  %v3181_v22 = vld [vmem:[%s3091_s7 + $0x30] sm:$0xff]  ;;  %v3190_v24 = vld [vmem:[%s3091_s7 + $0x28] sm:$0xff]  ;;  %v3288_v40 = vadd.f32 %v3172_v20, %v3140_v13 }
  0x1e   : > { %2833 = vmatpush.msra.mxu1 %v3127_v10  ;;  %v3185_v23 = vld [vmem:[%s3065_s24 + $0x10] sm:$0xff]  ;;  %v3194_v25 = vld [vmem:[%s3065_s24 + $0x8] sm:$0xff]  ;;  %v3199_v26 = vld [vmem:[%s3091_s7 + $0x20] sm:$0xff]  ;;  %2848 = vmatpush.msra.mxu2 %v3237_v33  ;;  %v3296_v41 = vadd.f32 %v3181_v22, %v3149_v15  ;;  %v3304_v42 = vadd.f32 %v3190_v24, %v3158_v17 }
  0x1f   : > { %333 = vmatpush.msra.mxu0 %v3104_v5  ;;  %2818 = vmatpush.msra.mxu3 %v3104_v5  ;;  %v3203_v27 = vld [vmem:[%s3065_s24] sm:$0xff]  ;;  %v3208_v28 = vld [vmem:[%s3091_s7 + $0x18] sm:$0xff]  ;;  %v3222_v30 = vld [vmem:[%s3091_s7 + $0x10] sm:$0xff]  ;;  %v317_v43 = vadd.f32 %v3199_v26, %v3167_v19 }
  0x20   : > { %2834 = vmatpush.msra.mxu1 %v3136_v12  ;;  %v3233_v32 = vld [vmem:[%s3091_s7 + $0x8] sm:$0xff]  ;;  %v3244_v34 = vld [vmem:[%s3091_s7] sm:$0xff]  ;;  %2849 = vmatpush.msra.mxu2 %v3248_v35  ;;  %v3318_v44 = vadd.f32 %v3208_v28, %v3176_v21  ;;  %v3325_v45 = vadd.f32 %v3222_v30, %v3185_v23 }
  0x21   : > { %334 = vmatpush.msra.mxu0 %v3113_v7  ;;  %2819 = vmatpush.msra.mxu3 %v3113_v7  ;;  %v3333_v46 = vadd.f32 %v3233_v32, %v3194_v25  ;;  %v313_v47 = vadd.f32 %v3244_v34, %v3203_v27 }
  0x22   : > { %2835 = vmatpush.msra.mxu1 %v3145_v14  ;;  %2850 = vmatpush.msra.mxu2 %v3256_v36 }
  0x23   : > { %335 = vmatpush.msra.mxu0 %v3122_v9  ;;  %2820 = vmatpush.msra.mxu3 %v3122_v9 }
  0x24   : > { %2836 = vmatpush.msra.mxu1 %v3154_v16  ;;  %2851 = vmatpush.msra.mxu2 %v3264_v37 }
  0x25   : > { %336 = vmatpush.msra.mxu0 %v3131_v11  ;;  %2821 = vmatpush.msra.mxu3 %v3131_v11 }
  0x26   : > { %2837 = vmatpush.msra.mxu1 %v3163_v18  ;;  %2852 = vmatpush.msra.mxu2 %v3272_v38 }
  0x27   : > { %337 = vmatpush.msra.mxu0 %v3140_v13  ;;  %2822 = vmatpush.msra.mxu3 %v3140_v13 }
  0x28   : > { %2838 = vmatpush.msra.mxu1 %v3172_v20  ;;  %2853 = vmatpush.msra.mxu2 %v3280_v39 }
  0x29   : > { %338 = vmatpush.msra.mxu0 %v3149_v15  ;;  %2823 = vmatpush.msra.mxu3 %v3149_v15 }
  0x2a   : > { %2839 = vmatpush.msra.mxu1 %v3181_v22  ;;  %2854 = vmatpush.msra.mxu2 %v3288_v40 }
  0x2b   : > { %339 = vmatpush.msra.mxu0 %v3158_v17  ;;  %2824 = vmatpush.msra.mxu3 %v3158_v17 }
  0x2c   : > { %2840 = vmatpush.msra.mxu1 %v3190_v24  ;;  %2855 = vmatpush.msra.mxu2 %v3296_v41 }
  0x2d   : > { %340 = vmatpush.msra.mxu0 %v3167_v19  ;;  %2825 = vmatpush.msra.mxu3 %v3167_v19 }
  0x2e   : > { %2841 = vmatpush.msra.mxu1 %v3199_v26  ;;  %2856 = vmatpush.msra.mxu2 %v3304_v42 }
  0x2f   : > { %341 = vmatpush.msra.mxu0 %v3176_v21  ;;  %2826 = vmatpush.msra.mxu3 %v3176_v21 }
  0x30   : > { %2842 = vmatpush.msra.mxu1 %v3208_v28  ;;  %2857 = vmatpush.msra.mxu2 %v317_v43 }
  0x31   : > { %342 = vmatpush.msra.mxu0 %v3185_v23  ;;  %2827 = vmatpush.msra.mxu3 %v3185_v23 }
  0x32   : > { %2843 = vmatpush.msra.mxu1 %v3222_v30  ;;  %2858 = vmatpush.msra.mxu2 %v3318_v44 }
  0x33   : > { %343 = vmatpush.msra.mxu0 %v3194_v25  ;;  %2828 = vmatpush.msra.mxu3 %v3194_v25 }
  0x34   : > { %2844 = vmatpush.msra.mxu1 %v3233_v32  ;;  %2859 = vmatpush.msra.mxu2 %v3325_v45 }
  0x35   : > { %344 = vmatpush.msra.mxu0 %v3203_v27  ;;  %2829 = vmatpush.msra.mxu3 %v3203_v27 }
  0x36   : > { %345 = vmatmul.f32.vlgmr.msra.gmra.mxu0 %v3203_v27  ;;  %357 = vmatmul.f32.vlgmr.msra.gmra.mxu3 %v3167_v19 }
  0x37   : > { %394 = vmatpush.msrb.mxu0 %v3100_v4  ;;  %588 = vmatpush.msrb.mxu3 %v3078_v0 }
  0x38   : > { %2845 = vmatpush.msra.mxu1 %v3244_v34  ;;  %2860 = vmatpush.msra.mxu2 %v3333_v46 }
  0x39   : > { %395 = vmatpush.msrb.mxu0 %v3109_v6  ;;  %589 = vmatpush.msrb.mxu3 %v3081_v1 }
  0x3a   : > { %422 = vmatmul.f32.vlgmr.msra.gmra.mxu1 %v3199_v26  ;;  %2861 = vmatpush.msra.mxu2 %v313_v47 }
  0x3b   : > { %396 = vmatpush.msrb.mxu0 %v3118_v8  ;;  %590 = vmatpush.msrb.mxu3 %v3086_v2 }
  0x3c   : > { %718 = vmatpush.msrb.mxu1 %v3215_v29  ;;  %487 = vmatmul.f32.vlgmr.msra.gmra.mxu2 %v317_v43 }
  0x3d   : > { %397 = vmatpush.msrb.mxu0 %v3127_v10  ;;  %591 = vmatpush.msrb.mxu3 %v3096_v3 }
  0x3e   : > { %348 = vmatmul.f32.gmra.mxu0 %v3194_v25  ;;  %360 = vmatmul.f32.gmra.mxu3 %v3158_v17 }
  0x3f   : > { %398 = vmatpush.msrb.mxu0 %v3136_v12  ;;  %592 = vmatpush.msrb.mxu3 %v3104_v5 }
  0x40   : > { %719 = vmatpush.msrb.mxu1 %v3226_v31 }
  0x41   : > { %399 = vmatpush.msrb.mxu0 %v3145_v14  ;;  %593 = vmatpush.msrb.mxu3 %v3113_v7 }
  0x42   : > { %425 = vmatmul.f32.gmra.mxu1 %v3190_v24 }
  0x43   : > { %400 = vmatpush.msrb.mxu0 %v3154_v16  ;;  %594 = vmatpush.msrb.mxu3 %v3122_v9 }
  0x44   : > { %720 = vmatpush.msrb.mxu1 %v3237_v33  ;;  %490 = vmatmul.f32.gmra.mxu2 %v3304_v42 }
  0x45   : > { %401 = vmatpush.msrb.mxu0 %v3163_v18  ;;  %595 = vmatpush.msrb.mxu3 %v3131_v11 }
  0x46   : > { %351 = vmatmul.f32.gmra.mxu0 %v3185_v23  ;;  %363 = vmatmul.f32.gmra.mxu3 %v3149_v15 }
  0x47   : > { %402 = vmatpush.msrb.mxu0 %v3172_v20  ;;  %596 = vmatpush.msrb.mxu3 %v3140_v13 }
  0x48   : > { %721 = vmatpush.msrb.mxu1 %v3248_v35 }
  0x49   : > { %403 = vmatpush.msrb.mxu0 %v3181_v22  ;;  %597 = vmatpush.msrb.mxu3 %v3149_v15 }
  0x4a   : > { %428 = vmatmul.f32.gmra.mxu1 %v3181_v22 }
  0x4b   : > { %404 = vmatpush.msrb.mxu0 %v3190_v24  ;;  %598 = vmatpush.msrb.mxu3 %v3158_v17 }
  0x4c   : > { %722 = vmatpush.msrb.mxu1 %v3256_v36  ;;  %493 = vmatmul.f32.gmra.mxu2 %v3296_v41 }
  0x4d   : > { %405 = vmatpush.msrb.mxu0 %v3199_v26  ;;  %599 = vmatpush.msrb.mxu3 %v3167_v19 }
  0x4e   : > { %354 = vmatmul.f32.gmra.mxu0 %v3176_v21  ;;  %366 = vmatmul.f32.gmra.mxu3 %v3140_v13 }
  0x4f   : > { %406 = vmatpush.msrb.mxu0 %v3208_v28  ;;  %723 = vmatpush.msrb.mxu1 %v3264_v37 }
  0x50   : > { %600 = vmatpush.msrb.mxu3 %v3176_v21 }
  0x51   : > { %407 = vmatpush.msrb.mxu0 %v3222_v30  ;;  %724 = vmatpush.msrb.mxu1 %v3272_v38 }
  0x52   : > { %431 = vmatmul.f32.gmra.mxu1 %v3172_v20  ;;  %601 = vmatpush.msrb.mxu3 %v3185_v23 }
  0x53   : > { %408 = vmatpush.msrb.mxu0 %v3233_v32  ;;  %725 = vmatpush.msrb.mxu1 %v3280_v39 }
  0x54   : > { %602 = vmatpush.msrb.mxu3 %v3194_v25  ;;  %496 = vmatmul.f32.gmra.mxu2 %v3288_v40 }
  0x55   : > { %409 = vmatpush.msrb.mxu0 %v3244_v34  ;;  %726 = vmatpush.msrb.mxu1 %v3288_v40 }
  0x56   : > { %410 = vmatmul.f32.vlgmr.msrb.gmra.mxu0 %v3244_v34  ;;  %369 = vmatmul.f32.gmra.mxu3 %v3131_v11 }
  0x57   : > { %459 = vmatpush.msra.mxu0 %v3215_v29  ;;  %603 = vmatpush.msrb.mxu3 %v3203_v27 }
  0x58   : > { %727 = vmatpush.msrb.mxu1 %v3296_v41 }
  0x59   : > { %460 = vmatpush.msra.mxu0 %v3226_v31 }
  0x5a   : > { %434 = vmatmul.f32.gmra.mxu1 %v3163_v18 }
  0x5b   : > { %461 = vmatpush.msra.mxu0 %v3237_v33  ;;  %728 = vmatpush.msrb.mxu1 %v3304_v42 }
  0x5c   : > { %499 = vmatmul.f32.gmra.mxu2 %v3280_v39 }
  0x5d   : > { %462 = vmatpush.msra.mxu0 %v3248_v35  ;;  %729 = vmatpush.msrb.mxu1 %v317_v43 }
  0x5e   : > { %413 = vmatmul.f32.gmra.mxu0 %v3233_v32  ;;  %372 = vmatmul.f32.gmra.mxu3 %v3122_v9 }
  0x5f   : > { %463 = vmatpush.msra.mxu0 %v3256_v36  ;;  %730 = vmatpush.msrb.mxu1 %v3318_v44 }
  0x61   : > { %464 = vmatpush.msra.mxu0 %v3264_v37  ;;  %731 = vmatpush.msrb.mxu1 %v3325_v45 }
  0x62   : > { %437 = vmatmul.f32.gmra.mxu1 %v3154_v16 }
  0x63   : > { %465 = vmatpush.msra.mxu0 %v3272_v38  ;;  %732 = vmatpush.msrb.mxu1 %v3333_v46 }
  0x64   : > { %502 = vmatmul.f32.gmra.mxu2 %v3272_v38 }
  0x65   : > { %466 = vmatpush.msra.mxu0 %v3280_v39  ;;  %733 = vmatpush.msrb.mxu1 %v313_v47 }
  0x66   : > { %416 = vmatmul.f32.gmra.mxu0 %v3222_v30  ;;  %375 = vmatmul.f32.gmra.mxu3 %v3113_v7 }
  0x67   : > { %467 = vmatpush.msra.mxu0 %v3288_v40 }
  0x69   : > { %468 = vmatpush.msra.mxu0 %v3296_v41 }
  0x6a   : > { %440 = vmatmul.f32.gmra.mxu1 %v3145_v14 }
  0x6b   : > { %469 = vmatpush.msra.mxu0 %v3304_v42 }
  0x6c   : > { %505 = vmatmul.f32.gmra.mxu2 %v3264_v37 }
  0x6d   : > { %470 = vmatpush.msra.mxu0 %v317_v43 }
  0x6e   : > { %419 = vmatmul.f32.gmra.mxu0 %v3208_v28  ;;  %378 = vmatmul.f32.gmra.mxu3 %v3104_v5 }
  0x6f   : > { %471 = vmatpush.msra.mxu0 %v3318_v44 }
  0x71   : > { %472 = vmatpush.msra.mxu0 %v3325_v45 }
  0x72   : > { %443 = vmatmul.f32.gmra.mxu1 %v3136_v12 }
  0x73   : > { %473 = vmatpush.msra.mxu0 %v3333_v46 }
  0x74   : > { %508 = vmatmul.f32.gmra.mxu2 %v3256_v36 }
  0x75   : > { %474 = vmatpush.msra.mxu0 %v313_v47 }
  0x76   : > { %475 = vmatmul.f32.vlgmr.msra.gmra.mxu0 %v313_v47  ;;  %381 = vmatmul.f32.gmra.mxu3 %v3096_v3 }
  0x77   : > { %653 = vmatpush.msrb.mxu0 %v3100_v4 }
  0x79   : > { %654 = vmatpush.msrb.mxu0 %v3109_v6 }
  0x7a   : > { %446 = vmatmul.f32.gmra.mxu1 %v3127_v10 }
  0x7b   : > { %655 = vmatpush.msrb.mxu0 %v3118_v8 }
  0x7c   : > { %511 = vmatmul.f32.gmra.mxu2 %v3248_v35 }
  0x7d   : > { %656 = vmatpush.msrb.mxu0 %v3127_v10 }
  0x7e   : > { %478 = vmatmul.f32.gmra.mxu0 %v3333_v46  ;;  %384 = vmatmul.f32.gmra.mxu3 %v3086_v2 }
  0x7f   : > { %657 = vmatpush.msrb.mxu0 %v3136_v12 }
  0x81   : > { %658 = vmatpush.msrb.mxu0 %v3145_v14 }
  0x82   : > { %449 = vmatmul.f32.gmra.mxu1 %v3118_v8 }
  0x83   : > { %659 = vmatpush.msrb.mxu0 %v3154_v16 }
  0x84   : > { %514 = vmatmul.f32.gmra.mxu2 %v3237_v33 }
  0x85   : > { %660 = vmatpush.msrb.mxu0 %v3163_v18 }
  0x86   : > { %481 = vmatmul.f32.gmra.mxu0 %v3325_v45  ;;  %387 = vmatmul.f32.gmra.mxu3 %v3081_v1 }
  0x87   : > { %661 = vmatpush.msrb.mxu0 %v3172_v20 }
  0x89   : > { %662 = vmatpush.msrb.mxu0 %v3181_v22 }
  0x8a   : > { %452 = vmatmul.f32.gmra.mxu1 %v3109_v6 }
  0x8b   : > { %663 = vmatpush.msrb.mxu0 %v3190_v24 }
  0x8c   : > { %517 = vmatmul.f32.gmra.mxu2 %v3226_v31 }
  0x8d   : > { %664 = vmatpush.msrb.mxu0 %v3199_v26 }
  0x8e   : > { %484 = vmatmul.f32.gmra.mxu0 %v3318_v44  ;;  %390 = vmatmul.f32.gmra.mxu3 %v3078_v0 }
  0x8f   : > { %665 = vmatpush.msrb.mxu0 %v3208_v28 }
  0x91   : > { %666 = vmatpush.msrb.mxu0 %v3222_v30 }
  0x92   : > { %455 = vmatmul.f32.gmra.mxu1 %v3100_v4 }
  0x93   : > { %667 = vmatpush.msrb.mxu0 %v3233_v32 }
  0x94   : > { %520 = vmatmul.f32.gmra.mxu2 %v3215_v29 }
  0x95   : > { %668 = vmatpush.msrb.mxu0 %v3244_v34 }
  0xb3   : > { %v346_v48 = vpop.f32.mrf.mxu0 }
  0xb7   : > { %v423_v62 = vpop.f32.mrf.mxu1 }
  0xb9   : > { %v358_v55 = vpop.f32.mrf.mxu3 }
  0xba   : > { %v3436_v0 = vsub.f32 %v358_v55, %v423_v62 }
  0xbb   : > { %v349_v49 = vpop.f32.mrf.mxu0 }
  0xbc   : > { %5702 = vst [vmem:[#allocation11_spill] sm:$0xff] %v3436_v0 }
  0xbf   : > { %v426_v4 = vpop.f32.mrf.mxu1  ;;  %v488_v5 = vpop.f32.mrf.mxu2 }
  0xc0   : > { %v544_v47 = vsub.f32 %v488_v5, %v358_v55 }
  0xc1   : > { %v361_v59 = vpop.f32.mrf.mxu3 }
  0xc2   : > { %v3446_v8 = vsub.f32 %v361_v59, %v426_v4 }
  0xc3   : > { %v352_v50 = vpop.f32.mrf.mxu0 }
  0xc4   : > { %5704 = vst [vmem:[#allocation13_spill] sm:$0xff] %v3446_v8 }
  0xc7   : > { %v429_v14 = vpop.f32.mrf.mxu1  ;;  %v491_v29 = vpop.f32.mrf.mxu2 }
  0xc9   : > { %v3434_v63 = vpop.f32.mrf.mxu3 }
  0xca   : > { %v3455_v31 = vsub.f32 %v3434_v63, %v429_v14 }
  0xcb   : > { %v355_v51 = vpop.f32.mrf.mxu0 }
  0xcc   : > { %5706 = vst [vmem:[#allocation15_spill] sm:$0xff] %v3455_v31 }
  0xcf   : > { %v432_v38 = vpop.f32.mrf.mxu1  ;;  %v494_v42 = vpop.f32.mrf.mxu2 }
  0xd0   : > { %v546_v5 = vsub.f32 %v494_v42, %v3434_v63 }
  0xd1   : > { %v3444_v7 = vpop.f32.mrf.mxu3 }
  0xd2   : > { %v3464_v40 = vsub.f32 %v3444_v7, %v432_v38 }
  0xd3   : > { %v411_v52 = vpop.f32.mrf.mxu0 }
  0xd4   : > { %v3422_v53 = vsub.f32 %v346_v48, %v411_v52  ;;  %5708 = vst [vmem:[#allocation17_spill] sm:$0xff] %v3464_v40 }
  0xd6   : > { %5698 = vst [vmem:[#allocation7_spill] sm:$0xff] %v3422_v53  ;;  %604 = vmatmul.f32.vlgmr.msrb.gmra.mxu3 %v3422_v53 }
  0xd7   : > { %v435_v46 = vpop.f32.mrf.mxu1 }
  0xd9   : > { %v370_v35 = vpop.f32.mrf.mxu3 }
  0xdb   : > { %v414_v54 = vpop.f32.mrf.mxu0 }
  0xdc   : > { %v3425_v56 = vsub.f32 %v349_v49, %v414_v54 }
  0xde   : > { %5699 = vst [vmem:[#allocation8_spill] sm:$0xff] %v3425_v56  ;;  %607 = vmatmul.f32.gmra.mxu3 %v3425_v56 }
  0xe1   : > { %v373_v44 = vpop.f32.mrf.mxu3 }
  0xe3   : > { %v417_v57 = vpop.f32.mrf.mxu0 }
  0xe4   : > { %v3428_v58 = vsub.f32 %v352_v50, %v417_v57 }
  0xe6   : > { %5700 = vst [vmem:[#allocation9_spill] sm:$0xff] %v3428_v58  ;;  %610 = vmatmul.f32.gmra.mxu3 %v3428_v58 }
  0xeb   : > { %v420_v60 = vpop.f32.mrf.mxu0 }
  0xec   : > { %v3431_v61 = vsub.f32 %v355_v51, %v420_v60 }
  0xee   : > { %5701 = vst [vmem:[#allocation10_spill] sm:$0xff] %v3431_v61  ;;  %613 = vmatmul.f32.gmra.mxu3 %v3431_v61 }
  0xf3   : > { %v476_v1 = vpop.f32.mrf.mxu0 }
  0xf4   : > { %v540_v2 = vsub.f32 %v476_v1, %v346_v48 }
  0xf6   : > { %v3438_v3 = vsub.f32 %v540_v2, %v411_v52  ;;  %616 = vmatmul.f32.gmra.mxu3 %v3436_v0  ;;  %v497_v52 = vpop.f32.mrf.mxu2 }
  0xf8   : > { %5703 = vst [vmem:[#allocation12_spill] sm:$0xff] %v3438_v3  ;;  %669 = vmatmul.f32.vlgmr.msrb.gmra.mxu0 %v3438_v3  ;;  %v572_v6 = vadd.f32 %v3438_v3, %v3422_v53 }
  0xfa   : > { %734 = vmatmul.f32.vlgmr.msrb.gmra.mxu1 %v572_v6 }
  0xfb   : > { %v479_v9 = vpop.f32.mrf.mxu0 }
  0xfc   : > { %v541_v10 = vsub.f32 %v479_v9, %v349_v49  ;;  %v3472_v49 = vsub.f32 %v370_v35, %v435_v46 }
  0xfe   : > { %v3448_v12 = vsub.f32 %v541_v10, %v414_v54  ;;  %619 = vmatmul.f32.gmra.mxu3 %v3446_v8  ;;  %5710 = vst [vmem:[#allocation19_spill] sm:$0xff] %v3472_v49  ;;  %v376_v54 = vpop.f32.mrf.mxu3  ;;  %v500_v2 = vpop.f32.mrf.mxu2  ;;  %v3491_v10 = vsub.f32 %v546_v5, %v429_v14 }
 0x100   : > { %5705 = vst [vmem:[#allocation14_spill] sm:$0xff] %v3448_v12  ;;  %672 = vmatmul.f32.gmra.mxu0 %v3448_v12  ;;  %v573_v16 = vadd.f32 %v3448_v12, %v3425_v56  ;;  %v578_v63 = vadd.f32 %v3491_v10, %v3455_v31 }
 0x101   : > { %5715 = vst [vmem:[#allocation24_spill] sm:$0xff] %v3491_v10 }
 0x102   : > { %737 = vmatmul.f32.gmra.mxu1 %v573_v16  ;;  %v547_v16 = vsub.f32 %v497_v52, %v3444_v7 }
 0x103   : > { %v482_v33 = vpop.f32.mrf.mxu0 }
 0x104   : > { %v542_v36 = vsub.f32 %v482_v33, %v352_v50  ;;  %v3474_v50 = vsub.f32 %v544_v47, %v423_v62 }
 0x106   : > { %v3457_v37 = vsub.f32 %v542_v36, %v417_v57  ;;  %622 = vmatmul.f32.gmra.mxu3 %v3455_v31  ;;  %5711 = vst [vmem:[#allocation20_spill] sm:$0xff] %v3474_v50  ;;  %v545_v57 = vsub.f32 %v491_v29, %v361_v59  ;;  %v576_v55 = vadd.f32 %v3474_v50, %v3436_v0  ;;  %v379_v6 = vpop.f32.mrf.mxu3  ;;  %v503_v29 = vpop.f32.mrf.mxu2 }
 0x107   : > { %v549_v52 = vsub.f32 %v503_v29, %v373_v44 }
 0x108   : > { %5707 = vst [vmem:[#allocation16_spill] sm:$0xff] %v3457_v37  ;;  %675 = vmatmul.f32.gmra.mxu0 %v3457_v37  ;;  %v574_v39 = vadd.f32 %v3457_v37, %v3428_v58  ;;  %v3482_v1 = vsub.f32 %v545_v57, %v426_v4 }
 0x10a   : > { %740 = vmatmul.f32.gmra.mxu1 %v574_v39  ;;  %5713 = vst [vmem:[#allocation22_spill] sm:$0xff] %v3482_v1  ;;  %v577_v59 = vadd.f32 %v3482_v1, %v3446_v8  ;;  %v3500_v39 = vsub.f32 %v547_v16, %v432_v38 }
 0x10b   : > { %v485_v41 = vpop.f32.mrf.mxu0 }
 0x10c   : > { %v543_v43 = vsub.f32 %v485_v41, %v355_v51  ;;  %v438_v51 = vpop.f32.mrf.mxu1  ;;  %5717 = vst [vmem:[#allocation26_spill] sm:$0xff] %v3500_v39  ;;  %v548_v41 = vsub.f32 %v500_v2, %v370_v35  ;;  %v579_v7 = vadd.f32 %v3500_v39, %v3464_v40 }
 0x10e   : > { %v3466_v45 = vsub.f32 %v543_v43, %v420_v60  ;;  %625 = vmatmul.f32.gmra.mxu3 %v3464_v40  ;;  %v3480_v60 = vsub.f32 %v373_v44, %v438_v51  ;;  %v382_v36 = vpop.f32.mrf.mxu3  ;;  %v506_v43 = vpop.f32.mrf.mxu2  ;;  %v3508_v47 = vsub.f32 %v548_v41, %v435_v46 }
 0x110   : > { %5709 = vst [vmem:[#allocation18_spill] sm:$0xff] %v3466_v45  ;;  %678 = vmatmul.f32.gmra.mxu0 %v3466_v45  ;;  %v575_v48 = vadd.f32 %v3466_v45, %v3431_v61  ;;  %v580_v35 = vadd.f32 %v3508_v47, %v3472_v49 }
 0x111   : > { %5712 = vst [vmem:[#allocation21_spill] sm:$0xff] %v3480_v60 }
 0x112   : > { %743 = vmatmul.f32.gmra.mxu1 %v575_v48  ;;  %5719 = vst [vmem:[#allocation28_spill] sm:$0xff] %v3508_v47 }
 0x114   : > { %v441_v62 = vpop.f32.mrf.mxu1 }
 0x115   : > { %v3489_v9 = vsub.f32 %v376_v54, %v441_v62 }
 0x116   : > { %628 = vmatmul.f32.gmra.mxu3 %v3472_v49  ;;  %v385_v48 = vpop.f32.mrf.mxu3  ;;  %v509_v2 = vpop.f32.mrf.mxu2 }
 0x117   : > { %5714 = vst [vmem:[#allocation23_spill] sm:$0xff] %v3489_v9  ;;  %v551_v41 = vsub.f32 %v509_v2, %v379_v6 }
 0x118   : > { %681 = vmatmul.f32.gmra.mxu0 %v3474_v50 }
 0x11a   : > { %746 = vmatmul.f32.gmra.mxu1 %v576_v55  ;;  %v3516_v55 = vsub.f32 %v549_v52, %v438_v51 }
 0x11c   : > { %v444_v4 = vpop.f32.mrf.mxu1  ;;  %5721 = vst [vmem:[#allocation30_spill] sm:$0xff] %v3516_v55  ;;  %v581_v44 = vadd.f32 %v3516_v55, %v3480_v60 }
 0x11d   : > { %v3498_v33 = vsub.f32 %v379_v6, %v444_v4  ;;  %v3532_v52 = vsub.f32 %v551_v41, %v444_v4 }
 0x11e   : > { %631 = vmatmul.f32.gmra.mxu3 %v3480_v60  ;;  %v388_v5 = vpop.f32.mrf.mxu3  ;;  %v512_v51 = vpop.f32.mrf.mxu2 }
 0x11f   : > { %5716 = vst [vmem:[#allocation25_spill] sm:$0xff] %v3498_v33 }
 0x120   : > { %684 = vmatmul.f32.gmra.mxu0 %v3482_v1  ;;  %5725 = vst [vmem:[#allocation34_spill] sm:$0xff] %v3532_v52 }
 0x122   : > { %749 = vmatmul.f32.gmra.mxu1 %v577_v59  ;;  %v550_v59 = vsub.f32 %v506_v43, %v376_v54 }
 0x124   : > { %v447_v14 = vpop.f32.mrf.mxu1 }
 0x125   : > { %v3506_v42 = vsub.f32 %v382_v36, %v447_v14 }
 0x126   : > { %634 = vmatmul.f32.gmra.mxu3 %v3489_v9  ;;  %v515_v6 = vpop.f32.mrf.mxu2 }
 0x127   : > { %5718 = vst [vmem:[#allocation27_spill] sm:$0xff] %v3506_v42 }
 0x128   : > { %687 = vmatmul.f32.gmra.mxu0 %v3491_v10 }
 0x12a   : > { %752 = vmatmul.f32.gmra.mxu1 %v578_v63  ;;  %v3524_v63 = vsub.f32 %v550_v59, %v441_v62  ;;  %v552_v62 = vsub.f32 %v512_v51, %v382_v36  ;;  %v553_v59 = vsub.f32 %v515_v6, %v385_v48 }
 0x12c   : > { %v450_v38 = vpop.f32.mrf.mxu1  ;;  %5723 = vst [vmem:[#allocation32_spill] sm:$0xff] %v3524_v63  ;;  %v582_v54 = vadd.f32 %v3524_v63, %v3489_v9  ;;  %v3538_v2 = vsub.f32 %v552_v62, %v447_v14 }
 0x12d   : > { %v3514_v57 = vsub.f32 %v385_v48, %v450_v38  ;;  %v3545_v36 = vsub.f32 %v553_v59, %v450_v38 }
 0x12e   : > { %637 = vmatmul.f32.gmra.mxu3 %v3498_v33  ;;  %5726 = vst [vmem:[#allocation35_spill] sm:$0xff] %v3538_v2  ;;  %v518_v41 = vpop.f32.mrf.mxu2 }
 0x12f   : > { %5720 = vst [vmem:[#allocation29_spill] sm:$0xff] %v3514_v57  ;;  %v554_v51 = vsub.f32 %v518_v41, %v388_v5 }
 0x130   : > { %690 = vmatmul.f32.gmra.mxu0 %v3500_v39  ;;  %5728 = vst [vmem:[#allocation37_spill] sm:$0xff] %v3545_v36 }
 0x132   : > { %755 = vmatmul.f32.gmra.mxu1 %v579_v7  ;;  %v391_v7 = vpop.f32.mrf.mxu3 }
 0x134   : > { %v453_v46 = vpop.f32.mrf.mxu1 }
 0x135   : > { %v3522_v16 = vsub.f32 %v388_v5, %v453_v46  ;;  %v3552_v48 = vsub.f32 %v554_v51, %v453_v46 }
 0x136   : > { %640 = vmatmul.f32.gmra.mxu3 %v3506_v42  ;;  %v521_v62 = vpop.f32.mrf.mxu2 }
 0x137   : > { %5722 = vst [vmem:[#allocation31_spill] sm:$0xff] %v3522_v16  ;;  %v586_v6 = vadd.f32 %v3552_v48, %v3522_v16 }
 0x138   : > { %693 = vmatmul.f32.gmra.mxu0 %v3508_v47  ;;  %5730 = vst [vmem:[#allocation39_spill] sm:$0xff] %v3552_v48 }
 0x13a   : > { %758 = vmatmul.f32.gmra.mxu1 %v580_v35  ;;  %v583_v35 = vadd.f32 %v3532_v52, %v3498_v33 }
 0x13c   : > { %v456_v29 = vpop.f32.mrf.mxu1 }
 0x13d   : > { %v3530_v43 = vsub.f32 %v391_v7, %v456_v29 }
 0x13e   : > { %643 = vmatmul.f32.gmra.mxu3 %v3514_v57 }
 0x13f   : > { %5724 = vst [vmem:[#allocation33_spill] sm:$0xff] %v3530_v43 }
 0x140   : > { %696 = vmatmul.f32.gmra.mxu0 %v3516_v55 }
 0x142   : > { %761 = vmatmul.f32.gmra.mxu1 %v581_v44  ;;  %v584_v44 = vadd.f32 %v3538_v2, %v3506_v42 }
 0x146   : > { %646 = vmatmul.f32.gmra.mxu3 %v3522_v16 }
 0x148   : > { %699 = vmatmul.f32.gmra.mxu0 %v3524_v63 }
 0x14a   : > { %764 = vmatmul.f32.gmra.mxu1 %v582_v54  ;;  %v585_v54 = vadd.f32 %v3545_v36, %v3514_v57 }
 0x14e   : > { %649 = vmatmul.f32.gmra.mxu3 %v3530_v43 }
 0x150   : > { %702 = vmatmul.f32.gmra.mxu0 %v3532_v52 }
 0x152   : > { %767 = vmatmul.f32.gmra.mxu1 %v583_v35  ;;  %v555_v35 = vsub.f32 %v521_v62, %v391_v7 }
 0x154   : > { %v3559_v5 = vsub.f32 %v555_v35, %v456_v29 }
 0x156   : > { %5732 = vst [vmem:[#allocation41_spill] sm:$0xff] %v3559_v5  ;;  %v587_v59 = vadd.f32 %v3559_v5, %v3530_v43 }
 0x158   : > { %705 = vmatmul.f32.gmra.mxu0 %v3538_v2 }
 0x159   : > { %v3543_v4 = vpop.f32.mrf.mxu3 }
 0x15a   : > { %5727 = vst [vmem:[#allocation36_spill] sm:$0xff] %v3543_v4  ;;  %770 = vmatmul.f32.gmra.mxu1 %v584_v44 }
 0x160   : > { %708 = vmatmul.f32.gmra.mxu0 %v3545_v36 }
 0x161   : > { %v3550_v14 = vpop.f32.mrf.mxu3 }
 0x162   : > { %5729 = vst [vmem:[#allocation38_spill] sm:$0xff] %v3550_v14  ;;  %773 = vmatmul.f32.gmra.mxu1 %v585_v54 }
 0x168   : > { %711 = vmatmul.f32.gmra.mxu0 %v3552_v48 }
 0x169   : > { %v3557_v38 = vpop.f32.mrf.mxu3 }
 0x16a   : > { %776 = vmatmul.f32.gmra.mxu1 %v586_v6  ;;  %5731 = vst [vmem:[#allocation40_spill] sm:$0xff] %v3557_v38 }
 0x170   : > { %714 = vmatmul.f32.gmra.mxu0 %v3559_v5 }
 0x171   : > { %v3564_v46 = vpop.f32.mrf.mxu3 }
 0x172   : > { %779 = vmatmul.f32.gmra.mxu1 %v587_v59  ;;  %5733 = vst [vmem:[#allocation42_spill] sm:$0xff] %v3564_v46 }
 0x175   : > { %v3566_v44 = vpop.f32.mrf.mxu0 }
 0x176   : > { %5734 = vst [vmem:[#allocation43_spill] sm:$0xff] %v3566_v44 }
 0x177   : > { %v3568_v7 = vpop.f32.mrf.mxu1 }
 0x178   : > { %5735 = vst [vmem:[#allocation44_spill] sm:$0xff] %v3568_v7 }
 0x179   : > { %v3572_v51 = vpop.f32.mrf.mxu3 }
 0x17a   : > { %5737 = vst [vmem:[#allocation46_spill] sm:$0xff] %v3572_v51 }
 0x17d   : > { %v3570_v41 = vpop.f32.mrf.mxu0 }
 0x17e   : > { %5736 = vst [vmem:[#allocation45_spill] sm:$0xff] %v3570_v41 }
 0x17f   : > { %v3574_v54 = vpop.f32.mrf.mxu1 }
 0x180   : > { %5738 = vst [vmem:[#allocation47_spill] sm:$0xff] %v3574_v54 }
 0x181   : > { %v3580_v35 = vpop.f32.mrf.mxu3 }
 0x182   : > { %5741 = vst [vmem:[#allocation50_spill] sm:$0xff] %v3580_v35 }
 0x185   : > { %v3576_v29 = vpop.f32.mrf.mxu0 }
 0x186   : > { %5739 = vst [vmem:[#allocation48_spill] sm:$0xff] %v3576_v29 }
 0x187   : > { %v3578_v62 = vpop.f32.mrf.mxu1 }
 0x188   : > { %5740 = vst [vmem:[#allocation49_spill] sm:$0xff] %v3578_v62 }
 0x189   : > { %v3586_v3 = vpop.f32.mrf.mxu3 }
 0x18a   : > { %5744 = vst [vmem:[#allocation53_spill] sm:$0xff] %v3586_v3  ;;  %v5434_v3 = vmov 0.0  }
 0x18d   : > { %v3582_v6 = vpop.f32.mrf.mxu0 }
 0x18e   : > { %5742 = vst [vmem:[#allocation51_spill] sm:$0xff] %v3582_v6 }
 0x18f   : > { %v3584_v59 = vpop.f32.mrf.mxu1 }
 0x190   : > { %5743 = vst [vmem:[#allocation52_spill] sm:$0xff] %v3584_v59  ;;  %v246_v59 = vlaneseq }
 0x191   : > { %v3592_v44 = vpop.f32.mrf.mxu3 }
 0x192   : > { %5747 = vst [vmem:[#allocation56_spill] sm:$0xff] %v3592_v44 }
 0x195   : > { %v3588_v12 = vpop.f32.mrf.mxu0 }
 0x196   : > { %5745 = vst [vmem:[#allocation54_spill] sm:$0xff] %v3588_v12 }
 0x197   : > { %v3590_v37 = vpop.f32.mrf.mxu1 }
 0x198   : > { %5746 = vst [vmem:[#allocation55_spill] sm:$0xff] %v3590_v37  ;;  %v3618_v37 = vand.u32 127, %v246_v59 }
 0x199   : > { %v3600_v29 = vpop.f32.mrf.mxu3 }
 0x19a   : > { %5751 = vst [vmem:[#allocation60_spill] sm:$0xff] %v3600_v29 }
 0x19d   : > { %v3594_v41 = vpop.f32.mrf.mxu0 }
 0x19e   : > { %5748 = vst [vmem:[#allocation57_spill] sm:$0xff] %v3594_v41  ;;  %v3616_v41 = vshrl.u32 %v246_v59, 7 }
 0x19f   : > { %v3596_v7 = vpop.f32.mrf.mxu1 }
 0x1a0   : > { %5749 = vst [vmem:[#allocation58_spill] sm:$0xff] %v3596_v7  ;;  %v248_v35 = vadd.s32 8, %v3616_v41  ;;  %vm265_vm0 = vcmp.eq.s32.totalorder %v3616_v41, %v3618_v37 }
 0x1a1   : > { %v3608_v62 = vpop.f32.mrf.mxu3  ;;  %v3633_v59 = vsel %vm265_vm0, 1.0, %v5434_v3 }
 0x1a2   : > { %5755 = vst [vmem:[#allocation64_spill] sm:$0xff] %v3608_v62  ;;  %vm266_vm2 = vcmp.eq.s32.totalorder %v248_v35, %v3618_v37  ;;  %v253_v35 = vadd.s32 48, %v3616_v41 }
 0x1a3   : > { %5762 = vst [vmem:[#allocation71_spill] sm:$0xff] %v3633_v59 }
 0x1a4   : > { %vm271_vm6 = vcmp.eq.s32.totalorder %v253_v35, %v3618_v37  ;;  %v3690_v35 = vmul.f32 2.755732e-07, %v3233_v32 }
 0x1a5   : > { %v3598_v4 = vpop.f32.mrf.mxu0 }
 0x1a6   : > { %5750 = vst [vmem:[#allocation59_spill] sm:$0xff] %v3598_v4  ;;  %v249_v4 = vadd.s32 16, %v3616_v41 }
 0x1a7   : > { %v3602_v54 = vpop.f32.mrf.mxu1  ;;  %5775 = vst [vmem:[#allocation83_spill] sm:$0xff] %v3690_v35 }
 0x1a8   : > { %5752 = vst [vmem:[#allocation61_spill] sm:$0xff] %v3602_v54  ;;  %vm267_vm1 = vcmp.eq.s32.totalorder %v249_v4, %v3618_v37  ;;  %v863_v4 = vmul.f32 2.755732e-07, %v3203_v27 }
 0x1a9   : > { %v3614_v46 = vpop.f32.mrf.mxu3  ;;  %v3640_v44 = vsel %vm267_vm1, 1.0, %v5434_v3 }
 0x1aa   : > { %5758 = vst [vmem:[#allocation67_spill] sm:$0xff] %v3614_v46  ;;  %v849_v62 = vmul.f32 2.7557319e-06, %v3640_v44  ;;  %v866_v46 = vmul.f32 2.755732e-07, %v3176_v21 }
 0x1ab   : > { %5764 = vst [vmem:[#allocation73_spill] sm:$0xff] %v3640_v44  ;;  %v864_v44 = vmul.f32 2.755732e-07, %v3194_v25  ;;  %v897_v21 = vmul.f32 2.5052108e-08, %v3428_v58 }
 0x1ad   : > { %v3604_v14 = vpop.f32.mrf.mxu0 }
 0x1ae   : > { %5753 = vst [vmem:[#allocation62_spill] sm:$0xff] %v3604_v14  ;;  %v250_v14 = vadd.s32 24, %v3616_v41 }
 0x1af   : > { %v3606_v6 = vpop.f32.mrf.mxu1 }
 0x1b0   : > { %5754 = vst [vmem:[#allocation63_spill] sm:$0xff] %v3606_v6  ;;  %vm268_vm3 = vcmp.eq.s32.totalorder %v250_v14, %v3618_v37 }
 0x1b1   : > { %v3630_v54 = vpop.f32.mrf.mxu3  ;;  %v3653_v14 = vsel %vm268_vm3, 1.0, %v5434_v3 }
 0x1b2   : > { %5761 = vst [vmem:[#allocation70_spill] sm:$0xff] %v3630_v54 }
 0x1b3   : > { %5767 = vst [vmem:[#allocation76_spill] sm:$0xff] %v3653_v14 }
 0x1b5   : > { %v3610_v38 = vpop.f32.mrf.mxu0 }
 0x1b6   : > { %5756 = vst [vmem:[#allocation65_spill] sm:$0xff] %v3610_v38  ;;  %v251_v38 = vadd.s32 32, %v3616_v41 }
 0x1b7   : > { %v3612_v12 = vpop.f32.mrf.mxu1 }
 0x1b8   : > { %5757 = vst [vmem:[#allocation66_spill] sm:$0xff] %v3612_v12  ;;  %v847_v12 = vmul.f32 2.7557319e-06, %v3633_v59  ;;  %v254_v59 = vadd.s32 56, %v3616_v41  ;;  %vm269_vm4 = vcmp.eq.s32.totalorder %v251_v38, %v3618_v37  ;;  %v5770_v38 = vmov 0.0  }
 0x1ba   : > { %v3659_v27 = vadd.f32 %v863_v4, %v847_v12  ;;  %v3672_v12 = vpop.f32.mrf.mxu3  ;;  %vm272_vm7 = vcmp.eq.s32.totalorder %v254_v59, %v3618_v37  ;;  %v3680_v4 = vmul.f32 2.755732e-07, %v3244_v34  ;;  %v898_v34 = vmul.f32 2.5052108e-08, %v3431_v61 }
 0x1bb   : > { %v869_v61 = vmul.f32 2.755732e-07, %v3149_v15 }
 0x1bc   : > { %5768 = vst [vmem:[#allocation77_spill] sm:$0xff] %v3659_v27  ;;  %v934_v27 = vmul.f32 2.755732e-07, %v3172_v20  ;;  %v260_v20 = vadd.s32 104, %v3616_v41 }
 0x1bd   : > { %v3620_v51 = vpop.f32.mrf.mxu0  ;;  %5772 = vst [vmem:[#allocation80_spill] sm:$0xff] %v3680_v4  ;;  %v867_v4 = vmul.f32 2.755732e-07, %v3167_v19 }
 0x1be   : > { %5759 = vst [vmem:[#allocation68_spill] sm:$0xff] %v3620_v51  ;;  %v252_v51 = vadd.s32 40, %v3616_v41  ;;  %vm278_vm13 = vcmp.eq.s32.totalorder %v260_v20, %v3618_v37 }
 0x1bf   : > { %v3623_v7 = vpop.f32.mrf.mxu1 }
 0x1c0   : > { %5760 = vst [vmem:[#allocation69_spill] sm:$0xff] %v3623_v7  ;;  %v3649_v7 = vsel %vm266_vm2, 1.0, %v5434_v3  ;;  %vm270_vm5 = vcmp.eq.s32.totalorder %v252_v51, %v3618_v37  ;;  %v3676_v51 = vsel %vm269_vm4, 1.0, %v5770_v38 }
 0x1c1   : > { %5766 = vst [vmem:[#allocation75_spill] sm:$0xff] %v3649_v7  ;;  %v848_v48 = vmul.f32 2.7557319e-06, %v3649_v7  ;;  %v3684_v25 = vsel %vm270_vm5, 1.0, %v5770_v38  ;;  %v3699_v7 = vmul.f32 2.755732e-07, %v3222_v30 }
 0x1c2   : > { %5771 = vst [vmem:[#allocation79_spill] sm:$0xff] %v3676_v51  ;;  %v852_v35 = vmul.f32 2.7557319e-06, %v3684_v25 }
 0x1c3   : > { %5773 = vst [vmem:[#allocation81_spill] sm:$0xff] %v3684_v25  ;;  %v3706_v32 = vadd.f32 %v864_v44, %v848_v48  ;;  %v870_v48 = vmul.f32 2.755732e-07, %v3140_v13  ;;  %v947_v44 = vmul.f32 2.5052108e-08, %v3474_v50 }
 0x1c4   : > { %5777 = vst [vmem:[#allocation85_spill] sm:$0xff] %v3699_v7  ;;  %v948_v13 = vmul.f32 2.5052108e-08, %v3482_v1  ;;  %v933_v50 = vmul.f32 2.755732e-07, %v3181_v22 }
 0x1c5   : > { %v3636_v6 = vpop.f32.mrf.mxu0  ;;  %v871_v22 = vmul.f32 2.755732e-07, %v3131_v11 }
 0x1c6   : > { %5763 = vst [vmem:[#allocation72_spill] sm:$0xff] %v3636_v6  ;;  %v865_v6 = vmul.f32 2.755732e-07, %v3185_v23  ;;  %v3668_v23 = vmul.f32 2.5052108e-08, %v3422_v53  ;;  %v3695_v53 = vsel %vm271_vm6, 1.0, %v5770_v38 }
 0x1c7   : > { %v3645_v29 = vpop.f32.mrf.mxu1  ;;  %5776 = vst [vmem:[#allocation84_spill] sm:$0xff] %v3695_v53  ;;  %v853_v30 = vmul.f32 2.7557319e-06, %v3695_v53 }
 0x1c8   : > { %5765 = vst [vmem:[#allocation74_spill] sm:$0xff] %v3645_v29  ;;  %v850_v29 = vmul.f32 2.7557319e-06, %v3653_v14  ;;  %v881_v3 = vadd.f32 %v865_v6, %v849_v62  ;;  %v255_v62 = vadd.s32 64, %v3616_v41  ;;  %v3687_v6 = vmul.f32 2.5052108e-08, %v3425_v56 }
 0x1c9   : > { %5769 = vst [vmem:[#allocation78_spill] sm:$0xff] %v3668_v23  ;;  %v3702_v14 = vsel %vm272_vm7, 1.0, %v5770_v38  ;;  %v851_v56 = vmul.f32 2.7557319e-06, %v3676_v51  ;;  %v868_v23 = vmul.f32 2.755732e-07, %v3158_v17 }
 0x1ca   : > { %5774 = vst [vmem:[#allocation82_spill] sm:$0xff] %v3687_v6  ;;  %v882_v58 = vadd.f32 %v866_v46, %v850_v29  ;;  %v899_v46 = vmul.f32 2.5052108e-08, %v3436_v0  ;;  %v3711_v29 = vadd.f32 %v897_v21, %v881_v3  ;;  %vm273_vm8 = vcmp.eq.s32.totalorder %v255_v62, %v3618_v37  ;;  %v3864_v6 = vld [vmem:[%s3065_s24 + $0x78] sm:$0xff] }
 0x1cb   : > { %5778 = vst [vmem:[#allocation86_spill] sm:$0xff] %v3702_v14  ;;  %v931_v51 = vmul.f32 2.755732e-07, %v3199_v26  ;;  %v854_v19 = vmul.f32 2.7557319e-06, %v3702_v14  ;;  %v256_v17 = vadd.s32 72, %v3616_v41  ;;  %v883_v62 = vadd.f32 %v867_v4, %v851_v56 }
 0x1cc   : > { %v3720_v25 = vadd.f32 %v898_v34, %v882_v58  ;;  %v900_v3 = vmul.f32 2.5052108e-08, %v3446_v8  ;;  %v932_v21 = vmul.f32 2.755732e-07, %v3190_v24  ;;  %v3728_v15 = vsel %vm273_vm8, 1.0, %v5770_v38  ;;  %v3737_v24 = vpop.f32.mrf.mxu3  ;;  %5795 = vst [vmem:[#allocation103_spill] sm:$0xff] %v3864_v6 }
 0x1cd   : > { %v3670_v54 = vpop.f32.mrf.mxu0  ;;  %5779 = vst [vmem:[#allocation87_spill] sm:$0xff] %v3728_v15  ;;  %v901_v26 = vmul.f32 2.5052108e-08, %v3455_v31  ;;  %v884_v14 = vadd.f32 %v868_v23, %v852_v35  ;;  %v902_v58 = vmul.f32 2.5052108e-08, %v3464_v40  ;;  %v885_v34 = vadd.f32 %v869_v61, %v853_v30 }
 0x1ce   : > { %v949_v8 = vmul.f32 2.5052108e-08, %v3491_v10  ;;  %v257_v56 = vadd.s32 80, %v3616_v41  ;;  %v886_v4 = vadd.f32 %v870_v48, %v854_v19  ;;  %v950_v23 = vmul.f32 2.5052108e-08, %v3500_v39 }
 0x1cf   : > { %v3692_v59 = vpop.f32.mrf.mxu1  ;;  %v258_v35 = vadd.s32 88, %v3616_v41  ;;  %vm274_vm9 = vcmp.eq.s32.totalorder %v256_v17, %v3618_v37  ;;  %v855_v61 = vmul.f32 2.7557319e-06, %v3728_v15  ;;  %v259_v30 = vadd.s32 96, %v3616_v41 }
 0x1d0   : > { %v3747_v1 = vadd.f32 %v899_v46, %v883_v62  ;;  %v3749_v10 = vadd.f32 %v947_v44, %v931_v51  ;;  %v3752_v19 = vmul.f32 2.755732e-07, %v3208_v28  ;;  %v3755_v48 = vadd.f32 %v901_v26, %v885_v34 }
 0x1d1   : > { %v3757_v39 = vadd.f32 %v900_v3, %v884_v14  ;;  %v3759_v17 = vadd.f32 %v948_v13, %v932_v21  ;;  %vm275_vm10 = vcmp.eq.s32.totalorder %v257_v56, %v3618_v37  ;;  %v3763_v11 = vsel %vm274_vm9, 1.0, %v5770_v38 }
 0x1d2   : > { %5780 = vst [vmem:[#allocation88_spill] sm:$0xff] %v3763_v11  ;;  %v3765_v46 = vadd.f32 %v902_v58, %v886_v4  ;;  %v3767_v51 = vadd.f32 %v949_v8, %v933_v50  ;;  %vm276_vm11 = vcmp.eq.s32.totalorder %v258_v35, %v3618_v37  ;;  %v887_v28 = vadd.f32 %v871_v22, %v855_v61  ;;  %v3802_v35 = vld [vmem:[%s3091_s7 + $0x48] sm:$0xff] }
 0x1d3   : > { %v903_v44 = vmul.f32 2.5052108e-08, %v3472_v49  ;;  %v3771_v62 = vadd.f32 %v950_v23, %v934_v27  ;;  %v262_v3 = vadd.s32 120, %v3616_v41  ;;  %vm277_vm12 = vcmp.eq.s32.totalorder %v259_v30, %v3618_v37  ;;  %5785 = vst [vmem:[#allocation93_spill] sm:$0xff] %v3802_v35  ;;  %v3851_v49 = vld [vmem:[%s3091_s7 + $0x58] sm:$0xff] }
 0x1d4   : > { %v935_v21 = vmul.f32 2.755732e-07, %v3163_v18  ;;  %v3779_v8 = vmul.f32 2.5052108e-08, %v3466_v45  ;;  %v3783_v50 = vsel %vm275_vm10, 1.0, %v5770_v38  ;;  %v261_v58 = vadd.s32 112, %v3616_v41  ;;  %v3808_v30 = vpop.f32.mrf.mxu3 }
 0x1d5   : > { %v3725_v53 = vpop.f32.mrf.mxu0  ;;  %5781 = vst [vmem:[#allocation89_spill] sm:$0xff] %v3783_v50  ;;  %v856_v27 = vmul.f32 2.7557319e-06, %v3763_v11  ;;  %v951_v26 = vmul.f32 2.5052108e-08, %v3508_v47  ;;  %v3791_v34 = vsel %vm276_vm11, 1.0, %v5770_v38  ;;  %v3806_v22 = vadd.f32 %v903_v44, %v887_v28 }
 0x1d6   : > { %5782 = vst [vmem:[#allocation90_spill] sm:$0xff] %v3791_v34  ;;  %v3794_v18 = vld [vmem:[%s3065_s24 + $0x48] sm:$0xff]  ;;  %v904_v4 = vmul.f32 2.5052108e-08, %v3480_v60  ;;  %v3799_v23 = vsel %vm277_vm12, 1.0, %v5770_v38  ;;  %vm280_vm14 = vcmp.eq.s32.totalorder %v262_v3, %v3618_v37  ;;  %v3814_v45 = vsel %vm278_vm13, 1.0, %v5770_v38 }
 0x1d7   : > { %v3735_v0 = vpop.f32.mrf.mxu1  ;;  %5783 = vst [vmem:[#allocation91_spill] sm:$0xff] %v3794_v18  ;;  %v872_v56 = vmul.f32 2.755732e-07, %v3794_v18  ;;  %v936_v61 = vmul.f32 2.755732e-07, %v3802_v35  ;;  %v3818_v60 = vld [vmem:[%s3065_s24 + $0x50] sm:$0xff]  ;;  %v3827_v18 = vadd.f32 %v951_v26, %v935_v21  ;;  %vm279_vm15 = vcmp.eq.s32.totalorder %v261_v58, %v3618_v37 }
 0x1d8   : > { %5784 = vst [vmem:[#allocation92_spill] sm:$0xff] %v3799_v23  ;;  %v952_v41 = vmul.f32 2.5052108e-08, %v3516_v55  ;;  %v857_v40 = vmul.f32 2.7557319e-06, %v3783_v50  ;;  %v3823_v44 = vld [vmem:[%s3065_s24 + $0x58] sm:$0xff] }
 0x1d9   : > { %5786 = vst [vmem:[#allocation94_spill] sm:$0xff] %v3814_v45  ;;  %v873_v35 = vmul.f32 2.755732e-07, %v3818_v60  ;;  %v858_v28 = vmul.f32 2.7557319e-06, %v3791_v34  ;;  %v3832_v50 = vld [vmem:[%s3065_s24 + $0x60] sm:$0xff] }
 0x1da   : > { %5787 = vst [vmem:[#allocation95_spill] sm:$0xff] %v3818_v60  ;;  %v874_v55 = vmul.f32 2.755732e-07, %v3823_v44  ;;  %v905_v31 = vmul.f32 2.5052108e-08, %v3489_v9  ;;  %v3836_v60 = vld [vmem:[%s3091_s7 + $0x50] sm:$0xff] }
 0x1db   : > { %5788 = vst [vmem:[#allocation96_spill] sm:$0xff] %v3823_v44  ;;  %v859_v20 = vmul.f32 2.7557319e-06, %v3799_v23  ;;  %v875_v11 = vmul.f32 2.755732e-07, %v3832_v50  ;;  %v3842_v44 = vsel %vm280_vm14, 1.0, %v5770_v38  ;;  %v888_v23 = vadd.f32 %v872_v56, %v856_v27 }
 0x1dc   : > { %5789 = vst [vmem:[#allocation97_spill] sm:$0xff] %v3832_v50  ;;  %v937_v34 = vmul.f32 2.755732e-07, %v3836_v60  ;;  %v860_v21 = vmul.f32 2.7557319e-06, %v3814_v45  ;;  %v3846_v26 = vld [vmem:[%s3065_s24 + $0x68] sm:$0xff]  ;;  %v889_v3 = vadd.f32 %v873_v35, %v857_v40  ;;  %v890_v27 = vadd.f32 %v874_v55, %v858_v28 }
 0x1dd   : > { %v3773_v14 = vpop.f32.mrf.mxu0  ;;  %5790 = vst [vmem:[#allocation98_spill] sm:$0xff] %v3836_v60  ;;  %v876_v9 = vmul.f32 2.755732e-07, %v3846_v26  ;;  %v906_v50 = vmul.f32 2.5052108e-08, %v3498_v33  ;;  %v3858_v45 = vsel %vm279_vm15, 1.0, %v5770_v38  ;;  %v891_v35 = vadd.f32 %v875_v11, %v859_v20 }
 0x1de   : > { %5791 = vst [vmem:[#allocation99_spill] sm:$0xff] %v3842_v44  ;;  %v938_v60 = vmul.f32 2.755732e-07, %v3851_v49  ;;  %v953_v15 = vmul.f32 2.5052108e-08, %v3524_v63  ;;  %v3868_v63 = vld [vmem:[%s3091_s7 + $0x60] sm:$0xff]  ;;  %v3883_v20 = vadd.f32 %v904_v4, %v888_v23 }
 0x1df   : > { %v3787_v13 = vpop.f32.mrf.mxu1  ;;  %5792 = vst [vmem:[#allocation100_spill] sm:$0xff] %v3846_v26  ;;  %v907_v26 = vmul.f32 2.5052108e-08, %v3506_v42  ;;  %v954_v56 = vmul.f32 2.5052108e-08, %v3532_v52  ;;  %v892_v38 = vadd.f32 %v876_v9, %v860_v21  ;;  %v3873_v42 = vld [vmem:[%s3091_s7 + $0x68] sm:$0xff]  ;;  %v3887_v9 = vadd.f32 %v905_v31, %v889_v3 }
 0x1e0   : > { %5793 = vst [vmem:[#allocation101_spill] sm:$0xff] %v3851_v49  ;;  %v862_v7 = vmul.f32 2.7557319e-06, %v3842_v44  ;;  %v878_v40 = vmul.f32 2.755732e-07, %v3864_v6  ;;  %v3879_v49 = vld [vmem:[%s3065_s24 + $0x70] sm:$0xff]  ;;  %v3889_v21 = vadd.f32 %v953_v15, %v937_v34  ;;  %v812_v15 = vsub.f32 %v3787_v13, %v3737_v24 }
 0x1e1   : > { %5794 = vst [vmem:[#allocation102_spill] sm:$0xff] %v3858_v45  ;;  %v939_v37 = vmul.f32 2.755732e-07, %v3868_v63  ;;  %v908_v58 = vmul.f32 2.5052108e-08, %v3514_v57  ;;  %v3891_v57 = vadd.f32 %v952_v41, %v936_v61  ;;  %v923_v31 = vadd.f32 %v907_v26, %v891_v35  ;;  %v3916_v3 = vld [vmem:[%s3091_s7 + $0x70] sm:$0xff] }
 0x1e2   : > { %5796 = vst [vmem:[#allocation104_spill] sm:$0xff] %v3868_v63  ;;  %v940_v55 = vmul.f32 2.755732e-07, %v3873_v42  ;;  %v955_v28 = vmul.f32 2.5052108e-08, %v3538_v2  ;;  %v3885_v63 = vadd.f32 %v906_v50, %v890_v27  ;;  %v650_v2 = vpop.f32.mrf.mxu3  ;;  %v894_v44 = vadd.f32 %v878_v40, %v862_v7 }
 0x1e3   : > { %5797 = vst [vmem:[#allocation105_spill] sm:$0xff] %v3873_v42  ;;  %v861_v52 = vmul.f32 2.7557319e-06, %v3858_v45  ;;  %v877_v6 = vmul.f32 2.755732e-07, %v3879_v49  ;;  %v3895_v45 = vadd.f32 %v954_v56, %v938_v60  ;;  %v924_v50 = vadd.f32 %v908_v58, %v892_v38  ;;  %v5806_v58 = vld [vmem:[#allocation70_spill] sm:$0xff] }
 0x1e4   : > { %5798 = vst [vmem:[#allocation106_spill] sm:$0xff] %v3879_v49  ;;  %v956_v11 = vmul.f32 2.5052108e-08, %v3545_v36  ;;  %v910_v49 = vmul.f32 2.5052108e-08, %v3530_v43  ;;  %v3900_v23 = vadd.f32 %v955_v28, %v939_v37  ;;  %v3907_v41 = vsub.f32 %v3737_v24, %v3773_v14 }
 0x1e5   : > { %v712_v47 = vpop.f32.mrf.mxu0  ;;  %v909_v61 = vmul.f32 2.5052108e-08, %v3522_v16  ;;  %5803 = vst [vmem:[#allocation111_spill] sm:$0xff] %v3916_v3  ;;  %v941_v27 = vmul.f32 2.755732e-07, %v3916_v3  ;;  %v3926_v40 = vsub.f32 %v3672_v12, %v3725_v53 }
 0x1e6   : > { %v3898_v4 = vsub.f32 %v3808_v30, %v712_v47  ;;  %v972_v7 = vadd.f32 %v956_v11, %v940_v55  ;;  %5800 = vst [vmem:[#allocation108_spill] sm:$0xff] %v3907_v41  ;;  %v926_v56 = vadd.f32 %v910_v49, %v894_v44  ;;  %v958_v24 = vmul.f32 2.5052108e-08, %v3559_v5  ;;  %v5811_v11 = vld [vmem:[#allocation67_spill] sm:$0xff]  ;;  %v5822_v5 = vld [vmem:[#allocation66_spill] sm:$0xff] }
 0x1e7   : > { %v777_v33 = vpop.f32.mrf.mxu1  ;;  %5805 = vst [vmem:[#allocation113_spill] sm:$0xff] %v3926_v40  ;;  %v810_v55 = vsub.f32 %v3692_v59, %v5806_v58  ;;  %v3938_v44 = vsub.f32 %v5806_v58, %v3670_v54  ;;  %v988_v28 = vmul.f32 2.0876756e-09, %v3907_v41 }
 0x1e8   : > { %v813_v42 = vsub.f32 %v777_v33, %v3808_v30  ;;  %5799 = vst [vmem:[#allocation107_spill] sm:$0xff] %v3898_v4  ;;  %v893_v33 = vadd.f32 %v877_v6, %v861_v52  ;;  %v3912_v30 = vld [vmem:[%s3091_s7 + $0x78] sm:$0xff]  ;;  %v811_v52 = vsub.f32 %v3735_v0, %v3672_v12  ;;  %v989_v38 = vmul.f32 2.0876756e-09, %v3898_v4 }
 0x1e9   : > { %5802 = vst [vmem:[#allocation110_spill] sm:$0xff] %v3912_v30  ;;  %v942_v26 = vmul.f32 2.755732e-07, %v3912_v30  ;;  %v3933_v0 = vsub.f32 %v812_v15, %v3773_v14  ;;  %v1004_v3 = vadd.f32 %v988_v28, %v924_v50  ;;  %v5826_v28 = vld [vmem:[#allocation56_spill] sm:$0xff] }
 0x1ea   : > { %v3921_v6 = vsub.f32 %v813_v42, %v712_v47  ;;  %v925_v42 = vadd.f32 %v909_v61, %v893_v33  ;;  %v5808_v47 = vld [vmem:[#allocation39_spill] sm:$0xff]  ;;  %5809 = vst [vmem:[#allocation114_spill] sm:$0xff] %v3938_v44  ;;  %v3946_v59 = vsub.f32 %v811_v52, %v3725_v53  ;;  %v5814_v33 = vld [vmem:[#allocation72_spill] sm:$0xff] }
 0x1eb   : > { %5807 = vst [vmem:[#allocation70_spill] sm:$0xff] %v3933_v0  ;;  %v957_v49 = vmul.f32 2.5052108e-08, %v5808_v47  ;;  %v974_v14 = vadd.f32 %v958_v24, %v942_v26  ;;  %v3951_v61 = vsub.f32 %v5811_v11, %v5814_v33  ;;  %v1020_v26 = vmul.f32 2.0876756e-09, %v3933_v0  ;;  %v5819_v52 = vld [vmem:[#allocation68_spill] sm:$0xff] }
 0x1ec   : > { %5804 = vst [vmem:[#allocation112_spill] sm:$0xff] %v3921_v6  ;;  %v1021_v15 = vmul.f32 2.0876756e-09, %v3921_v6 }
 0x1ed   : > { %v715_v34 = vpop.f32.mrf.mxu0  ;;  %5813 = vst [vmem:[#allocation67_spill] sm:$0xff] %v3946_v59  ;;  %v973_v53 = vadd.f32 %v957_v49, %v941_v27  ;;  %v1019_v27 = vmul.f32 2.0876756e-09, %v3946_v59  ;;  %v985_v50 = vmul.f32 2.0876756e-09, %v3951_v61 }
 0x1ee   : > { %v3909_v60 = vsub.f32 %v650_v2, %v715_v34 }
 0x1ef   : > { %v780_v13 = vpop.f32.mrf.mxu1 }
 0x1f0   : > { %5801 = vst [vmem:[#allocation109_spill] sm:$0xff] %v3909_v60  ;;  %v814_v35 = vsub.f32 %v780_v13, %v650_v2  ;;  %v990_v37 = vmul.f32 2.0876756e-09, %v3909_v60  ;;  %v5812_v13 = vld [vmem:[#allocation74_spill] sm:$0xff] }
 0x1f1   : > { %v809_v36 = vsub.f32 %v5812_v13, %v5811_v11  ;;  %5815 = vst [vmem:[#allocation74_spill] sm:$0xff] %v3951_v61  ;;  %v3958_v13 = vsub.f32 %v810_v55, %v3670_v54  ;;  %v1037_v54 = vadd.f32 %v1021_v15, %v973_v53  ;;  %v5824_v55 = vld [vmem:[#allocation65_spill] sm:$0xff] }
 0x1f2   : > { %v3940_v12 = vsub.f32 %v814_v35, %v715_v34  ;;  %v1006_v2 = vadd.f32 %v990_v37, %v926_v56  ;;  %v1005_v34 = vadd.f32 %v989_v38, %v925_v42  ;;  %v987_v56 = vmul.f32 2.0876756e-09, %v3926_v40  ;;  %v5816_v35 = vld [vmem:[#allocation64_spill] sm:$0xff]  ;;  %v5817_v37 = vld [vmem:[#allocation69_spill] sm:$0xff] }
 0x1f3   : > { %v808_v47 = vsub.f32 %v5817_v37, %v5816_v35  ;;  %5818 = vst [vmem:[#allocation72_spill] sm:$0xff] %v3958_v13  ;;  %v3963_v24 = vsub.f32 %v5816_v35, %v5819_v52  ;;  %v986_v38 = vmul.f32 2.0876756e-09, %v3938_v44  ;;  %v5821_v42 = vld [vmem:[#allocation60_spill] sm:$0xff]  ;;  %v3969_v37 = vsub.f32 %v809_v36, %v5814_v33  ;;  %v5829_v33 = vld [vmem:[#allocation53_spill] sm:$0xff] }
 0x1f4   : > { %5810 = vst [vmem:[#allocation115_spill] sm:$0xff] %v3940_v12  ;;  %v1022_v58 = vmul.f32 2.0876756e-09, %v3940_v12  ;;  %1055 = vmatpush.msrb.mxu2 %v1006_v2  ;;  %v807_v30 = vsub.f32 %v5822_v5, %v5821_v42  ;;  %v3974_v49 = vsub.f32 %v5821_v42, %v5824_v55  ;;  %v1036_v36 = vadd.f32 %v1020_v26, %v972_v7  ;;  %v5830_v53 = vld [vmem:[#allocation61_spill] sm:$0xff]  ;;  %v5831_v42 = vld [vmem:[#allocation62_spill] sm:$0xff] }
 0x1f5   : > { %5820 = vst [vmem:[#allocation64_spill] sm:$0xff] %v3963_v24  ;;  %v3980_v5 = vsub.f32 %v808_v47, %v5819_v52  ;;  %v1018_v15 = vmul.f32 2.0876756e-09, %v3958_v13  ;;  %v805_v16 = vsub.f32 %v5830_v53, %v5829_v33  ;;  %v1053_v47 = vadd.f32 %v1037_v54, %v1005_v34  ;;  %v5834_v52 = vld [vmem:[#allocation50_spill] sm:$0xff] }
 0x1f6   : > { %v1038_v11 = vadd.f32 %v1022_v58, %v974_v14  ;;  %1056 = vmatpush.msrb.mxu2 %v1005_v34  ;;  %5823 = vst [vmem:[#allocation69_spill] sm:$0xff] %v3969_v37  ;;  %v1003_v14 = vadd.f32 %v987_v56, %v923_v31  ;;  %v5827_v58 = vld [vmem:[#allocation63_spill] sm:$0xff]  ;;  %v1002_v31 = vadd.f32 %v986_v38, %v3885_v63  ;;  %v984_v56 = vmul.f32 2.0876756e-09, %v3963_v24 }
 0x1f7   : > { %5825 = vst [vmem:[#allocation68_spill] sm:$0xff] %v3974_v49  ;;  %v806_v43 = vsub.f32 %v5827_v58, %v5826_v28  ;;  %v1035_v7 = vadd.f32 %v1019_v27, %v3900_v23  ;;  %v1017_v26 = vmul.f32 2.0876756e-09, %v3969_v37  ;;  %v5835_v58 = vld [vmem:[#allocation58_spill] sm:$0xff]  ;;  %v1001_v63 = vadd.f32 %v985_v50, %v3887_v9 }
 0x1f8   : > { %v1054_v35 = vadd.f32 %v1038_v11, %v1006_v2  ;;  %1057 = vmatpush.msrb.mxu2 %v1004_v3  ;;  %1120 = vmatpush.msra.mxu3 %v1038_v11  ;;  %5828 = vst [vmem:[#allocation60_spill] sm:$0xff] %v3980_v5  ;;  %v3987_v2 = vsub.f32 %v5826_v28, %v5831_v42  ;;  %v5836_v28 = vld [vmem:[#allocation59_spill] sm:$0xff]  ;;  %v5839_v27 = vld [vmem:[#allocation46_spill] sm:$0xff] }
 0x1f9   : > { %v3992_v11 = vsub.f32 %v807_v30, %v5824_v55  ;;  %v804_v53 = vsub.f32 %v5835_v58, %v5834_v52  ;;  %v4000_v12 = vsub.f32 %v5829_v33, %v5836_v28  ;;  %v983_v30 = vmul.f32 2.0876756e-09, %v3974_v49  ;;  %v5840_v55 = vld [vmem:[#allocation55_spill] sm:$0xff]  ;;  %v5841_v33 = vld [vmem:[#allocation57_spill] sm:$0xff] }
 0x1fa   : > { %5832 = vst [vmem:[#allocation66_spill] sm:$0xff] %v3987_v2  ;;  %1058 = vmatpush.msrb.mxu2 %v1003_v14  ;;  %1121 = vmatpush.msra.mxu3 %v1037_v54  ;;  %v4005_v34 = vsub.f32 %v806_v43, %v5831_v42  ;;  %v1052_v23 = vadd.f32 %v1036_v36, %v1004_v3  ;;  %v1016_v54 = vmul.f32 2.0876756e-09, %v3980_v5  ;;  %v982_v43 = vmul.f32 2.0876756e-09, %v3987_v2  ;;  %v5845_v42 = vld [vmem:[#allocation52_spill] sm:$0xff] }
 0x1fb   : > { %5833 = vst [vmem:[#allocation65_spill] sm:$0xff] %v3992_v11  ;;  %1185 = vmatpush.msra.mxu0 %v1054_v35  ;;  %v1034_v38 = vadd.f32 %v1018_v15, %v3895_v45  ;;  %v803_v35 = vsub.f32 %v5840_v55, %v5839_v27  ;;  %v4013_v58 = vsub.f32 %v5834_v52, %v5841_v33  ;;  %v5844_v15 = vld [vmem:[#allocation42_spill] sm:$0xff] }
 0x1fc   : > { %5837 = vst [vmem:[#allocation56_spill] sm:$0xff] %v4000_v12  ;;  %1059 = vmatpush.msrb.mxu2 %v1002_v31  ;;  %1122 = vmatpush.msra.mxu3 %v1036_v36  ;;  %v1000_v9 = vadd.f32 %v984_v56, %v3883_v20  ;;  %v4018_v3 = vsub.f32 %v805_v16, %v5836_v28  ;;  %v1015_v36 = vmul.f32 2.0876756e-09, %v3992_v11  ;;  %v5846_v52 = vld [vmem:[#allocation54_spill] sm:$0xff]  ;;  %v981_v16 = vmul.f32 2.0876756e-09, %v4000_v12 }
 0x1fd   : > { %5838 = vst [vmem:[#allocation63_spill] sm:$0xff] %v4005_v34  ;;  %1186 = vmatpush.msra.mxu0 %v1053_v47  ;;  %v1051_v45 = vadd.f32 %v1035_v7, %v1003_v14  ;;  %v1033_v50 = vadd.f32 %v1017_v26, %v3889_v21  ;;  %v802_v47 = vsub.f32 %v5845_v42, %v5844_v15  ;;  %v5849_v26 = vld [vmem:[#allocation40_spill] sm:$0xff]  ;;  %v5850_v28 = vld [vmem:[#allocation49_spill] sm:$0xff] }
 0x1fe   : > { %5842 = vst [vmem:[#allocation53_spill] sm:$0xff] %v4013_v58  ;;  %1060 = vmatpush.msrb.mxu2 %v1001_v63  ;;  %1123 = vmatpush.msra.mxu3 %v1035_v7  ;;  %v4026_v55 = vsub.f32 %v5839_v27, %v5846_v52  ;;  %v999_v20 = vadd.f32 %v983_v30, %v3806_v22  ;;  %v1014_v7 = vmul.f32 2.0876756e-09, %v4005_v34  ;;  %v5851_v27 = vld [vmem:[#allocation51_spill] sm:$0xff] }
 0x1ff   : > { %5843 = vst [vmem:[#allocation61_spill] sm:$0xff] %v4018_v3  ;;  %1187 = vmatpush.msra.mxu0 %v1052_v23  ;;  %v4031_v14 = vsub.f32 %v804_v53, %v5841_v33  ;;  %v1050_v21 = vadd.f32 %v1034_v38, %v1002_v31  ;;  %v1032_v56 = vadd.f32 %v1016_v54, %v3891_v57  ;;  %v980_v53 = vmul.f32 2.0876756e-09, %v4013_v58  ;;  %v5854_v54 = vld [vmem:[#allocation38_spill] sm:$0xff]  ;;  %v5855_v33 = vld [vmem:[#allocation47_spill] sm:$0xff] }
 0x200   : > { %5847 = vst [vmem:[#allocation62_spill] sm:$0xff] %v4026_v55  ;;  %1061 = vmatpush.msrb.mxu2 %v1000_v9  ;;  %1124 = vmatpush.msra.mxu3 %v1034_v38  ;;  %v801_v23 = vsub.f32 %v5850_v28, %v5849_v26  ;;  %v4039_v42 = vsub.f32 %v5844_v15, %v5851_v27  ;;  %v1013_v38 = vmul.f32 2.0876756e-09, %v4018_v3  ;;  %v5856_v15 = vld [vmem:[#allocation48_spill] sm:$0xff] }
 0x201   : > { %5848 = vst [vmem:[#allocation50_spill] sm:$0xff] %v4031_v14  ;;  %1188 = vmatpush.msra.mxu0 %v1051_v45  ;;  %v998_v22 = vadd.f32 %v982_v43, %v3765_v46  ;;  %v4044_v31 = vsub.f32 %v803_v35, %v5846_v52  ;;  %v1049_v57 = vadd.f32 %v1033_v50, %v1001_v63  ;;  %v979_v35 = vmul.f32 2.0876756e-09, %v4026_v55  ;;  %v5860_v52 = vld [vmem:[#allocation44_spill] sm:$0xff] }
 0x202   : > { %5852 = vst [vmem:[#allocation58_spill] sm:$0xff] %v4039_v42  ;;  %1062 = vmatpush.msrb.mxu2 %v999_v20  ;;  %1125 = vmatpush.msra.mxu3 %v1033_v50  ;;  %v1031_v30 = vadd.f32 %v1015_v36, %v3827_v18  ;;  %v800_v45 = vsub.f32 %v5855_v33, %v5854_v54  ;;  %v1012_v50 = vmul.f32 2.0876756e-09, %v4031_v14  ;;  %v5859_v36 = vld [vmem:[#allocation36_spill] sm:$0xff] }
 0x203   : > { %5853 = vst [vmem:[#allocation59_spill] sm:$0xff] %v4044_v31  ;;  %1189 = vmatpush.msra.mxu0 %v1050_v21  ;;  %v4052_v28 = vsub.f32 %v5849_v26, %v5856_v15  ;;  %v997_v46 = vadd.f32 %v981_v16, %v3755_v48  ;;  %v4057_v63 = vsub.f32 %v802_v47, %v5851_v27  ;;  %v5861_v26 = vld [vmem:[#allocation45_spill] sm:$0xff]  ;;  %v978_v47 = vmul.f32 2.0876756e-09, %v4039_v42 }
 0x204   : > { %1063 = vmatpush.msrb.mxu2 %v998_v22  ;;  %1126 = vmatpush.msra.mxu3 %v1032_v56  ;;  %v1048_v18 = vadd.f32 %v1032_v56, %v1000_v9  ;;  %v1030_v43 = vadd.f32 %v1014_v7, %v3771_v62  ;;  %v799_v21 = vsub.f32 %v5860_v52, %v5859_v36  ;;  %v1011_v56 = vmul.f32 2.0876756e-09, %v4044_v31  ;;  %v5864_v7 = vld [vmem:[#allocation43_spill] sm:$0xff] }
 0x205   : > { %5857 = vst [vmem:[#allocation46_spill] sm:$0xff] %v4052_v28  ;;  %1190 = vmatpush.msra.mxu0 %v1049_v57  ;;  %v4065_v33 = vsub.f32 %v5854_v54, %v5861_v26  ;;  %v996_v48 = vadd.f32 %v980_v53, %v3757_v39  ;;  %v4070_v9 = vsub.f32 %v801_v23, %v5856_v15  ;;  %v5866_v39 = vld [vmem:[#allocation16_spill] sm:$0xff]  ;;  %v977_v54 = vmul.f32 2.0876756e-09, %v4052_v28  ;;  %v5868_v15 = vld [vmem:[#allocation14_spill] sm:$0xff] }
 0x206   : > { %5858 = vst [vmem:[#allocation55_spill] sm:$0xff] %v4057_v63  ;;  %1064 = vmatpush.msrb.mxu2 %v997_v46  ;;  %1127 = vmatpush.msra.mxu3 %v1031_v30  ;;  %v1047_v62 = vadd.f32 %v1031_v30, %v999_v20  ;;  %v1029_v16 = vadd.f32 %v1013_v38, %v3767_v51  ;;  %v945_v53 = vmul.f32 2.5052108e-08, %v5866_v39  ;;  %v1010_v30 = vmul.f32 2.0876756e-09, %v4057_v63  ;;  %v5972_v39 = vld [vmem:[#allocation25_spill] sm:$0xff] }
 0x207   : > { %5862 = vst [vmem:[#allocation57_spill] sm:$0xff] %v4065_v33  ;;  %1191 = vmatpush.msra.mxu0 %v1048_v18  ;;  %v4076_v27 = vsub.f32 %v5859_v36, %v5864_v7  ;;  %v995_v57 = vadd.f32 %v979_v35, %v3747_v1  ;;  %v4082_v23 = vsub.f32 %v800_v45, %v5861_v26  ;;  %v944_v35 = vmul.f32 2.5052108e-08, %v5868_v15  ;;  %v5960_v15 = vld [vmem:[#allocation91_spill] sm:$0xff] }
 0x208   : > { %5863 = vst [vmem:[#allocation42_spill] sm:$0xff] %v4070_v9  ;;  %1065 = vmatpush.msrb.mxu2 %v996_v48  ;;  %1128 = vmatpush.msra.mxu3 %v1030_v43  ;;  %v1046_v20 = vadd.f32 %v1030_v43, %v998_v22  ;;  %v1028_v51 = vadd.f32 %v1012_v50, %v3759_v17  ;;  %v976_v18 = vmul.f32 2.0876756e-09, %v4065_v33  ;;  %v1009_v43 = vmul.f32 2.0876756e-09, %v4070_v9 }
 0x209   : > { %5865 = vst [vmem:[#allocation52_spill] sm:$0xff] %v4076_v27  ;;  %1192 = vmatpush.msra.mxu0 %v1047_v62  ;;  %v962_v38 = vadd.f32 %v3779_v8, %v3752_v19  ;;  %v994_v1 = vadd.f32 %v978_v47, %v3720_v25  ;;  %v4092_v45 = vsub.f32 %v799_v21, %v5864_v7  ;;  %v5870_v19 = vld [vmem:[#allocation82_spill] sm:$0xff]  ;;  %v5871_v8 = vld [vmem:[#allocation12_spill] sm:$0xff]  ;;  %v975_v52 = vmul.f32 2.0876756e-09, %v4076_v27 }
 0x20a   : > { %5867 = vst [vmem:[#allocation54_spill] sm:$0xff] %v4082_v23  ;;  %1066 = vmatpush.msrb.mxu2 %v995_v57  ;;  %1129 = vmatpush.msra.mxu3 %v1029_v16  ;;  %v1045_v22 = vadd.f32 %v1029_v16, %v997_v46  ;;  %v1027_v17 = vadd.f32 %v1011_v56, %v3749_v10  ;;  %v943_v36 = vmul.f32 2.5052108e-08, %v5871_v8  ;;  %v5872_v46 = vld [vmem:[#allocation85_spill] sm:$0xff]  ;;  %v1008_v10 = vmul.f32 2.0876756e-09, %v4082_v23 }
 0x20b   : > { %5869 = vst [vmem:[#allocation40_spill] sm:$0xff] %v4092_v45  ;;  %1193 = vmatpush.msra.mxu0 %v1046_v20  ;;  %v993_v50 = vadd.f32 %v977_v54, %v3711_v29  ;;  %v912_v25 = vadd.f32 %v5870_v19, %v3706_v32  ;;  %v1044_v26 = vadd.f32 %v1028_v51, %v996_v48  ;;  %v5873_v16 = vld [vmem:[#allocation77_spill] sm:$0xff]  ;;  %v5874_v56 = vld [vmem:[#allocation78_spill] sm:$0xff]  ;;  %v5875_v32 = vld [vmem:[#allocation83_spill] sm:$0xff]  ;;  %v1007_v19 = vmul.f32 2.0876756e-09, %v4092_v45 }
 0x20c   : > { %1067 = vmatpush.msrb.mxu2 %v994_v1  ;;  %1130 = vmatpush.msra.mxu3 %v1028_v51  ;;  %v1026_v21 = vadd.f32 %v1010_v30, %v962_v38  ;;  %v961_v47 = vadd.f32 %v945_v53, %v5872_v46  ;;  %v911_v29 = vadd.f32 %v5874_v56, %v5873_v16  ;;  %v5876_v30 = vld [vmem:[#allocation80_spill] sm:$0xff] }
 0x20d   : > { %1194 = vmatpush.msra.mxu0 %v1045_v22  ;;  %v992_v62 = vadd.f32 %v976_v18, %v912_v25  ;;  %v1043_v7 = vadd.f32 %v1027_v17, %v995_v57  ;;  %v960_v20 = vadd.f32 %v944_v35, %v5875_v32  ;;  %v959_v38 = vadd.f32 %v943_v36, %v5876_v30 }
 0x20e   : > { %1068 = vmatpush.msrb.mxu2 %v993_v50  ;;  %1131 = vmatpush.msra.mxu3 %v1027_v17  ;;  %v1025_v54 = vadd.f32 %v1009_v43, %v961_v47  ;;  %v991_v48 = vadd.f32 %v975_v52, %v911_v29  ;;  %v1042_v51 = vadd.f32 %v1026_v21, %v994_v1  ;;  %v5892_v29 = vld [vmem:[#allocation115_spill] sm:$0xff] }
 0x20f   : > { %1195 = vmatpush.msra.mxu0 %v1044_v26  ;;  %v1024_v53 = vadd.f32 %v1008_v10, %v960_v20  ;;  %v1023_v22 = vadd.f32 %v1007_v19, %v959_v38  ;;  %v4112_v1 = vadd.f32 %v4092_v45, %v4076_v27  ;;  %v4119_v17 = vadd.f32 %v4082_v23, %v4065_v33 }
 0x210   : > { %1069 = vmatpush.msrb.mxu2 %v992_v62  ;;  %1132 = vmatpush.msra.mxu3 %v1026_v21  ;;  %v1041_v18 = vadd.f32 %v1025_v54, %v993_v50  ;;  %v4126_v43 = vadd.f32 %v4070_v9, %v4052_v28  ;;  %v4133_v50 = vadd.f32 %v4057_v63, %v4039_v42 }
 0x211   : > { %1196 = vmatpush.msra.mxu0 %v1043_v7  ;;  %v1040_v57 = vadd.f32 %v1024_v53, %v992_v62  ;;  %v1039_v35 = vadd.f32 %v1023_v22, %v991_v48  ;;  %5877 = vst [vmem:[#allocation49_spill] sm:$0xff] %v4112_v1  ;;  %v4140_v25 = vadd.f32 %v4044_v31, %v4026_v55 }
 0x212   : > { %1070 = vmatpush.msrb.mxu2 %v991_v48  ;;  %1133 = vmatpush.msra.mxu3 %v1025_v54  ;;  %5878 = vst [vmem:[#allocation51_spill] sm:$0xff] %v4119_v17  ;;  %v4147_v36 = vadd.f32 %v4031_v14, %v4013_v58  ;;  %v4154_v52 = vadd.f32 %v4018_v3, %v4000_v12 }
 0x213   : > { %1197 = vmatpush.msra.mxu0 %v1042_v51  ;;  %1071 = vmatmul.f32.vlgmr.msrb.gmra.mxu2 %v4076_v27  ;;  %5879 = vst [vmem:[#allocation38_spill] sm:$0xff] %v4126_v43  ;;  %v4161_v26 = vadd.f32 %v4005_v34, %v3987_v2  ;;  %v4168_v21 = vadd.f32 %v3992_v11, %v3974_v49  ;;  %v5934_v27 = vld [vmem:[#allocation7_spill] sm:$0xff] }
 0x214   : > { %1134 = vmatpush.msra.mxu3 %v1024_v53  ;;  %5880 = vst [vmem:[#allocation47_spill] sm:$0xff] %v4133_v50  ;;  %v4175_v46 = vadd.f32 %v3980_v5, %v3963_v24  ;;  %v4182_v47 = vadd.f32 %v3969_v37, %v3951_v61  ;;  %v4189_v10 = vadd.f32 %v3958_v13, %v3938_v44 }
 0x215   : > { %1198 = vmatpush.msra.mxu0 %v1041_v18  ;;  %5881 = vst [vmem:[#allocation48_spill] sm:$0xff] %v4140_v25  ;;  %v4196_v62 = vadd.f32 %v3946_v59, %v3926_v40  ;;  %v4203_v16 = vadd.f32 %v3933_v0, %v3907_v41  ;;  %v4210_v56 = vadd.f32 %v3921_v6, %v3898_v4 }
 0x216   : > { %1135 = vmatpush.msra.mxu3 %v1023_v22  ;;  %5882 = vst [vmem:[#allocation36_spill] sm:$0xff] %v4147_v36  ;;  %v4217_v7 = vadd.f32 %v5892_v29, %v3909_v60 }
 0x217   : > { %1199 = vmatpush.msra.mxu0 %v1040_v57  ;;  %1136 = vmatmul.f32.vlgmr.msra.gmra.mxu3 %v4092_v45  ;;  %5883 = vst [vmem:[#allocation44_spill] sm:$0xff] %v4154_v52 }
 0x218   : > { %5884 = vst [vmem:[#allocation45_spill] sm:$0xff] %v4161_v26 }
 0x219   : > { %1200 = vmatpush.msra.mxu0 %v1039_v35  ;;  %5885 = vst [vmem:[#allocation43_spill] sm:$0xff] %v4168_v21 }
 0x21a   : > { %1201 = vmatmul.f32.vlgmr.msra.gmra.mxu0 %v4112_v1  ;;  %5886 = vst [vmem:[#allocation82_spill] sm:$0xff] %v4175_v46 }
 0x21b   : > { %1074 = vmatmul.f32.gmra.mxu2 %v4065_v33  ;;  %5887 = vst [vmem:[#allocation85_spill] sm:$0xff] %v4182_v47 }
 0x21c   : > { %5888 = vst [vmem:[#allocation77_spill] sm:$0xff] %v4189_v10 }
 0x21d   : > { %5889 = vst [vmem:[#allocation78_spill] sm:$0xff] %v4196_v62 }
 0x21e   : > { %5890 = vst [vmem:[#allocation83_spill] sm:$0xff] %v4203_v16 }
 0x21f   : > { %1139 = vmatmul.f32.gmra.mxu3 %v4082_v23  ;;  %5891 = vst [vmem:[#allocation80_spill] sm:$0xff] %v4210_v56 }
 0x220   : > { %5893 = vst [vmem:[#allocation116_spill] sm:$0xff] %v4217_v7 }
 0x222   : > { %1204 = vmatmul.f32.gmra.mxu0 %v4119_v17  ;;  %v4335_v17 = vld [vmem:[%s3065_s24 + $0x8] sm:$0xff] }
 0x223   : > { %1077 = vmatmul.f32.gmra.mxu2 %v4052_v28  ;;  %5930 = vst [vmem:[#allocation145_spill] sm:$0xff] %v4335_v17 }
 0x227   : > { %1142 = vmatmul.f32.gmra.mxu3 %v4070_v9 }
 0x22a   : > { %1207 = vmatmul.f32.gmra.mxu0 %v4126_v43 }
 0x22b   : > { %1080 = vmatmul.f32.gmra.mxu2 %v4039_v42  ;;  %v5927_v42 = vld [vmem:[#allocation79_spill] sm:$0xff] }
 0x22c   : > { %v1302_v43 = vmul.f32 0.0013888889, %v5927_v42 }
 0x22f   : > { %1145 = vmatmul.f32.gmra.mxu3 %v4057_v63 }
 0x232   : > { %1210 = vmatmul.f32.gmra.mxu0 %v4133_v50  ;;  %v4323_v50 = vld [vmem:[%s3065_s24 + $0x18] sm:$0xff] }
 0x233   : > { %1083 = vmatmul.f32.gmra.mxu2 %v4026_v55  ;;  %5926 = vst [vmem:[#allocation143_spill] sm:$0xff] %v4323_v50  ;;  %v1317_v63 = vmul.f32 0.0001984127, %v4323_v50  ;;  %v5931_v50 = vld [vmem:[#allocation9_spill] sm:$0xff] }
 0x234   : > { %v1348_v33 = vmul.f32 2.4801588e-05, %v5931_v50  ;;  %v2950_v50 = vld [vmem:[%s3091_s7 + $0x8] sm:$0xff] }
 0x237   : > { %1148 = vmatmul.f32.gmra.mxu3 %v4044_v31  ;;  %v5925_v31 = vld [vmem:[#allocation76_spill] sm:$0xff] }
 0x238   : > { %v1301_v55 = vmul.f32 0.0013888889, %v5925_v31 }
 0x23a   : > { %1213 = vmatmul.f32.gmra.mxu0 %v4140_v25  ;;  %v1333_v1 = vadd.f32 %v1317_v63, %v1301_v55  ;;  %v5941_v63 = vld [vmem:[#allocation81_spill] sm:$0xff] }
 0x23b   : > { %1086 = vmatmul.f32.gmra.mxu2 %v4013_v58  ;;  %v4318_v58 = vld [vmem:[%s3065_s24] sm:$0xff] }
 0x23c   : > { %5924 = vst [vmem:[#allocation142_spill] sm:$0xff] %v4318_v58  ;;  %v1314_v25 = vmul.f32 0.0001984127, %v4318_v58  ;;  %v1315_v58 = vmul.f32 0.0001984127, %v4335_v17 }
 0x23f   : > { %1151 = vmatmul.f32.gmra.mxu3 %v4031_v14 }
 0x242   : > { %1216 = vmatmul.f32.gmra.mxu0 %v4147_v36  ;;  %v4314_v36 = vld [vmem:[%s3065_s24 + $0x10] sm:$0xff] }
 0x243   : > { %1089 = vmatmul.f32.gmra.mxu2 %v4000_v12  ;;  %5923 = vst [vmem:[#allocation141_spill] sm:$0xff] %v4314_v36  ;;  %v1316_v14 = vmul.f32 0.0001984127, %v4314_v36  ;;  %v5929_v36 = vld [vmem:[#allocation75_spill] sm:$0xff] }
 0x244   : > { %v1299_v28 = vmul.f32 0.0013888889, %v5929_v36  ;;  %v2949_v36 = vld [vmem:[%s3091_s7] sm:$0xff] }
 0x245   : > { %v4348_v8 = vmul.f32 0.0001984127, %v2949_v36 }
 0x247   : > { %1154 = vmatmul.f32.gmra.mxu3 %v4018_v3  ;;  %5936 = vst [vmem:[#allocation148_spill] sm:$0xff] %v4348_v8  ;;  %v4371_v8 = vld [vmem:[%s3065_s24 + $0x30] sm:$0xff] }
 0x248   : > { %5946 = vst [vmem:[#allocation154_spill] sm:$0xff] %v4371_v8 }
 0x24a   : > { %1219 = vmatmul.f32.gmra.mxu0 %v4154_v52 }
 0x24b   : > { %1092 = vmatmul.f32.gmra.mxu2 %v3987_v2 }
 0x24f   : > { %1157 = vmatmul.f32.gmra.mxu3 %v4005_v34 }
 0x252   : > { %1222 = vmatmul.f32.gmra.mxu0 %v4161_v26 }
 0x253   : > { %1095 = vmatmul.f32.gmra.mxu2 %v3974_v49 }
 0x257   : > { %1160 = vmatmul.f32.gmra.mxu3 %v3992_v11  ;;  %v5917_v11 = vld [vmem:[#allocation28_spill] sm:$0xff] }
 0x258   : > { %v1402_v49 = vmul.f32 2.4801588e-05, %v5917_v11  ;;  %v5922_v11 = vld [vmem:[#allocation73_spill] sm:$0xff] }
 0x25a   : > { %1225 = vmatmul.f32.gmra.mxu0 %v4168_v21 }
 0x25b   : > { %1098 = vmatmul.f32.gmra.mxu2 %v3963_v24  ;;  %v4275_v24 = vld [vmem:[%s3091_s7 + $0x40] sm:$0xff] }
 0x25c   : > { %5916 = vst [vmem:[#allocation137_spill] sm:$0xff] %v4275_v24  ;;  %v1386_v21 = vmul.f32 0.0001984127, %v4275_v24  ;;  %v1300_v24 = vmul.f32 0.0013888889, %v5922_v11 }
 0x25e   : > { %v1418_v3 = vadd.f32 %v1402_v49, %v1386_v21  ;;  %v1332_v23 = vadd.f32 %v1316_v14, %v1300_v24  ;;  %v5938_v24 = vld [vmem:[#allocation8_spill] sm:$0xff] }
 0x25f   : > { %1163 = vmatmul.f32.gmra.mxu3 %v3980_v5  ;;  %v4352_v14 = vmul.f32 2.4801588e-05, %v5938_v24  ;;  %v5945_v24 = vld [vmem:[#allocation84_spill] sm:$0xff] }
 0x261   : > { %5939 = vst [vmem:[#allocation149_spill] sm:$0xff] %v4352_v14 }
 0x262   : > { %1228 = vmatmul.f32.gmra.mxu0 %v4175_v46  ;;  %v5915_v46 = vld [vmem:[#allocation19_spill] sm:$0xff] }
 0x263   : > { %1101 = vmatmul.f32.gmra.mxu2 %v3951_v61  ;;  %v1354_v5 = vmul.f32 2.4801588e-05, %v5915_v46 }
 0x267   : > { %1166 = vmatmul.f32.gmra.mxu3 %v3969_v37 }
 0x26a   : > { %1231 = vmatmul.f32.gmra.mxu0 %v4182_v47 }
 0x26b   : > { %1104 = vmatmul.f32.gmra.mxu2 %v3938_v44 }
 0x26f   : > { %1169 = vmatmul.f32.gmra.mxu3 %v3958_v13  ;;  %v4270_v13 = vld [vmem:[%s3065_s24 + $0x40] sm:$0xff] }
 0x270   : > { %5914 = vst [vmem:[#allocation136_spill] sm:$0xff] %v4270_v13  ;;  %v1322_v44 = vmul.f32 0.0001984127, %v4270_v13 }
 0x272   : > { %1234 = vmatmul.f32.gmra.mxu0 %v4189_v10 }
 0x273   : > { %1107 = vmatmul.f32.gmra.mxu2 %v3926_v40  ;;  %v5913_v40 = vld [vmem:[#allocation87_spill] sm:$0xff] }
 0x274   : > { %v1306_v10 = vmul.f32 0.0013888889, %v5913_v40 }
 0x276   : > { %v1338_v61 = vadd.f32 %v1322_v44, %v1306_v10 }
 0x277   : > { %1172 = vmatmul.f32.gmra.mxu3 %v3946_v59 }
 0x278   : > { %v1370_v40 = vadd.f32 %v1354_v5, %v1338_v61 }
 0x27a   : > { %1237 = vmatmul.f32.gmra.mxu0 %v4196_v62 }
 0x27b   : > { %1110 = vmatmul.f32.gmra.mxu2 %v3907_v41 }
 0x27f   : > { %1175 = vmatmul.f32.gmra.mxu3 %v3933_v0 }
 0x282   : > { %1240 = vmatmul.f32.gmra.mxu0 %v4203_v16 }
 0x283   : > { %1113 = vmatmul.f32.gmra.mxu2 %v3898_v4 }
 0x287   : > { %1178 = vmatmul.f32.gmra.mxu3 %v3921_v6 }
 0x28a   : > { %1243 = vmatmul.f32.gmra.mxu0 %v4210_v56 }
 0x28b   : > { %1116 = vmatmul.f32.gmra.mxu2 %v3909_v60 }
 0x28f   : > { %1181 = vmatmul.f32.gmra.mxu3 %v5892_v29 }
 0x292   : > { %1246 = vmatmul.f32.gmra.mxu0 %v4217_v7 }
 0x296   : > { %v4220_v54 = vpop.f32.mrf.mxu2 }
 0x297   : > { %5894 = vst [vmem:[#allocation117_spill] sm:$0xff] %v4220_v54  ;;  %v4222_v32 = vpop.f32.mrf.mxu0  ;;  %v5956_v54 = vld [vmem:[#allocation13_spill] sm:$0xff] }
 0x298   : > { %5895 = vst [vmem:[#allocation118_spill] sm:$0xff] %v4222_v32 }
 0x29a   : > { %v4224_v20 = vpop.f32.mrf.mxu3 }
 0x29b   : > { %5896 = vst [vmem:[#allocation119_spill] sm:$0xff] %v4224_v20  ;;  %v4345_v20 = vmul.f32 2.4801588e-05, %v5934_v27  ;;  %v4361_v27 = vld [vmem:[%s3065_s24 + $0x28] sm:$0xff] }
 0x29c   : > { %5942 = vst [vmem:[#allocation151_spill] sm:$0xff] %v4361_v27  ;;  %v1319_v36 = vmul.f32 0.0001984127, %v4361_v27  ;;  %v4381_v27 = vld [vmem:[%s3065_s24 + $0x38] sm:$0xff] }
 0x29d   : > { %5935 = vst [vmem:[#allocation147_spill] sm:$0xff] %v4345_v20  ;;  %v2954_v20 = vld [vmem:[%s3091_s7 + $0x18] sm:$0xff] }
 0x29e   : > { %v4226_v19 = vpop.f32.mrf.mxu2  ;;  %5950 = vst [vmem:[#allocation157_spill] sm:$0xff] %v4381_v27 }
 0x29f   : > { %5897 = vst [vmem:[#allocation120_spill] sm:$0xff] %v4226_v19  ;;  %v4228_v48 = vpop.f32.mrf.mxu0 }
 0x2a0   : > { %5898 = vst [vmem:[#allocation121_spill] sm:$0xff] %v4228_v48  ;;  %v5971_v48 = vld [vmem:[#allocation97_spill] sm:$0xff] }
 0x2a1   : > { %v1326_v19 = vmul.f32 0.0001984127, %v5971_v48 }
 0x2a2   : > { %v4230_v51 = vpop.f32.mrf.mxu3 }
 0x2a3   : > { %5899 = vst [vmem:[#allocation122_spill] sm:$0xff] %v4230_v51  ;;  %v5937_v51 = vld [vmem:[#allocation11_spill] sm:$0xff] }
 0x2a4   : > { %v1350_v32 = vmul.f32 2.4801588e-05, %v5937_v51  ;;  %v1304_v51 = vmul.f32 0.0013888889, %v5945_v24 }
 0x2a6   : > { %v4232_v53 = vpop.f32.mrf.mxu2 }
 0x2a7   : > { %5900 = vst [vmem:[#allocation123_spill] sm:$0xff] %v4232_v53  ;;  %v4234_v30 = vpop.f32.mrf.mxu0  ;;  %v5976_v53 = vld [vmem:[#allocation102_spill] sm:$0xff] }
 0x2a8   : > { %5901 = vst [vmem:[#allocation124_spill] sm:$0xff] %v4234_v30 }
 0x2aa   : > { %v4236_v38 = vpop.f32.mrf.mxu3 }
 0x2ab   : > { %5902 = vst [vmem:[#allocation125_spill] sm:$0xff] %v4236_v38 }
 0x2ae   : > { %v4238_v18 = vpop.f32.mrf.mxu2 }
 0x2af   : > { %5903 = vst [vmem:[#allocation126_spill] sm:$0xff] %v4238_v18  ;;  %v4240_v22 = vpop.f32.mrf.mxu0 }
 0x2b0   : > { %5904 = vst [vmem:[#allocation127_spill] sm:$0xff] %v4240_v22  ;;  %v5986_v22 = vld [vmem:[#allocation104_spill] sm:$0xff] }
 0x2b1   : > { %v1390_v18 = vmul.f32 0.0001984127, %v5986_v22  ;;  %v5993_v22 = vld [vmem:[#allocation39_spill] sm:$0xff] }
 0x2b2   : > { %v4242_v57 = vpop.f32.mrf.mxu3 }
 0x2b3   : > { %5905 = vst [vmem:[#allocation128_spill] sm:$0xff] %v4242_v57  ;;  %v5974_v57 = vld [vmem:[#allocation100_spill] sm:$0xff] }
 0x2b6   : > { %v4244_v35 = vpop.f32.mrf.mxu2 }
 0x2b7   : > { %5906 = vst [vmem:[#allocation129_spill] sm:$0xff] %v4244_v35  ;;  %v4246_v7 = vpop.f32.mrf.mxu0 }
 0x2b8   : > { %5907 = vst [vmem:[#allocation130_spill] sm:$0xff] %v4246_v7  ;;  %v5988_v7 = vld [vmem:[#allocation31_spill] sm:$0xff] }
 0x2ba   : > { %v4248_v29 = vpop.f32.mrf.mxu3 }
 0x2bb   : > { %5908 = vst [vmem:[#allocation131_spill] sm:$0xff] %v4248_v29  ;;  %v1312_v29 = vmul.f32 0.0013888889, %v5976_v53 }
 0x2be   : > { %v4250_v60 = vpop.f32.mrf.mxu2 }
 0x2bf   : > { %5909 = vst [vmem:[#allocation132_spill] sm:$0xff] %v4250_v60  ;;  %v4252_v56 = vpop.f32.mrf.mxu0  ;;  %v1408_v60 = vmul.f32 2.4801588e-05, %v5993_v22 }
 0x2c0   : > { %5910 = vst [vmem:[#allocation133_spill] sm:$0xff] %v4252_v56 }
 0x2c2   : > { %v4254_v6 = vpop.f32.mrf.mxu3 }
 0x2c3   : > { %5911 = vst [vmem:[#allocation134_spill] sm:$0xff] %v4254_v6 }
 0x2c6   : > { %v4256_v4 = vpop.f32.mrf.mxu2 }
 0x2c7   : > { %v4258_v16 = vpop.f32.mrf.mxu0 }
 0x2ca   : > { %v4260_v0 = vpop.f32.mrf.mxu3 }
 0x2cb   : > { %5912 = vst [vmem:[#allocation135_spill] sm:$0xff] %v4260_v0 }
 0x2ce   : > { %v4262_v41 = vpop.f32.mrf.mxu2 }
 0x2cf   : > { %v4264_v62 = vpop.f32.mrf.mxu0 }
 0x2d2   : > { %v4266_v59 = vpop.f32.mrf.mxu3 }
 0x2d6   : > { %v1096_v47 = vpop.f32.mrf.mxu2 }
 0x2d7   : > { %v1226_v37 = vpop.f32.mrf.mxu0 }
 0x2d8   : > { %v1274_v26 = vsub.f32 %v1226_v37, %v1096_v47 }
 0x2da   : > { %v1161_v34 = vpop.f32.mrf.mxu3 }
 0x2db   : > { %v1258_v2 = vsub.f32 %v1096_v47, %v1161_v34  ;;  %v1290_v52 = vsub.f32 %v1274_v26, %v1161_v34  ;;  %v5921_v26 = vld [vmem:[#allocation71_spill] sm:$0xff] }
 0x2dc   : > { %v1298_v21 = vmul.f32 0.0013888889, %v5921_v26  ;;  %v4328_v26 = vld [vmem:[%s3065_s24 + $0x20] sm:$0xff] }
 0x2dd   : > { %v4279_v12 = vadd.f32 %v1370_v40, %v1258_v2  ;;  %v4281_v13 = vadd.f32 %v1418_v3, %v1290_v52  ;;  %5928 = vst [vmem:[#allocation144_spill] sm:$0xff] %v4328_v26  ;;  %v1318_v11 = vmul.f32 0.0001984127, %v4328_v26  ;;  %v5933_v26 = vld [vmem:[#allocation10_spill] sm:$0xff] }
 0x2de   : > { %v4283_v44 = vpop.f32.mrf.mxu2  ;;  %v4341_v42 = vadd.f32 %v1314_v25, %v1298_v21  ;;  %v1349_v45 = vmul.f32 2.4801588e-05, %v5933_v26  ;;  %v4355_v25 = vmul.f32 0.0001984127, %v2950_v50  ;;  %v1303_v21 = vmul.f32 0.0013888889, %v5941_v63 }
 0x2df   : > { %5918 = vst [vmem:[#allocation138_spill] sm:$0xff] %v4279_v12  ;;  %v4285_v10 = vpop.f32.mrf.mxu0  ;;  %v4289_v46 = vadd.f32 %v4281_v13, %v4279_v12  ;;  %v1334_v17 = vadd.f32 %v1318_v11, %v1302_v43  ;;  %v2952_v26 = vld [vmem:[%s3091_s7 + $0x10] sm:$0xff]  ;;  %v4367_v43 = vadd.f32 %v1315_v58, %v1299_v28  ;;  %v1320_v50 = vmul.f32 0.0001984127, %v4371_v8  ;;  %v4385_v58 = vld [vmem:[%s3091_s7 + $0x20] sm:$0xff]  ;;  %v5954_v8 = vld [vmem:[#allocation90_spill] sm:$0xff] }
 0x2e0   : > { %5919 = vst [vmem:[#allocation139_spill] sm:$0xff] %v4281_v13  ;;  %v4365_v11 = vmul.f32 0.0001984127, %v2952_v26  ;;  %v4377_v63 = vadd.f32 %v1348_v33, %v1332_v23  ;;  %v1321_v26 = vmul.f32 0.0001984127, %v4381_v27  ;;  %v4390_v24 = vadd.f32 %v1349_v45, %v1333_v1  ;;  %v5964_v1 = vld [vmem:[#allocation89_spill] sm:$0xff] }
 0x2e1   : > { %5920 = vst [vmem:[#allocation140_spill] sm:$0xff] %v4289_v46  ;;  %v4388_v28 = vmul.f32 0.0001984127, %v4385_v58  ;;  %v4395_v33 = vmul.f32 2.4801588e-05, %v5956_v54  ;;  %v4397_v23 = vadd.f32 %v1350_v32, %v1334_v17  ;;  %v4403_v38 = vadd.f32 %v1319_v36, %v1303_v21  ;;  %v5967_v32 = vld [vmem:[#allocation15_spill] sm:$0xff] }
 0x2e2   : > { %v4291_v37 = vpop.f32.mrf.mxu3  ;;  %5932 = vst [vmem:[#allocation146_spill] sm:$0xff] %v4341_v42  ;;  %v4375_v42 = vmul.f32 0.0001984127, %v2954_v20  ;;  %v5955_v20 = vld [vmem:[#allocation96_spill] sm:$0xff]  ;;  %v1323_v27 = vmul.f32 0.0001984127, %v5960_v15  ;;  %v4413_v17 = vadd.f32 %v1320_v50, %v1304_v51 }
 0x2e3   : > { %5940 = vst [vmem:[#allocation150_spill] sm:$0xff] %v4355_v25  ;;  %v5949_v25 = vld [vmem:[#allocation86_spill] sm:$0xff]  ;;  %v5969_v15 = vld [vmem:[#allocation21_spill] sm:$0xff]  ;;  %v5970_v21 = vld [vmem:[#allocation92_spill] sm:$0xff]  ;;  %v1327_v51 = vmul.f32 0.0001984127, %v5974_v57 }
 0x2e4   : > { %5943 = vst [vmem:[#allocation152_spill] sm:$0xff] %v4365_v11  ;;  %v1305_v14 = vmul.f32 0.0013888889, %v5949_v25  ;;  %v1325_v11 = vmul.f32 0.0001984127, %v5955_v20  ;;  %v5959_v25 = vld [vmem:[#allocation88_spill] sm:$0xff] }
 0x2e5   : > { %5944 = vst [vmem:[#allocation153_spill] sm:$0xff] %v4367_v43  ;;  %v1309_v43 = vmul.f32 0.0013888889, %v5954_v8  ;;  %v1308_v20 = vmul.f32 0.0013888889, %v5964_v1  ;;  %v5965_v8 = vld [vmem:[#allocation95_spill] sm:$0xff] }
 0x2e6   : > { %v4293_v47 = vpop.f32.mrf.mxu2  ;;  %5947 = vst [vmem:[#allocation155_spill] sm:$0xff] %v4375_v42  ;;  %v1324_v54 = vmul.f32 0.0001984127, %v5965_v8  ;;  %v1310_v36 = vmul.f32 0.0013888889, %v5970_v21  ;;  %v4423_v46 = vadd.f32 %v1321_v26, %v1305_v14  ;;  %v5977_v21 = vld [vmem:[#allocation106_spill] sm:$0xff] }
 0x2e7   : > { %v4295_v61 = vpop.f32.mrf.mxu0  ;;  %5948 = vst [vmem:[#allocation156_spill] sm:$0xff] %v4377_v63  ;;  %v1307_v63 = vmul.f32 0.0013888889, %v5959_v25  ;;  %v4416_v25 = vmul.f32 2.4801588e-05, %v5967_v32  ;;  %v5975_v32 = vld [vmem:[#allocation93_spill] sm:$0xff] }
 0x2e8   : > { %5951 = vst [vmem:[#allocation158_spill] sm:$0xff] %v4385_v58  ;;  %v4406_v58 = vld [vmem:[%s3091_s7 + $0x28] sm:$0xff]  ;;  %v1357_v1 = vmul.f32 2.4801588e-05, %v5972_v39  ;;  %v4431_v30 = vmul.f32 0.0001984127, %v5975_v32  ;;  %v4435_v48 = vadd.f32 %v1324_v54, %v1308_v20 }
 0x2e9   : > { %5952 = vst [vmem:[#allocation159_spill] sm:$0xff] %v4388_v28  ;;  %v4409_v45 = vmul.f32 0.0001984127, %v4406_v58  ;;  %v5973_v28 = vld [vmem:[#allocation94_spill] sm:$0xff]  ;;  %v4428_v50 = vadd.f32 %v1323_v27, %v1307_v63  ;;  %v5978_v14 = vld [vmem:[#allocation23_spill] sm:$0xff]  ;;  %v5982_v63 = vld [vmem:[#allocation101_spill] sm:$0xff] }
 0x2ea   : > { %v4297_v40 = vpop.f32.mrf.mxu3  ;;  %5953 = vst [vmem:[#allocation160_spill] sm:$0xff] %v4390_v24  ;;  %v1311_v8 = vmul.f32 0.0013888889, %v5973_v28  ;;  %v5980_v28 = vld [vmem:[#allocation103_spill] sm:$0xff]  ;;  %v5981_v57 = vld [vmem:[#allocation98_spill] sm:$0xff]  ;;  %v5985_v12 = vld [vmem:[#allocation29_spill] sm:$0xff] }
 0x2eb   : > { %5957 = vst [vmem:[#allocation96_spill] sm:$0xff] %v4395_v33  ;;  %v1329_v39 = vmul.f32 0.0001984127, %v5980_v28  ;;  %v4443_v27 = vmul.f32 0.0001984127, %v5981_v57  ;;  %v1342_v33 = vadd.f32 %v1326_v19, %v1310_v36  ;;  %v5989_v19 = vld [vmem:[#allocation33_spill] sm:$0xff] }
 0x2ec   : > { %5958 = vst [vmem:[#allocation161_spill] sm:$0xff] %v4397_v23  ;;  %v4419_v23 = vmul.f32 2.4801588e-05, %v5969_v15  ;;  %v1389_v32 = vmul.f32 0.0001984127, %v5982_v63  ;;  %v1343_v20 = vadd.f32 %v1327_v51, %v1311_v8  ;;  %v5992_v51 = vld [vmem:[#allocation111_spill] sm:$0xff] }
 0x2ed   : > { %5961 = vst [vmem:[#allocation91_spill] sm:$0xff] %v4403_v38  ;;  %v5983_v38 = vld [vmem:[#allocation27_spill] sm:$0xff]  ;;  %v1360_v57 = vmul.f32 2.4801588e-05, %v5988_v7  ;;  %v1361_v36 = vmul.f32 2.4801588e-05, %v5989_v19 }
 0x2ee   : > { %v4299_v49 = vpop.f32.mrf.mxu2  ;;  %5962 = vst [vmem:[#allocation162_spill] sm:$0xff] %v4406_v58  ;;  %v1341_v58 = vadd.f32 %v1325_v11, %v1309_v43  ;;  %v4438_v11 = vmul.f32 2.4801588e-05, %v5978_v14  ;;  %v5979_v43 = vld [vmem:[#allocation99_spill] sm:$0xff]  ;;  %v1358_v13 = vmul.f32 2.4801588e-05, %v5983_v38 }
 0x2ef   : > { %v4301_v5 = vpop.f32.mrf.mxu0  ;;  %5963 = vst [vmem:[#allocation163_spill] sm:$0xff] %v4409_v45  ;;  %v1328_v45 = vmul.f32 0.0001984127, %v5977_v21  ;;  %v1313_v26 = vmul.f32 0.0013888889, %v5979_v43  ;;  %v5984_v21 = vld [vmem:[#allocation34_spill] sm:$0xff] }
 0x2f0   : > { %5966 = vst [vmem:[#allocation95_spill] sm:$0xff] %v4413_v17  ;;  %v4447_v53 = vadd.f32 %v1357_v1, %v1341_v58  ;;  %v1405_v54 = vmul.f32 2.4801588e-05, %v5984_v21  ;;  %v1359_v14 = vmul.f32 2.4801588e-05, %v5985_v12  ;;  %v5987_v43 = vld [vmem:[#allocation35_spill] sm:$0xff]  ;;  %v1374_v21 = vadd.f32 %v1358_v13, %v1342_v33 }
 0x2f1   : > { %5968 = vst [vmem:[#allocation164_spill] sm:$0xff] %v4416_v25  ;;  %v1406_v6 = vmul.f32 2.4801588e-05, %v5987_v43  ;;  %v1344_v28 = vadd.f32 %v1328_v45, %v1312_v29  ;;  %v1345_v63 = vadd.f32 %v1329_v39, %v1313_v26  ;;  %v5990_v38 = vld [vmem:[#allocation110_spill] sm:$0xff]  ;;  %v5991_v1 = vld [vmem:[#allocation41_spill] sm:$0xff] }
 0x2f2   : > { %v4303_v2 = vpop.f32.mrf.mxu3  ;;  %v1393_v58 = vmul.f32 0.0001984127, %v5990_v38  ;;  %v1409_v56 = vmul.f32 2.4801588e-05, %v5991_v1  ;;  %v1392_v12 = vmul.f32 0.0001984127, %v5992_v51  ;;  %v1375_v43 = vadd.f32 %v1359_v14, %v1343_v20 }
 0x2f3   : > { %v5994_v29 = vld [vmem:[#allocation105_spill] sm:$0xff]  ;;  %v1376_v1 = vadd.f32 %v1360_v57, %v1344_v28  ;;  %v1377_v19 = vadd.f32 %v1361_v36, %v1345_v63 }
 0x2f4   : > { %v1391_v45 = vmul.f32 0.0001984127, %v5994_v29  ;;  %v5995_v7 = vld [vmem:[#allocation37_spill] sm:$0xff]  ;;  %v1425_v51 = vadd.f32 %v1409_v56, %v1393_v58  ;;  %v1424_v29 = vadd.f32 %v1408_v60, %v1392_v12  ;;  %v1261_v12 = vsub.f32 %v4299_v49, %v4303_v2 }
 0x2f5   : > { %v1407_v25 = vmul.f32 2.4801588e-05, %v5995_v7  ;;  %v1421_v58 = vadd.f32 %v1405_v54, %v1389_v32 }
 0x2f6   : > { %v4305_v34 = vpop.f32.mrf.mxu2 }
 0x2f7   : > { %v4307_v3 = vpop.f32.mrf.mxu0 }
 0x2f8   : > { %v1278_v14 = vsub.f32 %v4307_v3, %v4305_v34  ;;  %v1276_v3 = vsub.f32 %v4295_v61, %v4293_v47  ;;  %v1260_v61 = vsub.f32 %v4293_v47, %v4297_v40  ;;  %v5998_v47 = vld [vmem:[#allocation17_spill] sm:$0xff] }
 0x2f9   : > { %v1353_v32 = vmul.f32 2.4801588e-05, %v5998_v47 }
 0x2fa   : > { %v4309_v52 = vpop.f32.mrf.mxu3 }
 0x2fb   : > { %v1294_v56 = vsub.f32 %v1278_v14, %v4309_v52 }
 0x2fe   : > { %v4331_v9 = vpop.f32.mrf.mxu2 }
 0x2ff   : > { %v4338_v31 = vpop.f32.mrf.mxu0 }
 0x300   : > { %v1279_v39 = vsub.f32 %v4338_v31, %v4331_v9  ;;  %v1277_v31 = vsub.f32 %v4301_v5, %v4299_v49 }
 0x302   : > { %v4357_v55 = vpop.f32.mrf.mxu3  ;;  %v1293_v5 = vsub.f32 %v1277_v31, %v4303_v2  ;;  %v1259_v2 = vsub.f32 %v4283_v44, %v4291_v37 }
 0x303   : > { %v1263_v20 = vsub.f32 %v4331_v9, %v4357_v55  ;;  %v5996_v9 = vld [vmem:[#allocation32_spill] sm:$0xff] }
 0x304   : > { %v1404_v63 = vmul.f32 2.4801588e-05, %v5996_v9 }
 0x306   : > { %v4401_v42 = vpop.f32.mrf.mxu2 }
 0x307   : > { %v1244_v24 = vpop.f32.mrf.mxu0 }
 0x308   : > { %v1280_v8 = vsub.f32 %v1244_v24, %v4401_v42 }
 0x30a   : > { %v1179_v15 = vpop.f32.mrf.mxu3 }
 0x30b   : > { %v1264_v38 = vsub.f32 %v4401_v42, %v1179_v15  ;;  %v1296_v26 = vsub.f32 %v1280_v8, %v1179_v15  ;;  %v1423_v42 = vadd.f32 %v1407_v25, %v1391_v45  ;;  %v1439_v25 = vadd.f32 %v1375_v43, %v1263_v20 }
 0x30c   : > { %v1420_v43 = vadd.f32 %v1404_v63, %v4443_v27  ;;  %v1371_v45 = vadd.f32 %v4419_v23, %v4428_v50  ;;  %v5999_v27 = vld [vmem:[#allocation26_spill] sm:$0xff]  ;;  %v1272_v23 = vsub.f32 %v4258_v16, %v4256_v4  ;;  %v4510_v50 = vld [vmem:[%s3091_s7 + $0x30] sm:$0xff]  ;;  %v1369_v16 = vadd.f32 %v1353_v32, %v4423_v46  ;;  %v6017_v32 = vld [vmem:[#allocation163_spill] sm:$0xff] }
 0x30d   : > { %v1456_v57 = vadd.f32 %v1424_v29, %v1296_v26  ;;  %v6002_v29 = vld [vmem:[#allocation164_spill] sm:$0xff]  ;;  %v6007_v63 = vld [vmem:[#allocation129_spill] sm:$0xff]  ;;  %v6009_v46 = vld [vmem:[#allocation134_spill] sm:$0xff] }
 0x30e   : > { %v1117_v35 = vpop.f32.mrf.mxu2 }
 0x30f   : > { %v1247_v0 = vpop.f32.mrf.mxu0 }
 0x310   : > { %v1281_v17 = vsub.f32 %v1247_v0, %v1117_v35  ;;  %v1295_v0 = vsub.f32 %v1279_v39, %v4357_v55  ;;  %v1422_v55 = vadd.f32 %v1406_v6, %v1390_v18  ;;  %v1292_v6 = vsub.f32 %v1276_v3, %v4297_v40 }
 0x311   : > { %v1437_v40 = vadd.f32 %v4447_v53, %v1261_v12  ;;  %v1401_v39 = vmul.f32 2.4801588e-05, %v5999_v27  ;;  %v1273_v53 = vsub.f32 %v4264_v62, %v4262_v41 }
 0x312   : > { %v1182_v13 = vpop.f32.mrf.mxu3 }
 0x313   : > { %v1265_v33 = vsub.f32 %v1117_v35, %v1182_v13  ;;  %v1297_v24 = vsub.f32 %v1281_v17, %v1182_v13  ;;  %v1262_v35 = vsub.f32 %v4305_v34, %v4309_v52  ;;  %v1440_v17 = vadd.f32 %v1376_v1, %v1264_v38 }
 0x314   : > { %v1455_v34 = vadd.f32 %v1423_v42, %v1295_v0  ;;  %v1275_v52 = vsub.f32 %v4285_v10, %v4283_v44  ;;  %v1454_v1 = vadd.f32 %v1422_v55, %v1294_v56  ;;  %v1372_v10 = vadd.f32 %v4438_v11, %v4435_v48  ;;  %v4499_v48 = vld [vmem:[%s3091_s7 + $0x38] sm:$0xff] }
 0x315   : > { %v1441_v15 = vadd.f32 %v1377_v19, %v1265_v33  ;;  %v1457_v28 = vadd.f32 %v1425_v51, %v1297_v24  ;;  %v5997_v19 = vld [vmem:[#allocation30_spill] sm:$0xff]  ;;  %v1438_v18 = vadd.f32 %v1374_v21, %v1262_v35  ;;  %v1472_v49 = vadd.f32 %v1456_v57, %v1440_v17  ;;  %v6000_v33 = vld [vmem:[#allocation24_spill] sm:$0xff]  ;;  %v6005_v35 = vld [vmem:[#allocation133_spill] sm:$0xff] }
 0x316   : > { %v1403_v36 = vmul.f32 2.4801588e-05, %v5997_v19  ;;  %v1291_v54 = vsub.f32 %v1275_v52, %v4291_v37  ;;  %v1453_v21 = vadd.f32 %v1421_v58, %v1293_v5  ;;  %v1471_v8 = vadd.f32 %v1455_v34, %v1439_v25  ;;  %v6003_v42 = vld [vmem:[#allocation22_spill] sm:$0xff] }
 0x317   : > { %v1473_v60 = vadd.f32 %v1457_v28, %v1441_v15  ;;  %1474 = vmatpush.msra.mxu1 %v1441_v15  ;;  %1539 = vmatpush.msra.mxu2 %v1457_v28  ;;  %v1385_v11 = vmul.f32 0.0001984127, %v4499_v48  ;;  %v1436_v37 = vadd.f32 %v1372_v10, %v1260_v61  ;;  %v1452_v38 = vadd.f32 %v1420_v43, %v1292_v6  ;;  %v6004_v28 = vld [vmem:[#allocation132_spill] sm:$0xff]  ;;  %v6008_v55 = vld [vmem:[#allocation130_spill] sm:$0xff]  ;;  %v6012_v6 = vld [vmem:[#allocation127_spill] sm:$0xff] }
 0x318   : > { %v1419_v44 = vadd.f32 %v1403_v36, %v4431_v30  ;;  %v1470_v26 = vadd.f32 %v1454_v1, %v1438_v18  ;;  %v1257_v30 = vsub.f32 %v4262_v41, %v4266_v59  ;;  %v1384_v13 = vmul.f32 0.0001984127, %v4510_v50  ;;  %v6001_v41 = vld [vmem:[#allocation95_spill] sm:$0xff]  ;;  %v6011_v58 = vld [vmem:[#allocation126_spill] sm:$0xff]  ;;  %v6016_v10 = vld [vmem:[#allocation96_spill] sm:$0xff] }
 0x319   : > { %1475 = vmatpush.msra.mxu1 %v1440_v17  ;;  %1540 = vmatpush.msra.mxu2 %v1456_v57  ;;  %v1400_v24 = vmul.f32 2.4801588e-05, %v6000_v33  ;;  %v1289_v62 = vsub.f32 %v1273_v53, %v4266_v59  ;;  %v1435_v51 = vadd.f32 %v1371_v45, %v1259_v2  ;;  %v1469_v20 = vadd.f32 %v1453_v21, %v1437_v40  ;;  %v6006_v17 = vld [vmem:[#allocation135_spill] sm:$0xff] }
 0x31a   : > { %1604 = vmatpush.msrb.mxu3 %v1473_v60  ;;  %v1451_v14 = vadd.f32 %v1419_v44, %v1291_v54  ;;  %v1417_v0 = vadd.f32 %v1401_v39, %v1385_v11  ;;  %v1368_v31 = vadd.f32 %v6002_v29, %v6001_v41  ;;  %v1399_v15 = vmul.f32 2.4801588e-05, %v6003_v42  ;;  %v6015_v2 = vld [vmem:[#allocation91_spill] sm:$0xff]  ;;  %v6026_v41 = vld [vmem:[#allocation120_spill] sm:$0xff]  ;;  %v6027_v29 = vld [vmem:[#allocation121_spill] sm:$0xff] }
 0x31b   : > { %1476 = vmatpush.msra.mxu1 %v1439_v25  ;;  %1541 = vmatpush.msra.mxu2 %v1455_v34  ;;  %v1271_v56 = vsub.f32 %v6005_v35, %v6004_v28  ;;  %v1256_v59 = vsub.f32 %v4256_v4, %v6006_v17  ;;  %v1288_v57 = vsub.f32 %v1272_v23, %v6006_v17  ;;  %v6010_v25 = vld [vmem:[#allocation20_spill] sm:$0xff]  ;;  %v6020_v53 = vld [vmem:[#allocation123_spill] sm:$0xff]  ;;  %v6030_v17 = vld [vmem:[#allocation14_spill] sm:$0xff] }
 0x31c   : > { %1605 = vmatpush.msrb.mxu3 %v1472_v49  ;;  %v1468_v3 = vadd.f32 %v1452_v38, %v1436_v37  ;;  %v1270_v60 = vsub.f32 %v6008_v55, %v6007_v63  ;;  %v1255_v12 = vsub.f32 %v6004_v28, %v6009_v46  ;;  %v1416_v5 = vadd.f32 %v1400_v24, %v1384_v13  ;;  %v6014_v49 = vld [vmem:[#allocation139_spill] sm:$0xff]  ;;  %v6024_v24 = vld [vmem:[#allocation16_spill] sm:$0xff] }
 0x31d   : > { %1477 = vmatpush.msra.mxu1 %v1438_v18  ;;  %1542 = vmatpush.msra.mxu2 %v1454_v1  ;;  %v1398_v34 = vmul.f32 2.4801588e-05, %v6010_v25  ;;  %v1287_v52 = vsub.f32 %v1271_v56, %v6009_v46  ;;  %v1467_v36 = vadd.f32 %v1451_v14, %v1435_v51  ;;  %v1433_v4 = vadd.f32 %v1369_v16, %v1257_v30  ;;  %v6013_v1 = vld [vmem:[#allocation138_spill] sm:$0xff]  ;;  %v6023_v30 = vld [vmem:[#allocation159_spill] sm:$0xff]  ;;  %v6032_v46 = vld [vmem:[#allocation117_spill] sm:$0xff] }
 0x31e   : > { %1606 = vmatpush.msrb.mxu3 %v1471_v8  ;;  %v1449_v61 = vadd.f32 %v1417_v0, %v1289_v62  ;;  %v1269_v18 = vsub.f32 %v6012_v6, %v6011_v58  ;;  %v1367_v43 = vadd.f32 %v6016_v10, %v6015_v2  ;;  %v1415_v54 = vadd.f32 %v1399_v15, %v6017_v32  ;;  %v6019_v8 = vld [vmem:[#allocation131_spill] sm:$0xff]  ;;  %v6028_v15 = vld [vmem:[#allocation125_spill] sm:$0xff] }
 0x31f   : > { %1478 = vmatpush.msra.mxu1 %v1437_v40  ;;  %1543 = vmatpush.msra.mxu2 %v1453_v21  ;;  %v6018_v40 = vld [vmem:[#allocation18_spill] sm:$0xff]  ;;  %v1254_v45 = vsub.f32 %v6007_v63, %v6019_v8  ;;  %v1286_v44 = vsub.f32 %v1270_v60, %v6019_v8  ;;  %v1432_v11 = vadd.f32 %v1368_v31, %v1256_v59  ;;  %v1396_v62 = vmul.f32 2.4801588e-05, %v6024_v24  ;;  %v6029_v35 = vld [vmem:[#allocation155_spill] sm:$0xff]  ;;  %v6031_v63 = vld [vmem:[#allocation161_spill] sm:$0xff] }
 0x320   : > { %1607 = vmatpush.msrb.mxu3 %v1470_v26  ;;  %v1397_v21 = vmul.f32 2.4801588e-05, %v6018_v40  ;;  %v1448_v39 = vadd.f32 %v1416_v5, %v1288_v57  ;;  %v6022_v26 = vld [vmem:[#allocation128_spill] sm:$0xff]  ;;  %v1414_v13 = vadd.f32 %v1398_v34, %v6023_v30  ;;  %v1431_v16 = vadd.f32 %v1367_v43, %v1255_v12  ;;  %v6033_v12 = vld [vmem:[#allocation118_spill] sm:$0xff]  ;;  %v6038_v10 = vld [vmem:[#allocation119_spill] sm:$0xff] }
 0x321   : > { %1479 = vmatpush.msra.mxu1 %v1436_v37  ;;  %1544 = vmatpush.msra.mxu2 %v1452_v38  ;;  %v6021_v37 = vld [vmem:[#allocation124_spill] sm:$0xff]  ;;  %v1253_v23 = vsub.f32 %v6011_v58, %v6022_v26  ;;  %v1447_v0 = vadd.f32 %v1415_v54, %v1287_v52  ;;  %v1267_v31 = vsub.f32 %v6027_v29, %v6026_v41  ;;  %v1395_v59 = vmul.f32 2.4801588e-05, %v6030_v17  ;;  %v6034_v34 = vld [vmem:[#allocation122_spill] sm:$0xff]  ;;  %v6039_v32 = vld [vmem:[#allocation153_spill] sm:$0xff] }
 0x322   : > { %1608 = vmatpush.msrb.mxu3 %v1469_v20  ;;  %v1268_v38 = vsub.f32 %v6021_v37, %v6020_v53  ;;  %v1465_v20 = vadd.f32 %v1449_v61, %v1433_v4  ;;  %v1252_v28 = vsub.f32 %v6020_v53, %v6028_v15  ;;  %v1413_v56 = vadd.f32 %v1397_v21, %v6029_v35  ;;  %v6040_v54 = vld [vmem:[#allocation149_spill] sm:$0xff]  ;;  %v6041_v8 = vld [vmem:[#allocation150_spill] sm:$0xff]  ;;  %v6046_v29 = vld [vmem:[#allocation52_spill] sm:$0xff] }
 0x323   : > { %1480 = vmatpush.msra.mxu1 %v1435_v51  ;;  %1545 = vmatpush.msra.mxu2 %v1451_v14  ;;  %v1285_v51 = vsub.f32 %v1269_v18, %v6022_v26  ;;  %v6025_v14 = vld [vmem:[#allocation140_spill] sm:$0xff]  ;;  %v1430_v55 = vadd.f32 %v6031_v63, %v1254_v45  ;;  %v1446_v60 = vadd.f32 %v1414_v13, %v1286_v44  ;;  %v6044_v26 = vld [vmem:[#allocation147_spill] sm:$0xff]  ;;  %v6049_v35 = vld [vmem:[#allocation57_spill] sm:$0xff] }
 0x324   : > { %1609 = vmatpush.msrb.mxu3 %v1468_v3  ;;  %v1284_v57 = vsub.f32 %v1268_v38, %v6028_v15  ;;  %v1464_v3 = vadd.f32 %v1448_v39, %v1432_v11  ;;  %v1266_v5 = vsub.f32 %v6033_v12, %v6032_v46  ;;  %v1251_v52 = vsub.f32 %v6026_v41, %v6034_v34  ;;  %v6043_v38 = vld [vmem:[#allocation146_spill] sm:$0xff]  ;;  %v6047_v15 = vld [vmem:[#allocation40_spill] sm:$0xff]  ;;  %v4759_v40 = vld [vmem:[%s3065_s24 + $0x60] sm:$0xff] }
 0x325   : > { %1481 = vmatpush.msra.mxu1 %v6013_v1  ;;  %1546 = vmatpush.msra.mxu2 %v6014_v49  ;;  %v1283_v6 = vsub.f32 %v1267_v31, %v6034_v34  ;;  %v1463_v18 = vadd.f32 %v1447_v0, %v1431_v16  ;;  %v6037_v1 = vld [vmem:[#allocation160_spill] sm:$0xff]  ;;  %v1445_v2 = vadd.f32 %v1413_v56, %v1285_v51  ;;  %v6050_v56 = vld [vmem:[#allocation54_spill] sm:$0xff] }
 0x326   : > { %1610 = vmatpush.msrb.mxu3 %v1467_v36  ;;  %v6035_v36 = vld [vmem:[#allocation152_spill] sm:$0xff]  ;;  %v1429_v49 = vadd.f32 %v6037_v1, %v1253_v23  ;;  %v1250_v43 = vsub.f32 %v6032_v46, %v6038_v10  ;;  %v1363_v21 = vadd.f32 %v6040_v54, %v6039_v32  ;;  %v1411_v45 = vadd.f32 %v1395_v59, %v6041_v8  ;;  %v6051_v59 = vld [vmem:[#allocation51_spill] sm:$0xff]  ;;  %v6054_v63 = vld [vmem:[#allocation38_spill] sm:$0xff] }
 0x327   : > { %1482 = vmatpush.msra.mxu1 %v1433_v4  ;;  %1547 = vmatpush.msra.mxu2 %v1449_v61  ;;  %v1412_v4 = vadd.f32 %v1396_v62, %v6035_v36  ;;  %v6036_v61 = vld [vmem:[#allocation12_spill] sm:$0xff]  ;;  %v1282_v44 = vsub.f32 %v1266_v5, %v6038_v10  ;;  %v1362_v23 = vadd.f32 %v6044_v26, %v6043_v38  ;;  %v6057_v46 = vld [vmem:[#allocation47_spill] sm:$0xff]  ;;  %v6058_v12 = vld [vmem:[#allocation62_spill] sm:$0xff] }
 0x328   : > { %1611 = vmatpush.msrb.mxu3 %v6025_v14  ;;  %v1394_v58 = vmul.f32 2.4801588e-05, %v6036_v61  ;;  %v1461_v30 = vadd.f32 %v1445_v2, %v1429_v49  ;;  %v1427_v13 = vadd.f32 %v1363_v21, %v1251_v52  ;;  %v1443_v62 = vadd.f32 %v1411_v45, %v1283_v6  ;;  %v6045_v51 = vld [vmem:[#allocation148_spill] sm:$0xff]  ;;  %v6059_v5 = vld [vmem:[#allocation59_spill] sm:$0xff]  ;;  %v6061_v52 = vld [vmem:[#allocation53_spill] sm:$0xff]  ;;  %6142 = vst [vmem:[#allocation120_spill] sm:$0xff] %v4759_v40 }
 0x329   : > { %1483 = vmatpush.msra.mxu1 %v1432_v11  ;;  %1548 = vmatpush.msra.mxu2 %v1448_v39  ;;  %v1462_v11 = vadd.f32 %v1446_v60, %v1430_v55  ;;  %v6042_v39 = vld [vmem:[#allocation156_spill] sm:$0xff]  ;;  %v1444_v37 = vadd.f32 %v1412_v4, %v1284_v57  ;;  %v6052_v57 = vld [vmem:[#allocation46_spill] sm:$0xff]  ;;  %v6065_v6 = vld [vmem:[#allocation61_spill] sm:$0xff] }
 0x32a   : > { %1612 = vmatpush.msrb.mxu3 %v1465_v20  ;;  %v1428_v53 = vadd.f32 %v6042_v39, %v1252_v28  ;;  %v1410_v14 = vadd.f32 %v1394_v58, %v6045_v51  ;;  %v1459_v41 = vadd.f32 %v1443_v62, %v1427_v13  ;;  %v6048_v28 = vld [vmem:[#allocation49_spill] sm:$0xff]  ;;  %v6060_v34 = vld [vmem:[#allocation48_spill] sm:$0xff]  ;;  %v6062_v36 = vld [vmem:[#allocation50_spill] sm:$0xff] }
 0x32b   : > { %1484 = vmatpush.msra.mxu1 %v1431_v16  ;;  %1549 = vmatpush.msra.mxu2 %v1447_v0  ;;  %v1426_v16 = vadd.f32 %v1362_v23, %v1250_v43  ;;  %v6063_v4 = vld [vmem:[#allocation36_spill] sm:$0xff]  ;;  %v6067_v1 = vld [vmem:[#allocation66_spill] sm:$0xff]  ;;  %v6071_v43 = vld [vmem:[#allocation65_spill] sm:$0xff] }
 0x32c   : > { %1613 = vmatpush.msrb.mxu3 %v1464_v3  ;;  %v1460_v20 = vadd.f32 %v1444_v37, %v1428_v53  ;;  %v1442_v0 = vadd.f32 %v1410_v14, %v1282_v44  ;;  %v6053_v3 = vld [vmem:[#allocation42_spill] sm:$0xff]  ;;  %v6064_v58 = vld [vmem:[#allocation56_spill] sm:$0xff]  ;;  %v6072_v32 = vld [vmem:[#allocation43_spill] sm:$0xff] }
 0x32d   : > { %1485 = vmatpush.msra.mxu1 %v1430_v55  ;;  %1550 = vmatpush.msra.mxu2 %v1446_v60  ;;  %v6055_v55 = vld [vmem:[#allocation58_spill] sm:$0xff]  ;;  %v6056_v60 = vld [vmem:[#allocation55_spill] sm:$0xff]  ;;  %v6070_v10 = vld [vmem:[#allocation68_spill] sm:$0xff] }
 0x32e   : > { %1614 = vmatpush.msrb.mxu3 %v1463_v18  ;;  %v1458_v31 = vadd.f32 %v1442_v0, %v1426_v16  ;;  %v6066_v18 = vld [vmem:[#allocation44_spill] sm:$0xff]  ;;  %v6075_v8 = vld [vmem:[#allocation82_spill] sm:$0xff]  ;;  %v6077_v44 = vld [vmem:[#allocation69_spill] sm:$0xff] }
 0x32f   : > { %1486 = vmatpush.msra.mxu1 %v1429_v49  ;;  %1551 = vmatpush.msra.mxu2 %v1445_v2  ;;  %v6068_v49 = vld [vmem:[#allocation63_spill] sm:$0xff]  ;;  %v6069_v2 = vld [vmem:[#allocation45_spill] sm:$0xff]  ;;  %v6073_v54 = vld [vmem:[#allocation64_spill] sm:$0xff] }
 0x330   : > { %1615 = vmatpush.msrb.mxu3 %v1462_v11  ;;  %v6074_v21 = vld [vmem:[#allocation60_spill] sm:$0xff]  ;;  %v6076_v45 = vld [vmem:[#allocation74_spill] sm:$0xff]  ;;  %v6078_v11 = vld [vmem:[#allocation85_spill] sm:$0xff] }
 0x331   : > { %1487 = vmatpush.msra.mxu1 %v1428_v53  ;;  %1552 = vmatpush.msra.mxu2 %v1444_v37  ;;  %v6079_v39 = vld [vmem:[#allocation114_spill] sm:$0xff]  ;;  %v6080_v53 = vld [vmem:[#allocation72_spill] sm:$0xff]  ;;  %v6081_v37 = vld [vmem:[#allocation77_spill] sm:$0xff] }
 0x332   : > { %1616 = vmatpush.msrb.mxu3 %v1461_v30  ;;  %v6082_v38 = vld [vmem:[#allocation113_spill] sm:$0xff]  ;;  %v6083_v26 = vld [vmem:[#allocation67_spill] sm:$0xff]  ;;  %v6084_v23 = vld [vmem:[#allocation78_spill] sm:$0xff] }
 0x333   : > { %1488 = vmatpush.msra.mxu1 %v1427_v13  ;;  %1553 = vmatpush.msra.mxu2 %v1443_v62  ;;  %v6085_v30 = vld [vmem:[#allocation108_spill] sm:$0xff]  ;;  %v6086_v13 = vld [vmem:[#allocation70_spill] sm:$0xff]  ;;  %v6087_v62 = vld [vmem:[#allocation83_spill] sm:$0xff] }
 0x334   : > { %1617 = vmatpush.msrb.mxu3 %v1460_v20  ;;  %v6088_v51 = vld [vmem:[#allocation107_spill] sm:$0xff]  ;;  %v6089_v14 = vld [vmem:[#allocation112_spill] sm:$0xff] }
 0x335   : > { %1489 = vmatpush.msra.mxu1 %v1426_v16  ;;  %1554 = vmatpush.msra.mxu2 %v1442_v0  ;;  %v6090_v20 = vld [vmem:[#allocation80_spill] sm:$0xff]  ;;  %v6091_v16 = vld [vmem:[#allocation109_spill] sm:$0xff]  ;;  %v6092_v0 = vld [vmem:[#allocation115_spill] sm:$0xff] }
 0x336   : > { %1618 = vmatpush.msrb.mxu3 %v1459_v41  ;;  %1490 = vmatmul.f32.vlgmr.msra.gmra.mxu1 %v6046_v29  ;;  %v6093_v41 = vld [vmem:[#allocation116_spill] sm:$0xff] }
 0x337   : > { %1555 = vmatmul.f32.vlgmr.msra.gmra.mxu2 %v6047_v15  ;;  %v6125_v61 = vld [vmem:[#allocation88_spill] sm:$0xff] }
 0x338   : > { %1619 = vmatpush.msrb.mxu3 %v1458_v31 }
 0x339   : > { %1620 = vmatmul.f32.vlgmr.msrb.gmra.mxu3 %v6048_v28 }
 0x33e   : > { %1493 = vmatmul.f32.gmra.mxu1 %v6049_v35 }
 0x33f   : > { %1558 = vmatmul.f32.gmra.mxu2 %v6050_v56 }
 0x341   : > { %1623 = vmatmul.f32.gmra.mxu3 %v6051_v59 }
 0x346   : > { %1496 = vmatmul.f32.gmra.mxu1 %v6052_v57 }
 0x347   : > { %1561 = vmatmul.f32.gmra.mxu2 %v6053_v3  ;;  %v6117_v3 = vld [vmem:[#allocation137_spill] sm:$0xff] }
 0x348   : > { %v1805_v57 = vmul.f32 0.041666668, %v6117_v3 }
 0x349   : > { %1626 = vmatmul.f32.gmra.mxu3 %v6054_v63 }
 0x34e   : > { %1499 = vmatmul.f32.gmra.mxu1 %v6055_v55  ;;  %v6116_v55 = vld [vmem:[#allocation136_spill] sm:$0xff] }
 0x34f   : > { %1564 = vmatmul.f32.gmra.mxu2 %v6056_v60  ;;  %v1741_v63 = vmul.f32 0.041666668, %v6116_v55 }
 0x351   : > { %1629 = vmatmul.f32.gmra.mxu3 %v6057_v46  ;;  %v6115_v46 = vld [vmem:[#allocation87_spill] sm:$0xff] }
 0x352   : > { %v1725_v60 = vmul.f32 0.16666667, %v6115_v46 }
 0x356   : > { %1502 = vmatmul.f32.gmra.mxu1 %v6058_v12 }
 0x357   : > { %1567 = vmatmul.f32.gmra.mxu2 %v6059_v5 }
 0x359   : > { %1632 = vmatmul.f32.gmra.mxu3 %v6060_v34 }
 0x35e   : > { %1505 = vmatmul.f32.gmra.mxu1 %v6061_v52 }
 0x35f   : > { %1570 = vmatmul.f32.gmra.mxu2 %v6062_v36 }
 0x361   : > { %1635 = vmatmul.f32.gmra.mxu3 %v6063_v4 }
 0x366   : > { %1508 = vmatmul.f32.gmra.mxu1 %v6064_v58 }
 0x367   : > { %1573 = vmatmul.f32.gmra.mxu2 %v6065_v6 }
 0x369   : > { %1638 = vmatmul.f32.gmra.mxu3 %v6066_v18 }
 0x36e   : > { %1511 = vmatmul.f32.gmra.mxu1 %v6067_v1 }
 0x36f   : > { %1576 = vmatmul.f32.gmra.mxu2 %v6068_v49 }
 0x371   : > { %1641 = vmatmul.f32.gmra.mxu3 %v6069_v2 }
 0x376   : > { %1514 = vmatmul.f32.gmra.mxu1 %v6070_v10 }
 0x377   : > { %1579 = vmatmul.f32.gmra.mxu2 %v6071_v43 }
 0x379   : > { %1644 = vmatmul.f32.gmra.mxu3 %v6072_v32 }
 0x37e   : > { %1517 = vmatmul.f32.gmra.mxu1 %v6073_v54 }
 0x37f   : > { %1582 = vmatmul.f32.gmra.mxu2 %v6074_v21 }
 0x381   : > { %1647 = vmatmul.f32.gmra.mxu3 %v6075_v8 }
 0x386   : > { %1520 = vmatmul.f32.gmra.mxu1 %v6076_v45 }
 0x387   : > { %1585 = vmatmul.f32.gmra.mxu2 %v6077_v44 }
 0x389   : > { %1650 = vmatmul.f32.gmra.mxu3 %v6078_v11 }
 0x38e   : > { %1523 = vmatmul.f32.gmra.mxu1 %v6079_v39 }
 0x38f   : > { %1588 = vmatmul.f32.gmra.mxu2 %v6080_v53 }
 0x391   : > { %1653 = vmatmul.f32.gmra.mxu3 %v6081_v37 }
 0x396   : > { %1526 = vmatmul.f32.gmra.mxu1 %v6082_v38 }
 0x397   : > { %1591 = vmatmul.f32.gmra.mxu2 %v6083_v26 }
 0x399   : > { %1656 = vmatmul.f32.gmra.mxu3 %v6084_v23 }
 0x39e   : > { %1529 = vmatmul.f32.gmra.mxu1 %v6085_v30 }
 0x39f   : > { %1594 = vmatmul.f32.gmra.mxu2 %v6086_v13 }
 0x3a1   : > { %1659 = vmatmul.f32.gmra.mxu3 %v6087_v62 }
 0x3a6   : > { %1532 = vmatmul.f32.gmra.mxu1 %v6088_v51 }
 0x3a7   : > { %1597 = vmatmul.f32.gmra.mxu2 %v6089_v14 }
 0x3a9   : > { %1662 = vmatmul.f32.gmra.mxu3 %v6090_v20 }
 0x3ae   : > { %1535 = vmatmul.f32.gmra.mxu1 %v6091_v16 }
 0x3af   : > { %1600 = vmatmul.f32.gmra.mxu2 %v6092_v0 }
 0x3b1   : > { %1665 = vmatmul.f32.gmra.mxu3 %v6093_v41 }
 0x3b3   : > { %v4623_v31 = vpop.f32.mrf.mxu1 }
 0x3b4   : > { %6094 = vst [vmem:[#allocation97_spill] sm:$0xff] %v4623_v31  ;;  %v6129_v31 = vld [vmem:[#allocation89_spill] sm:$0xff] }
 0x3b5   : > { %v1727_v17 = vmul.f32 0.16666667, %v6129_v31 }
 0x3ba   : > { %v4625_v23 = vpop.f32.mrf.mxu2 }
 0x3bb   : > { %6095 = vst [vmem:[#allocation100_spill] sm:$0xff] %v4625_v23  ;;  %v4627_v30 = vpop.f32.mrf.mxu1  ;;  %v1726_v23 = vmul.f32 0.16666667, %v6125_v61  ;;  %v1772_v61 = vmul.f32 0.008333334, %v5998_v47 }
 0x3bc   : > { %6096 = vst [vmem:[#allocation93_spill] sm:$0xff] %v4627_v30  ;;  %v4629_v13 = vpop.f32.mrf.mxu3 }
 0x3bd   : > { %6097 = vst [vmem:[#allocation106_spill] sm:$0xff] %v4629_v13 }
 0x3c2   : > { %v4631_v62 = vpop.f32.mrf.mxu2 }
 0x3c3   : > { %6098 = vst [vmem:[#allocation103_spill] sm:$0xff] %v4631_v62  ;;  %v4633_v51 = vpop.f32.mrf.mxu1  ;;  %v4721_v62 = vld [vmem:[%s3065_s24 + $0x50] sm:$0xff] }
 0x3c4   : > { %6099 = vst [vmem:[#allocation98_spill] sm:$0xff] %v4633_v51  ;;  %v4635_v14 = vpop.f32.mrf.mxu3 }
 0x3c5   : > { %6100 = vst [vmem:[#allocation101_spill] sm:$0xff] %v4635_v14  ;;  %v6131_v14 = vld [vmem:[#allocation21_spill] sm:$0xff] }
 0x3c6   : > { %6130 = vst [vmem:[#allocation163_spill] sm:$0xff] %v4721_v62 }
 0x3ca   : > { %v4637_v20 = vpop.f32.mrf.mxu2 }
 0x3cb   : > { %6101 = vst [vmem:[#allocation104_spill] sm:$0xff] %v4637_v20  ;;  %v4639_v16 = vpop.f32.mrf.mxu1  ;;  %v1822_v20 = vmul.f32 0.008333334, %v5997_v19  ;;  %v6137_v19 = vld [vmem:[#allocation25_spill] sm:$0xff] }
 0x3cc   : > { %6102 = vst [vmem:[#allocation110_spill] sm:$0xff] %v4639_v16  ;;  %v4641_v0 = vpop.f32.mrf.mxu3  ;;  %v1776_v51 = vmul.f32 0.008333334, %v6137_v19  ;;  %v6144_v19 = vld [vmem:[#allocation27_spill] sm:$0xff] }
 0x3cd   : > { %6103 = vst [vmem:[#allocation111_spill] sm:$0xff] %v4641_v0  ;;  %v4745_v0 = vld [vmem:[%s3065_s24 + $0x58] sm:$0xff] }
 0x3ce   : > { %6136 = vst [vmem:[#allocation124_spill] sm:$0xff] %v4745_v0 }
 0x3d2   : > { %v4643_v41 = vpop.f32.mrf.mxu2 }
 0x3d3   : > { %6104 = vst [vmem:[#allocation105_spill] sm:$0xff] %v4643_v41  ;;  %v4645_v26 = vpop.f32.mrf.mxu1  ;;  %v1777_v41 = vmul.f32 0.008333334, %v6144_v19  ;;  %v4781_v19 = vld [vmem:[%s3091_s7 + $0x60] sm:$0xff] }
 0x3d4   : > { %6105 = vst [vmem:[#allocation95_spill] sm:$0xff] %v4645_v26  ;;  %v4647_v38 = vpop.f32.mrf.mxu3 }
 0x3d5   : > { %6106 = vst [vmem:[#allocation164_spill] sm:$0xff] %v4647_v38  ;;  %v6145_v38 = vld [vmem:[#allocation94_spill] sm:$0xff] }
 0x3d6   : > { %v1730_v16 = vmul.f32 0.16666667, %v6145_v38  ;;  %6150 = vst [vmem:[#allocation161_spill] sm:$0xff] %v4781_v19  ;;  %v1809_v38 = vmul.f32 0.041666668, %v4781_v19 }
 0x3da   : > { %v4649_v37 = vpop.f32.mrf.mxu2 }
 0x3db   : > { %6107 = vst [vmem:[#allocation132_spill] sm:$0xff] %v4649_v37  ;;  %v4651_v53 = vpop.f32.mrf.mxu1  ;;  %v4766_v37 = vld [vmem:[%s3065_s24 + $0x68] sm:$0xff] }
 0x3dc   : > { %6108 = vst [vmem:[#allocation133_spill] sm:$0xff] %v4651_v53  ;;  %v4653_v39 = vpop.f32.mrf.mxu3  ;;  %v6159_v53 = vld [vmem:[#allocation81_spill] sm:$0xff] }
 0x3dd   : > { %6109 = vst [vmem:[#allocation135_spill] sm:$0xff] %v4653_v39  ;;  %v1722_v42 = vmul.f32 0.16666667, %v6159_v53 }
 0x3de   : > { %6146 = vst [vmem:[#allocation121_spill] sm:$0xff] %v4766_v37 }
 0x3e2   : > { %v4655_v11 = vpop.f32.mrf.mxu2 }
 0x3e3   : > { %6110 = vst [vmem:[#allocation129_spill] sm:$0xff] %v4655_v11  ;;  %v4657_v44 = vpop.f32.mrf.mxu1 }
 0x3e4   : > { %6111 = vst [vmem:[#allocation130_spill] sm:$0xff] %v4657_v44  ;;  %v4659_v45 = vpop.f32.mrf.mxu3  ;;  %v6161_v44 = vld [vmem:[#allocation33_spill] sm:$0xff] }
 0x3e5   : > { %6112 = vst [vmem:[#allocation134_spill] sm:$0xff] %v4659_v45  ;;  %v4798_v45 = vld [vmem:[%s3091_s7 + $0x70] sm:$0xff] }
 0x3e6   : > { %6158 = vst [vmem:[#allocation122_spill] sm:$0xff] %v4798_v45 }
 0x3ea   : > { %v4661_v8 = vpop.f32.mrf.mxu2 }
 0x3eb   : > { %6113 = vst [vmem:[#allocation126_spill] sm:$0xff] %v4661_v8  ;;  %v4663_v21 = vpop.f32.mrf.mxu1  ;;  %v6160_v8 = vld [vmem:[#allocation151_spill] sm:$0xff] }
 0x3ec   : > { %v4665_v54 = vpop.f32.mrf.mxu3 }
 0x3ed   : > { %6114 = vst [vmem:[#allocation127_spill] sm:$0xff] %v4665_v54  ;;  %v1738_v54 = vmul.f32 0.041666668, %v6160_v8 }
 0x3f2   : > { %v4667_v32 = vpop.f32.mrf.mxu2 }
 0x3f3   : > { %v1515_v43 = vpop.f32.mrf.mxu1 }
 0x3f4   : > { %v4669_v10 = vpop.f32.mrf.mxu3 }
 0x3fa   : > { %v1580_v2 = vpop.f32.mrf.mxu2 }
 0x3fb   : > { %v1677_v49 = vsub.f32 %v1515_v43, %v1580_v2  ;;  %v4671_v1 = vpop.f32.mrf.mxu1 }
 0x3fc   : > { %v1645_v18 = vpop.f32.mrf.mxu3 }
 0x3fd   : > { %v1693_v6 = vsub.f32 %v1645_v18, %v1515_v43  ;;  %v6118_v18 = vld [vmem:[#allocation28_spill] sm:$0xff]  ;;  %v6119_v43 = vld [vmem:[#allocation19_spill] sm:$0xff] }
 0x3fe   : > { %v1773_v59 = vmul.f32 0.008333334, %v6119_v43 }
 0x3ff   : > { %v1709_v58 = vsub.f32 %v1693_v6, %v1580_v2  ;;  %v1821_v6 = vmul.f32 0.008333334, %v6118_v18  ;;  %v1757_v2 = vadd.f32 %v1741_v63, %v1725_v60  ;;  %v6123_v18 = vld [vmem:[#allocation86_spill] sm:$0xff] }
 0x401   : > { %v1837_v35 = vadd.f32 %v1821_v6, %v1805_v57  ;;  %v1789_v29 = vadd.f32 %v1773_v59, %v1757_v2  ;;  %v1724_v57 = vmul.f32 0.16666667, %v6123_v18  ;;  %v6124_v6 = vld [vmem:[#allocation157_spill] sm:$0xff]  ;;  %v4712_v59 = vld [vmem:[%s3065_s24 + $0x48] sm:$0xff]  ;;  %v6128_v2 = vld [vmem:[#allocation154_spill] sm:$0xff] }
 0x402   : > { %v4673_v4 = vpop.f32.mrf.mxu2  ;;  %v1740_v43 = vmul.f32 0.041666668, %v6124_v6  ;;  %6126 = vst [vmem:[#allocation96_spill] sm:$0xff] %v4712_v59  ;;  %v1739_v13 = vmul.f32 0.041666668, %v6128_v2  ;;  %v4730_v2 = vld [vmem:[%s3091_s7 + $0x48] sm:$0xff] }
 0x403   : > { %v4675_v36 = vpop.f32.mrf.mxu1  ;;  %v4696_v46 = vadd.f32 %v1837_v35, %v1709_v58  ;;  %v4698_v55 = vadd.f32 %v1789_v29, %v1677_v49  ;;  %v1742_v29 = vmul.f32 0.041666668, %v4712_v59  ;;  %v6127_v58 = vld [vmem:[#allocation84_spill] sm:$0xff]  ;;  %v1743_v6 = vmul.f32 0.041666668, %v4721_v62  ;;  %6133 = vst [vmem:[#allocation131_spill] sm:$0xff] %v4730_v2 }
 0x404   : > { %v4677_v52 = vpop.f32.mrf.mxu3  ;;  %v1723_v49 = vmul.f32 0.16666667, %v6127_v58  ;;  %v1756_v18 = vadd.f32 %v1740_v43, %v1724_v57  ;;  %v1774_v59 = vmul.f32 0.008333334, %v6131_v14  ;;  %v6132_v58 = vld [vmem:[#allocation23_spill] sm:$0xff]  ;;  %v6134_v57 = vld [vmem:[#allocation90_spill] sm:$0xff] }
 0x405   : > { %6120 = vst [vmem:[#allocation138_spill] sm:$0xff] %v4696_v46  ;;  %v4702_v3 = vadd.f32 %v4696_v46, %v4698_v55  ;;  %v1775_v24 = vmul.f32 0.008333334, %v6132_v58  ;;  %v1806_v31 = vmul.f32 0.041666668, %v4730_v2  ;;  %v1759_v43 = vadd.f32 %v1743_v6, %v1727_v17  ;;  %v6143_v46 = vld [vmem:[#allocation34_spill] sm:$0xff] }
 0x406   : > { %6121 = vst [vmem:[#allocation139_spill] sm:$0xff] %v4698_v55  ;;  %v4734_v62 = vadd.f32 %v1739_v13, %v1723_v49  ;;  %v1728_v47 = vmul.f32 0.16666667, %v6134_v57  ;;  %v1823_v58 = vmul.f32 0.008333334, %v5996_v9  ;;  %v4750_v13 = vld [vmem:[%s3091_s7 + $0x58] sm:$0xff]  ;;  %v4753_v49 = vadd.f32 %v1772_v61, %v1756_v18 }
 0x407   : > { %6122 = vst [vmem:[#allocation91_spill] sm:$0xff] %v4702_v3  ;;  %v1758_v3 = vadd.f32 %v1742_v29, %v1726_v23  ;;  %v4740_v29 = vld [vmem:[%s3091_s7 + $0x50] sm:$0xff]  ;;  %v1744_v2 = vmul.f32 0.041666668, %v4745_v0  ;;  %v1808_v17 = vmul.f32 0.041666668, %v4750_v13  ;;  %v4769_v18 = vadd.f32 %v1822_v20, %v1806_v31 }
 0x408   : > { %6135 = vst [vmem:[#allocation123_spill] sm:$0xff] %v4740_v29  ;;  %v1807_v14 = vmul.f32 0.041666668, %v4740_v29  ;;  %v6141_v57 = vld [vmem:[#allocation92_spill] sm:$0xff]  ;;  %v1745_v9 = vmul.f32 0.041666668, %v4759_v40 }
 0x409   : > { %6138 = vst [vmem:[#allocation128_spill] sm:$0xff] %v4750_v13  ;;  %v4755_v6 = vadd.f32 %v1774_v59, %v1758_v3  ;;  %v1729_v29 = vmul.f32 0.16666667, %v6141_v57  ;;  %v1824_v0 = vmul.f32 0.008333334, %v6143_v46  ;;  %v4771_v3 = vadd.f32 %v1775_v24, %v1759_v43  ;;  %v6148_v13 = vld [vmem:[#allocation102_spill] sm:$0xff] }
 0x40a   : > { %v4679_v34 = vpop.f32.mrf.mxu2  ;;  %6139 = vst [vmem:[#allocation159_spill] sm:$0xff] %v4753_v49  ;;  %v1746_v61 = vmul.f32 0.041666668, %v4766_v37  ;;  %v1731_v40 = vmul.f32 0.16666667, %v6148_v13  ;;  %v4777_v57 = vld [vmem:[%s3065_s24 + $0x70] sm:$0xff]  ;;  %v1760_v25 = vadd.f32 %v1744_v2, %v1728_v47 }
 0x40b   : > { %v4681_v5 = vpop.f32.mrf.mxu1  ;;  %6140 = vst [vmem:[#allocation140_spill] sm:$0xff] %v4755_v6  ;;  %v1747_v46 = vmul.f32 0.041666668, %v4777_v57  ;;  %v6151_v37 = vld [vmem:[#allocation99_spill] sm:$0xff]  ;;  %v4786_v31 = vld [vmem:[%s3065_s24 + $0x78] sm:$0xff]  ;;  %v1761_v26 = vadd.f32 %v1745_v9, %v1729_v29  ;;  %v6154_v13 = vld [vmem:[#allocation29_spill] sm:$0xff]  ;;  %v4819_v8 = vadd.f32 %v1824_v0, %v1808_v17 }
 0x40c   : > { %v4683_v12 = vpop.f32.mrf.mxu3  ;;  %6147 = vst [vmem:[#allocation125_spill] sm:$0xff] %v4769_v18  ;;  %v1732_v20 = vmul.f32 0.16666667, %v6151_v37  ;;  %v1748_v24 = vmul.f32 0.041666668, %v4786_v31  ;;  %v6153_v43 = vld [vmem:[#allocation35_spill] sm:$0xff]  ;;  %v1762_v47 = vadd.f32 %v1746_v61, %v1730_v16 }
 0x40d   : > { %6149 = vst [vmem:[#allocation155_spill] sm:$0xff] %v4777_v57  ;;  %v1825_v39 = vmul.f32 0.008333334, %v6153_v43  ;;  %v1778_v49 = vmul.f32 0.008333334, %v6154_v13  ;;  %v4792_v57 = vld [vmem:[%s3091_s7 + $0x68] sm:$0xff]  ;;  %v1763_v9 = vadd.f32 %v1747_v46, %v1731_v40 }
 0x40e   : > { %6152 = vst [vmem:[#allocation117_spill] sm:$0xff] %v4786_v31  ;;  %v1810_v11 = vmul.f32 0.041666668, %v4792_v57  ;;  %v6156_v18 = vld [vmem:[#allocation15_spill] sm:$0xff]  ;;  %v1811_v31 = vmul.f32 0.041666668, %v4798_v45  ;;  %v4811_v45 = vadd.f32 %v1776_v51, %v1760_v25 }
 0x40f   : > { %6155 = vst [vmem:[#allocation118_spill] sm:$0xff] %v4792_v57  ;;  %v1771_v19 = vmul.f32 0.008333334, %v6156_v18  ;;  %v6157_v2 = vld [vmem:[#allocation31_spill] sm:$0xff]  ;;  %v1826_v43 = vmul.f32 0.008333334, %v5995_v7  ;;  %v1764_v57 = vadd.f32 %v1748_v24, %v1732_v20  ;;  %v4813_v7 = vadd.f32 %v1823_v58, %v1807_v14 }
 0x410   : > { %v1779_v37 = vmul.f32 0.008333334, %v6157_v2  ;;  %v1827_v13 = vmul.f32 0.008333334, %v5993_v22  ;;  %v1780_v18 = vmul.f32 0.008333334, %v6161_v44  ;;  %v1793_v22 = vadd.f32 %v1777_v41, %v1761_v26 }
 0x411   : > { %v4807_v16 = vld [vmem:[%s3091_s7 + $0x78] sm:$0xff]  ;;  %v6163_v2 = vld [vmem:[#allocation41_spill] sm:$0xff]  ;;  %6164 = vst [vmem:[#allocation160_spill] sm:$0xff] %v4813_v7  ;;  %v1804_v40 = vmul.f32 0.041666668, %v4499_v48  ;;  %v4817_v53 = vadd.f32 %v1825_v39, %v1809_v38  ;;  %v4822_v20 = vadd.f32 %v1771_v19, %v4734_v62  ;;  %v1794_v24 = vadd.f32 %v1778_v49, %v1762_v47  ;;  %v6166_v38 = vld [vmem:[#allocation79_spill] sm:$0xff] }
 0x412   : > { %v4690_v56 = vpop.f32.mrf.mxu2  ;;  %6162 = vst [vmem:[#allocation152_spill] sm:$0xff] %v4807_v16  ;;  %v1812_v61 = vmul.f32 0.041666668, %v4807_v16  ;;  %v1828_v6 = vmul.f32 0.008333334, %v6163_v2  ;;  %v1842_v16 = vadd.f32 %v1826_v43, %v1810_v11  ;;  %v1754_v44 = vadd.f32 %v1738_v54, %v1722_v42  ;;  %v6165_v2 = vld [vmem:[#allocation13_spill] sm:$0xff] }
 0x413   : > { %v4692_v28 = vpop.f32.mrf.mxu1  ;;  %v1820_v46 = vmul.f32 0.008333334, %v5999_v27  ;;  %v1770_v25 = vmul.f32 0.008333334, %v6165_v2  ;;  %v1795_v51 = vadd.f32 %v1779_v37, %v1763_v9  ;;  %v1796_v14 = vadd.f32 %v1780_v18, %v1764_v57  ;;  %v6167_v41 = vld [vmem:[#allocation144_spill] sm:$0xff]  ;;  %v6168_v42 = vld [vmem:[#allocation11_spill] sm:$0xff] }
 0x414   : > { %v4694_v15 = vpop.f32.mrf.mxu3  ;;  %v1844_v58 = vadd.f32 %v1828_v6, %v1812_v61  ;;  %v1843_v7 = vadd.f32 %v1827_v13, %v1811_v31  ;;  %v1721_v0 = vmul.f32 0.16666667, %v6166_v38  ;;  %v1737_v19 = vmul.f32 0.041666668, %v6167_v41  ;;  %v6169_v6 = vld [vmem:[#allocation76_spill] sm:$0xff]  ;;  %v6170_v47 = vld [vmem:[#allocation143_spill] sm:$0xff] }
 0x415   : > { %v4826_v39 = vadd.f32 %v1820_v46, %v1804_v40  ;;  %v1769_v54 = vmul.f32 0.008333334, %v6168_v42  ;;  %v1803_v37 = vmul.f32 0.041666668, %v4510_v50  ;;  %v4835_v17 = vadd.f32 %v1770_v25, %v1754_v44  ;;  %v6172_v41 = vld [vmem:[#allocation73_spill] sm:$0xff] }
 0x416   : > { %v1819_v49 = vmul.f32 0.008333334, %v6000_v33  ;;  %v1720_v18 = vmul.f32 0.16666667, %v6169_v6  ;;  %v1736_v9 = vmul.f32 0.041666668, %v6170_v47  ;;  %v1753_v61 = vadd.f32 %v1737_v19, %v1721_v0 }
 0x417   : > { %v1719_v33 = vmul.f32 0.16666667, %v6172_v41  ;;  %v6179_v47 = vld [vmem:[#allocation142_spill] sm:$0xff] }
 0x41a   : > { %v4704_v63 = vpop.f32.mrf.mxu2 }
 0x41b   : > { %v4715_v35 = vpop.f32.mrf.mxu1  ;;  %v1681_v44 = vsub.f32 %v4692_v28, %v4704_v63 }
 0x41c   : > { %v4706_v60 = vpop.f32.mrf.mxu3 }
 0x41d   : > { %v1697_v50 = vsub.f32 %v4706_v60, %v4692_v28  ;;  %v6173_v60 = vld [vmem:[#allocation141_spill] sm:$0xff]  ;;  %v1752_v28 = vadd.f32 %v1736_v9, %v1720_v18  ;;  %v1692_v9 = vsub.f32 %v4669_v10, %v4663_v21 }
 0x422   : > { %v4726_v30 = vpop.f32.mrf.mxu2 }
 0x423   : > { %v4773_v59 = vpop.f32.mrf.mxu1  ;;  %v1682_v31 = vsub.f32 %v4715_v35, %v4726_v30 }
 0x424   : > { %v4737_v23 = vpop.f32.mrf.mxu3 }
 0x425   : > { %v1698_v57 = vsub.f32 %v4737_v23, %v4715_v35  ;;  %v6171_v23 = vld [vmem:[#allocation10_spill] sm:$0xff]  ;;  %v1696_v35 = vsub.f32 %v4694_v15, %v4681_v5  ;;  %v1858_v0 = vadd.f32 %v1794_v24, %v1682_v31  ;;  %v6174_v15 = vld [vmem:[#allocation9_spill] sm:$0xff] }
 0x426   : > { %v1768_v40 = vmul.f32 0.008333334, %v6171_v23 }
 0x42a   : > { %v1598_v55 = vpop.f32.mrf.mxu2 }
 0x42b   : > { %v1536_v48 = vpop.f32.mrf.mxu1  ;;  %v1683_v62 = vsub.f32 %v4773_v59, %v1598_v55 }
 0x42c   : > { %v1663_v29 = vpop.f32.mrf.mxu3 }
 0x42d   : > { %v1699_v27 = vsub.f32 %v1663_v29, %v4773_v59  ;;  %v1859_v46 = vadd.f32 %v1795_v51, %v1683_v62  ;;  %v1695_v51 = vsub.f32 %v4683_v12, %v4675_v36 }
 0x42f   : > { %v1715_v29 = vsub.f32 %v1699_v27, %v1598_v55  ;;  %v1735_v27 = vmul.f32 0.041666668, %v6173_v60  ;;  %v1680_v55 = vsub.f32 %v4681_v5, %v4690_v56  ;;  %v6175_v5 = vld [vmem:[#allocation75_spill] sm:$0xff]  ;;  %v1711_v31 = vsub.f32 %v1695_v51, %v4679_v34 }
 0x430   : > { %v1718_v24 = vmul.f32 0.16666667, %v6175_v5 }
 0x431   : > { %v1875_v62 = vadd.f32 %v1843_v7, %v1715_v29  ;;  %v1678_v7 = vsub.f32 %v4671_v1, %v4673_v4  ;;  %v6180_v29 = vld [vmem:[#allocation140_spill] sm:$0xff] }
 0x432   : > { %v1601_v26 = vpop.f32.mrf.mxu2 }
 0x433   : > { %v1684_v11 = vsub.f32 %v1536_v48, %v1601_v26 }
 0x434   : > { %v1666_v13 = vpop.f32.mrf.mxu3 }
 0x435   : > { %v1860_v43 = vadd.f32 %v1796_v14, %v1684_v11  ;;  %v1700_v59 = vsub.f32 %v1666_v13, %v1536_v48  ;;  %v1714_v14 = vsub.f32 %v1698_v57, %v4726_v30  ;;  %v4851_v48 = vadd.f32 %v1819_v49, %v1803_v37 }
 0x436   : > { %v1767_v11 = vmul.f32 0.008333334, %v6174_v15  ;;  %v1679_v30 = vsub.f32 %v4675_v36, %v4679_v34  ;;  %v1857_v37 = vadd.f32 %v1793_v22, %v1681_v44  ;;  %v1712_v13 = vsub.f32 %v1696_v35, %v4690_v56  ;;  %v6176_v36 = vld [vmem:[#allocation145_spill] sm:$0xff]  ;;  %v6177_v56 = vld [vmem:[#allocation8_spill] sm:$0xff]  ;;  %v6181_v44 = vld [vmem:[#allocation7_spill] sm:$0xff] }
 0x437   : > { %v1716_v25 = vsub.f32 %v1700_v59, %v1601_v26  ;;  %1893 = vmatpush.msrb.mxu0 %v1860_v43  ;;  %v1713_v26 = vsub.f32 %v1697_v50, %v4704_v63  ;;  %v1874_v12 = vadd.f32 %v1842_v16, %v1714_v14  ;;  %v4866_v49 = vadd.f32 %v1769_v54, %v1753_v61  ;;  %v6183_v35 = vld [vmem:[#allocation127_spill] sm:$0xff]  ;;  %v6184_v14 = vld [vmem:[#allocation160_spill] sm:$0xff] }
 0x438   : > { %v1856_v63 = vadd.f32 %v4811_v45, %v1680_v55  ;;  %v1751_v22 = vadd.f32 %v1735_v27, %v1719_v33  ;;  %v1734_v18 = vmul.f32 0.041666668, %v6176_v36  ;;  %v1766_v16 = vmul.f32 0.008333334, %v6177_v56  ;;  %v6178_v45 = vld [vmem:[#allocation71_spill] sm:$0xff]  ;;  %v6186_v55 = vld [vmem:[#allocation162_spill] sm:$0xff] }
 0x439   : > { %v1876_v19 = vadd.f32 %v1844_v58, %v1716_v25  ;;  %1894 = vmatpush.msrb.mxu0 %v1859_v46  ;;  %v1694_v58 = vsub.f32 %v4677_v52, %v4671_v1  ;;  %v1873_v52 = vadd.f32 %v4817_v53, %v1713_v26  ;;  %v1855_v54 = vadd.f32 %v4771_v3, %v1679_v30  ;;  %v6182_v25 = vld [vmem:[#allocation130_spill] sm:$0xff]  ;;  %v6188_v26 = vld [vmem:[#allocation133_spill] sm:$0xff] }
 0x43a   : > { %v4876_v1 = vadd.f32 %v1768_v40, %v1752_v28  ;;  %v1717_v59 = vmul.f32 0.16666667, %v6178_v45  ;;  %v1733_v33 = vmul.f32 0.041666668, %v6179_v47  ;;  %v1890_v50 = vadd.f32 %v1874_v12, %v1858_v0  ;;  %v6194_v36 = vld [vmem:[#allocation158_spill] sm:$0xff]  ;;  %v6197_v47 = vld [vmem:[#allocation20_spill] sm:$0xff] }
 0x43b   : > { %v1892_v57 = vadd.f32 %v1876_v19, %v1860_v43  ;;  %1895 = vmatpush.msrb.mxu0 %v1858_v0  ;;  %1958 = vmatpush.msrb.mxu1 %v1876_v19  ;;  %v1891_v43 = vadd.f32 %v1875_v62, %v1859_v46  ;;  %v1710_v34 = vsub.f32 %v1694_v58, %v4673_v4  ;;  %v4888_v46 = vmul.f32 0.008333334, %v6181_v44  ;;  %v6187_v19 = vld [vmem:[#allocation22_spill] sm:$0xff]  ;;  %v6191_v58 = vld [vmem:[#allocation129_spill] sm:$0xff] }
 0x43c   : > { %v1872_v53 = vadd.f32 %v4819_v8, %v1712_v13  ;;  %v1676_v3 = vsub.f32 %v4663_v21, %v4667_v32  ;;  %v1854_v61 = vadd.f32 %v6180_v29, %v1678_v7  ;;  %v1750_v40 = vadd.f32 %v1734_v18, %v1718_v24  ;;  %v6185_v8 = vld [vmem:[#allocation126_spill] sm:$0xff]  ;;  %v6193_v7 = vld [vmem:[#allocation159_spill] sm:$0xff] }
 0x43d   : > { %1896 = vmatpush.msrb.mxu0 %v1857_v37  ;;  %1959 = vmatpush.msrb.mxu1 %v1875_v62  ;;  %v1691_v10 = vsub.f32 %v6183_v35, %v6182_v25  ;;  %v1889_v4 = vadd.f32 %v1873_v52, %v1857_v37  ;;  %v1871_v60 = vadd.f32 %v6184_v14, %v1711_v31  ;;  %v1802_v0 = vmul.f32 0.041666668, %v6186_v55  ;;  %v6189_v62 = vld [vmem:[#allocation134_spill] sm:$0xff] }
 0x43e   : > { %2023 = vmatpush.msrb.mxu2 %v1892_v57  ;;  %v4893_v27 = vadd.f32 %v1767_v11, %v1751_v22  ;;  %v1675_v21 = vsub.f32 %v6182_v25, %v6185_v8  ;;  %v1818_v28 = vmul.f32 0.008333334, %v6187_v19  ;;  %v4899_v51 = vadd.f32 %v1733_v33, %v1717_v59  ;;  %v6190_v11 = vld [vmem:[#allocation125_spill] sm:$0xff]  ;;  %v6199_v29 = vld [vmem:[#allocation110_spill] sm:$0xff] }
 0x43f   : > { %1897 = vmatpush.msrb.mxu0 %v1856_v63  ;;  %1960 = vmatpush.msrb.mxu1 %v1874_v12  ;;  %v1690_v30 = vsub.f32 %v6189_v62, %v6188_v26  ;;  %v1708_v37 = vsub.f32 %v1692_v9, %v4667_v32  ;;  %v1888_v57 = vadd.f32 %v1872_v53, %v1856_v63  ;;  %v6192_v12 = vld [vmem:[#allocation139_spill] sm:$0xff]  ;;  %v1801_v18 = vmul.f32 0.041666668, %v6194_v36  ;;  %v6198_v9 = vld [vmem:[#allocation132_spill] sm:$0xff]  ;;  %v6203_v55 = vld [vmem:[#allocation18_spill] sm:$0xff] }
 0x440   : > { %2024 = vmatpush.msrb.mxu2 %v1891_v43  ;;  %v1870_v24 = vadd.f32 %v6190_v11, %v1710_v34  ;;  %v1674_v13 = vsub.f32 %v6188_v26, %v6191_v58  ;;  %v1852_v22 = vadd.f32 %v6193_v7, %v1676_v3  ;;  %v4910_v31 = vadd.f32 %v1766_v16, %v1750_v40  ;;  %v6195_v43 = vld [vmem:[#allocation95_spill] sm:$0xff]  ;;  %v4920_v16 = vld [vmem:[%s3091_s7 + $0x8] sm:$0xff]  ;;  %v4944_v11 = vld [vmem:[%s3091_s7 + $0x10] sm:$0xff] }
 0x441   : > { %1898 = vmatpush.msrb.mxu0 %v1855_v54  ;;  %1961 = vmatpush.msrb.mxu1 %v1873_v52  ;;  %v6196_v52 = vld [vmem:[#allocation135_spill] sm:$0xff]  ;;  %v1707_v63 = vsub.f32 %v1691_v10, %v6185_v8  ;;  %v1887_v59 = vadd.f32 %v1871_v60, %v1855_v54  ;;  %v1817_v33 = vmul.f32 0.008333334, %v6197_v47  ;;  %v1673_v34 = vsub.f32 %v6195_v43, %v6198_v9  ;;  %v6200_v40 = vld [vmem:[#allocation164_spill] sm:$0xff]  ;;  %v4932_v8 = vld [vmem:[%s3091_s7 + $0x18] sm:$0xff] }
 0x442   : > { %2025 = vmatpush.msrb.mxu2 %v1890_v50  ;;  %v1689_v32 = vsub.f32 %v6196_v52, %v6195_v43  ;;  %v1851_v50 = vadd.f32 %v4822_v20, %v1675_v21  ;;  %v1798_v3 = vmul.f32 0.041666668, %v4920_v16  ;;  %v1688_v25 = vsub.f32 %v6200_v40, %v6199_v29  ;;  %v6202_v20 = vld [vmem:[#allocation138_spill] sm:$0xff]  ;;  %v6205_v26 = vld [vmem:[#allocation111_spill] sm:$0xff]  ;;  %v6209_v7 = vld [vmem:[#allocation101_spill] sm:$0xff] }
 0x443   : > { %1899 = vmatpush.msrb.mxu0 %v1854_v61  ;;  %1962 = vmatpush.msrb.mxu1 %v1872_v53  ;;  %v1834_v53 = vadd.f32 %v1818_v28, %v1802_v0  ;;  %v1706_v54 = vsub.f32 %v1690_v30, %v6191_v58  ;;  %v1886_v35 = vadd.f32 %v1870_v24, %v1854_v61  ;;  %v1800_v21 = vmul.f32 0.041666668, %v4932_v8  ;;  %v6204_v28 = vld [vmem:[#allocation98_spill] sm:$0xff]  ;;  %v6207_v58 = vld [vmem:[#allocation16_spill] sm:$0xff] }
 0x444   : > { %2026 = vmatpush.msrb.mxu2 %v1889_v4  ;;  %v1868_v10 = vadd.f32 %v4826_v39, %v1708_v37  ;;  %v6201_v4 = vld [vmem:[#allocation105_spill] sm:$0xff]  ;;  %v1816_v0 = vmul.f32 0.008333334, %v6203_v55  ;;  %v1687_v61 = vsub.f32 %v6205_v26, %v6204_v28  ;;  %v1705_v39 = vsub.f32 %v1689_v32, %v6198_v9  ;;  %v6206_v37 = vld [vmem:[#allocation104_spill] sm:$0xff]  ;;  %v6211_v32 = vld [vmem:[#allocation103_spill] sm:$0xff] }
 0x445   : > { %1900 = vmatpush.msrb.mxu0 %v6192_v12  ;;  %1963 = vmatpush.msrb.mxu1 %v1871_v60  ;;  %v1672_v14 = vsub.f32 %v6199_v29, %v6201_v4  ;;  %v1850_v60 = vadd.f32 %v4835_v17, %v1674_v13  ;;  %v1867_v62 = vadd.f32 %v4851_v48, %v1707_v63  ;;  %v1815_v13 = vmul.f32 0.008333334, %v6207_v58  ;;  %v6208_v12 = vld [vmem:[#allocation93_spill] sm:$0xff]  ;;  %v6210_v48 = vld [vmem:[#allocation91_spill] sm:$0xff]  ;;  %v6214_v29 = vld [vmem:[#allocation106_spill] sm:$0xff] }
 0x446   : > { %2027 = vmatpush.msrb.mxu2 %v1888_v57  ;;  %v1833_v30 = vadd.f32 %v1817_v33, %v1801_v18  ;;  %v1671_v57 = vsub.f32 %v6204_v28, %v6206_v37  ;;  %v1849_v17 = vadd.f32 %v4866_v49, %v1673_v34  ;;  %v1686_v36 = vsub.f32 %v6209_v7, %v6208_v12  ;;  %v6212_v33 = vld [vmem:[#allocation14_spill] sm:$0xff]  ;;  %v6213_v34 = vld [vmem:[#allocation97_spill] sm:$0xff] }
 0x447   : > { %1901 = vmatpush.msrb.mxu0 %v1852_v22  ;;  %1964 = vmatpush.msrb.mxu1 %v1870_v24  ;;  %v1799_v24 = vmul.f32 0.041666668, %v4944_v11  ;;  %v1704_v43 = vsub.f32 %v1688_v25, %v6201_v4  ;;  %v1884_v18 = vadd.f32 %v1868_v10, %v1852_v22  ;;  %v1866_v52 = vadd.f32 %v1834_v53, %v1706_v54  ;;  %v6215_v53 = vld [vmem:[#allocation100_spill] sm:$0xff]  ;;  %v4963_v4 = vld [vmem:[%s3091_s7] sm:$0xff]  ;;  %v6220_v7 = vld [vmem:[#allocation57_spill] sm:$0xff] }
 0x448   : > { %2028 = vmatpush.msrb.mxu2 %v1887_v59  ;;  %v1670_v63 = vsub.f32 %v6208_v12, %v6211_v32  ;;  %v1848_v49 = vadd.f32 %v4876_v1, %v1672_v14  ;;  %v1832_v59 = vadd.f32 %v1816_v0, %v1800_v21  ;;  %v1814_v9 = vmul.f32 0.008333334, %v6212_v33  ;;  %v6216_v14 = vld [vmem:[#allocation12_spill] sm:$0xff]  ;;  %v6219_v12 = vld [vmem:[#allocation49_spill] sm:$0xff] }
 0x449   : > { %1902 = vmatpush.msrb.mxu0 %v1851_v50  ;;  %1965 = vmatpush.msrb.mxu1 %v6202_v20  ;;  %v1685_v40 = vsub.f32 %v6214_v29, %v6213_v34  ;;  %v1703_v25 = vsub.f32 %v1687_v61, %v6206_v37  ;;  %v1865_v22 = vadd.f32 %v1833_v30, %v1705_v39  ;;  %v1797_v1 = vmul.f32 0.041666668, %v4963_v4  ;;  %v6232_v29 = vld [vmem:[#allocation53_spill] sm:$0xff] }
 0x44a   : > { %2029 = vmatpush.msrb.mxu2 %v1886_v35  ;;  %v1883_v35 = vadd.f32 %v1867_v62, %v1851_v50  ;;  %v1669_v54 = vsub.f32 %v6213_v34, %v6215_v53  ;;  %v1813_v20 = vmul.f32 0.008333334, %v6216_v14  ;;  %v1702_v21 = vsub.f32 %v1686_v36, %v6211_v32  ;;  %v6221_v36 = vld [vmem:[#allocation54_spill] sm:$0xff]  ;;  %v6231_v34 = vld [vmem:[#allocation48_spill] sm:$0xff] }
 0x44b   : > { %1903 = vmatpush.msrb.mxu0 %v1850_v60  ;;  %1966 = vmatpush.msrb.mxu1 %v1868_v10  ;;  %v1847_v10 = vadd.f32 %v4893_v27, %v1671_v57  ;;  %v1882_v0 = vadd.f32 %v1866_v52, %v1850_v60  ;;  %v1864_v28 = vadd.f32 %v1832_v59, %v1704_v43  ;;  %v6222_v43 = vld [vmem:[#allocation51_spill] sm:$0xff]  ;;  %v6226_v32 = vld [vmem:[#allocation58_spill] sm:$0xff] }
 0x44c   : > { %2030 = vmatpush.msrb.mxu2 %v6210_v48  ;;  %v1831_v50 = vadd.f32 %v1815_v13, %v1799_v24  ;;  %v1846_v26 = vadd.f32 %v4910_v31, %v1670_v63  ;;  %v1781_v61 = vadd.f32 %v4888_v46, %v4899_v51  ;;  %v1701_v27 = vsub.f32 %v1685_v40, %v6215_v53  ;;  %v6217_v31 = vld [vmem:[#allocation52_spill] sm:$0xff]  ;;  %v6223_v48 = vld [vmem:[#allocation46_spill] sm:$0xff]  ;;  %v6227_v63 = vld [vmem:[#allocation55_spill] sm:$0xff] }
 0x44d   : > { %1904 = vmatpush.msrb.mxu0 %v1849_v17  ;;  %1967 = vmatpush.msrb.mxu1 %v1867_v62  ;;  %v1881_v39 = vadd.f32 %v1865_v22, %v1849_v17  ;;  %v1830_v30 = vadd.f32 %v1814_v9, %v1798_v3  ;;  %v1880_v60 = vadd.f32 %v1864_v28, %v1848_v49  ;;  %v6218_v3 = vld [vmem:[#allocation40_spill] sm:$0xff]  ;;  %v6229_v59 = vld [vmem:[#allocation62_spill] sm:$0xff]  ;;  %v6230_v9 = vld [vmem:[#allocation59_spill] sm:$0xff] }
 0x44e   : > { %2031 = vmatpush.msrb.mxu2 %v1884_v18  ;;  %v1863_v62 = vadd.f32 %v1831_v50, %v1703_v25  ;;  %v1845_v37 = vadd.f32 %v1781_v61, %v1669_v54  ;;  %v1829_v24 = vadd.f32 %v1813_v20, %v1797_v1  ;;  %v6224_v18 = vld [vmem:[#allocation42_spill] sm:$0xff]  ;;  %v6234_v25 = vld [vmem:[#allocation36_spill] sm:$0xff]  ;;  %v6240_v1 = vld [vmem:[#allocation45_spill] sm:$0xff] }
 0x44f   : > { %1905 = vmatpush.msrb.mxu0 %v1848_v49  ;;  %1968 = vmatpush.msrb.mxu1 %v1866_v52  ;;  %v1862_v57 = vadd.f32 %v1830_v30, %v1702_v21  ;;  %v6225_v52 = vld [vmem:[#allocation38_spill] sm:$0xff]  ;;  %v6228_v49 = vld [vmem:[#allocation47_spill] sm:$0xff]  ;;  %v6237_v53 = vld [vmem:[#allocation44_spill] sm:$0xff] }
 0x450   : > { %2032 = vmatpush.msrb.mxu2 %v1883_v35  ;;  %v1879_v13 = vadd.f32 %v1863_v62, %v1847_v10  ;;  %v1861_v46 = vadd.f32 %v1829_v24, %v1701_v27  ;;  %v6233_v40 = vld [vmem:[#allocation50_spill] sm:$0xff]  ;;  %v6235_v35 = vld [vmem:[#allocation56_spill] sm:$0xff]  ;;  %v6242_v21 = vld [vmem:[#allocation65_spill] sm:$0xff] }
 0x451   : > { %1906 = vmatpush.msrb.mxu0 %v1847_v10  ;;  %1969 = vmatpush.msrb.mxu1 %v1865_v22  ;;  %v1878_v51 = vadd.f32 %v1862_v57, %v1846_v26  ;;  %v6236_v22 = vld [vmem:[#allocation61_spill] sm:$0xff]  ;;  %v6238_v54 = vld [vmem:[#allocation66_spill] sm:$0xff]  ;;  %v6239_v10 = vld [vmem:[#allocation63_spill] sm:$0xff] }
 0x452   : > { %2033 = vmatpush.msrb.mxu2 %v1882_v0  ;;  %v1877_v17 = vadd.f32 %v1861_v46, %v1845_v37  ;;  %v6241_v20 = vld [vmem:[#allocation68_spill] sm:$0xff]  ;;  %v6243_v0 = vld [vmem:[#allocation43_spill] sm:$0xff]  ;;  %v6247_v61 = vld [vmem:[#allocation74_spill] sm:$0xff] }
 0x453   : > { %1907 = vmatpush.msrb.mxu0 %v1846_v26  ;;  %1970 = vmatpush.msrb.mxu1 %v1864_v28  ;;  %v6244_v28 = vld [vmem:[#allocation64_spill] sm:$0xff]  ;;  %v6246_v26 = vld [vmem:[#allocation82_spill] sm:$0xff]  ;;  %v6248_v27 = vld [vmem:[#allocation69_spill] sm:$0xff] }
 0x454   : > { %2034 = vmatpush.msrb.mxu2 %v1881_v39  ;;  %v6245_v50 = vld [vmem:[#allocation60_spill] sm:$0xff]  ;;  %v6249_v39 = vld [vmem:[#allocation85_spill] sm:$0xff]  ;;  %v6255_v24 = vld [vmem:[#allocation78_spill] sm:$0xff] }
 0x455   : > { %1908 = vmatpush.msrb.mxu0 %v1845_v37  ;;  %1971 = vmatpush.msrb.mxu1 %v1863_v62  ;;  %v6250_v62 = vld [vmem:[#allocation114_spill] sm:$0xff]  ;;  %v6251_v30 = vld [vmem:[#allocation72_spill] sm:$0xff]  ;;  %v6252_v37 = vld [vmem:[#allocation77_spill] sm:$0xff] }
 0x456   : > { %2035 = vmatpush.msrb.mxu2 %v1880_v60  ;;  %1909 = vmatmul.f32.vlgmr.msrb.gmra.mxu0 %v6217_v31  ;;  %v6253_v60 = vld [vmem:[#allocation113_spill] sm:$0xff]  ;;  %v6256_v31 = vld [vmem:[#allocation108_spill] sm:$0xff] }
 0x457   : > { %1972 = vmatpush.msrb.mxu1 %v1862_v57  ;;  %v6254_v57 = vld [vmem:[#allocation67_spill] sm:$0xff] }
 0x458   : > { %2036 = vmatpush.msrb.mxu2 %v1879_v13  ;;  %v6257_v13 = vld [vmem:[#allocation70_spill] sm:$0xff] }
 0x459   : > { %1973 = vmatpush.msrb.mxu1 %v1861_v46  ;;  %v6258_v46 = vld [vmem:[#allocation83_spill] sm:$0xff] }
 0x45a   : > { %2037 = vmatpush.msrb.mxu2 %v1878_v51  ;;  %1974 = vmatmul.f32.vlgmr.msrb.gmra.mxu1 %v6218_v3  ;;  %v6259_v51 = vld [vmem:[#allocation107_spill] sm:$0xff]  ;;  %v6260_v3 = vld [vmem:[#allocation112_spill] sm:$0xff] }
 0x45c   : > { %2038 = vmatpush.msrb.mxu2 %v1877_v17  ;;  %v6261_v17 = vld [vmem:[#allocation80_spill] sm:$0xff] }
 0x45d   : > { %2039 = vmatmul.f32.vlgmr.msrb.gmra.mxu2 %v6219_v12  ;;  %v6262_v12 = vld [vmem:[#allocation109_spill] sm:$0xff] }
 0x45e   : > { %1912 = vmatmul.f32.gmra.mxu0 %v6220_v7  ;;  %v6263_v7 = vld [vmem:[#allocation115_spill] sm:$0xff] }
 0x462   : > { %1977 = vmatmul.f32.gmra.mxu1 %v6221_v36 }
 0x465   : > { %2042 = vmatmul.f32.gmra.mxu2 %v6222_v43  ;;  %v2978_v43 = vld [vmem:[%s3065_s24] sm:$0xff] }
 0x466   : > { %1915 = vmatmul.f32.gmra.mxu0 %v6223_v48  ;;  %v2136_v48 = vadd.f32 %v2978_v43, %v6178_v45 }
 0x46a   : > { %1980 = vmatmul.f32.gmra.mxu1 %v6224_v18  ;;  %v2152_v18 = vmul.f32 0.5, %v6181_v44 }
 0x46d   : > { %2045 = vmatmul.f32.gmra.mxu2 %v6225_v52  ;;  %v6264_v52 = vld [vmem:[#allocation116_spill] sm:$0xff] }
 0x46e   : > { %1918 = vmatmul.f32.gmra.mxu0 %v6226_v32 }
 0x472   : > { %1983 = vmatmul.f32.gmra.mxu1 %v6227_v63 }
 0x475   : > { %2048 = vmatmul.f32.gmra.mxu2 %v6228_v49  ;;  %v2168_v49 = vadd.f32 %v2152_v18, %v2136_v48 }
 0x476   : > { %1921 = vmatmul.f32.gmra.mxu0 %v6229_v59 }
 0x47a   : > { %1986 = vmatmul.f32.gmra.mxu1 %v6230_v9 }
 0x47d   : > { %2051 = vmatmul.f32.gmra.mxu2 %v6231_v34  ;;  %v2979_v34 = vld [vmem:[%s3065_s24 + $0x8] sm:$0xff] }
 0x47e   : > { %1924 = vmatmul.f32.gmra.mxu0 %v6232_v29  ;;  %v2137_v29 = vadd.f32 %v2979_v34, %v6175_v5  ;;  %v2154_v5 = vmul.f32 0.5, %v6174_v15  ;;  %v2155_v15 = vmul.f32 0.5, %v6171_v23  ;;  %v2156_v23 = vmul.f32 0.5, %v6168_v42 }
 0x47f   : > { %v2157_v42 = vmul.f32 0.5, %v6165_v2  ;;  %v6267_v2 = vld [vmem:[#allocation15_spill] sm:$0xff] }
 0x482   : > { %1989 = vmatmul.f32.gmra.mxu1 %v6233_v40  ;;  %v2153_v40 = vmul.f32 0.5, %v6177_v56 }
 0x485   : > { %2054 = vmatmul.f32.gmra.mxu2 %v6234_v25 }
 0x486   : > { %1927 = vmatmul.f32.gmra.mxu0 %v6235_v35  ;;  %v2184_v35 = vmul.f32 0.5, %v6216_v14  ;;  %v2185_v14 = vmul.f32 0.5, %v6212_v33  ;;  %v2186_v33 = vmul.f32 0.5, %v6207_v58  ;;  %v2187_v58 = vmul.f32 0.5, %v6203_v55 }
 0x48a   : > { %1992 = vmatmul.f32.gmra.mxu1 %v6236_v22  ;;  %v2169_v22 = vadd.f32 %v2153_v40, %v2137_v29  ;;  %v2188_v29 = vmul.f32 0.5, %v6197_v47 }
 0x48d   : > { %2057 = vmatmul.f32.gmra.mxu2 %v6237_v53 }
 0x48e   : > { %1930 = vmatmul.f32.gmra.mxu0 %v6238_v54 }
 0x492   : > { %1995 = vmatmul.f32.gmra.mxu1 %v6239_v10 }
 0x495   : > { %2060 = vmatmul.f32.gmra.mxu2 %v6240_v1  ;;  %v2200_v1 = vadd.f32 %v4963_v4, %v2184_v35  ;;  %v2201_v4 = vadd.f32 %v4920_v16, %v2185_v14  ;;  %v2202_v16 = vadd.f32 %v4944_v11, %v2186_v33  ;;  %v2203_v11 = vadd.f32 %v4932_v8, %v2187_v58 }
 0x496   : > { %1933 = vmatmul.f32.gmra.mxu0 %v6241_v20 }
 0x49a   : > { %1998 = vmatmul.f32.gmra.mxu1 %v6242_v21  ;;  %v2980_v21 = vld [vmem:[%s3065_s24 + $0x10] sm:$0xff] }
 0x49d   : > { %2063 = vmatmul.f32.gmra.mxu2 %v6243_v0  ;;  %v2138_v0 = vadd.f32 %v2980_v21, %v6172_v41  ;;  %v2158_v21 = vmul.f32 0.5, %v6267_v2 }
 0x49e   : > { %1936 = vmatmul.f32.gmra.mxu0 %v6244_v28 }
 0x4a2   : > { %2001 = vmatmul.f32.gmra.mxu1 %v6245_v50 }
 0x4a5   : > { %2066 = vmatmul.f32.gmra.mxu2 %v6246_v26  ;;  %v2170_v26 = vadd.f32 %v2154_v5, %v2138_v0  ;;  %v2189_v5 = vmul.f32 0.5, %v6187_v19 }
 0x4a6   : > { %1939 = vmatmul.f32.gmra.mxu0 %v6247_v61 }
 0x4aa   : > { %2004 = vmatmul.f32.gmra.mxu1 %v6248_v27 }
 0x4ad   : > { %2069 = vmatmul.f32.gmra.mxu2 %v6249_v39 }
 0x4ae   : > { %1942 = vmatmul.f32.gmra.mxu0 %v6250_v62 }
 0x4b2   : > { %2007 = vmatmul.f32.gmra.mxu1 %v6251_v30 }
 0x4b5   : > { %2072 = vmatmul.f32.gmra.mxu2 %v6252_v37  ;;  %v2981_v37 = vld [vmem:[%s3065_s24 + $0x18] sm:$0xff] }
 0x4b6   : > { %1945 = vmatmul.f32.gmra.mxu0 %v6253_v60  ;;  %v2139_v41 = vadd.f32 %v2981_v37, %v6169_v6 }
 0x4ba   : > { %2010 = vmatmul.f32.gmra.mxu1 %v6254_v57 }
 0x4bd   : > { %2075 = vmatmul.f32.gmra.mxu2 %v6255_v24 }
 0x4be   : > { %1948 = vmatmul.f32.gmra.mxu0 %v6256_v31  ;;  %v2171_v31 = vadd.f32 %v2155_v15, %v2139_v41  ;;  %v6269_v41 = vld [vmem:[#allocation17_spill] sm:$0xff] }
 0x4bf   : > { %v2159_v15 = vmul.f32 0.5, %v6269_v41 }
 0x4c2   : > { %2013 = vmatmul.f32.gmra.mxu1 %v6257_v13 }
 0x4c5   : > { %2078 = vmatmul.f32.gmra.mxu2 %v6258_v46 }
 0x4c6   : > { %1951 = vmatmul.f32.gmra.mxu0 %v6259_v51 }
 0x4ca   : > { %2016 = vmatmul.f32.gmra.mxu1 %v6260_v3 }
 0x4cd   : > { %2081 = vmatmul.f32.gmra.mxu2 %v6261_v17 }
 0x4ce   : > { %1954 = vmatmul.f32.gmra.mxu0 %v6262_v12  ;;  %v2982_v12 = vld [vmem:[%s3065_s24 + $0x20] sm:$0xff] }
 0x4cf   : > { %v2140_v6 = vadd.f32 %v2982_v12, %v6166_v38  ;;  %v6265_v38 = vld [vmem:[#allocation81_spill] sm:$0xff] }
 0x4d1   : > { %v2172_v48 = vadd.f32 %v2156_v23, %v2140_v6  ;;  %v2989_v6 = vld [vmem:[%s3065_s24 + $0x40] sm:$0xff] }
 0x4d2   : > { %2019 = vmatmul.f32.gmra.mxu1 %v6263_v7  ;;  %v6271_v23 = vld [vmem:[#allocation87_spill] sm:$0xff] }
 0x4d3   : > { %v1910_v36 = vpop.f32.mrf.mxu0 }
 0x4d5   : > { %2084 = vmatmul.f32.gmra.mxu2 %v6264_v52 }
 0x4d7   : > { %v1975_v32 = vpop.f32.mrf.mxu1 }
 0x4d8   : > { %v2088_v63 = vsub.f32 %v1910_v36, %v1975_v32 }
 0x4da   : > { %v2216_v59 = vadd.f32 %v2168_v49, %v2088_v63 }
 0x4db   : > { %v1913_v9 = vpop.f32.mrf.mxu0 }
 0x4dc   : > { %2248 = vst [vmem:[#allocation2 + $0x30] sm:$0xff] %v2216_v59  ;;  %v2983_v59 = vld [vmem:[%s3065_s24 + $0x28] sm:$0xff] }
 0x4df   : > { %v1978_v25 = vpop.f32.mrf.mxu1 }
 0x4e0   : > { %v2089_v45 = vsub.f32 %v1913_v9, %v1978_v25  ;;  %v2040_v44 = vpop.f32.mrf.mxu2 }
 0x4e1   : > { %v2104_v53 = vsub.f32 %v2040_v44, %v1910_v36  ;;  %v2984_v44 = vld [vmem:[%s3091_s7 + $0x20] sm:$0xff] }
 0x4e2   : > { %v2217_v54 = vadd.f32 %v2169_v22, %v2089_v45 }
 0x4e3   : > { %v2120_v10 = vsub.f32 %v2104_v53, %v1975_v32  ;;  %v1916_v20 = vpop.f32.mrf.mxu0  ;;  %v2204_v53 = vadd.f32 %v2984_v44, %v2188_v29  ;;  %v6275_v29 = vld [vmem:[#allocation96_spill] sm:$0xff] }
 0x4e4   : > { %2249 = vst [vmem:[#allocation2] sm:$0xff] %v2217_v54 }
 0x4e5   : > { %v2232_v56 = vadd.f32 %v2200_v1, %v2120_v10  ;;  %v2985_v10 = vld [vmem:[%s3065_s24 + $0x30] sm:$0xff]  ;;  %v6266_v1 = vld [vmem:[#allocation84_spill] sm:$0xff] }
 0x4e7   : > { %2264 = vst [vmem:[#allocation3 + $0x28] sm:$0xff] %v2232_v56  ;;  %v1981_v28 = vpop.f32.mrf.mxu1 }
 0x4e8   : > { %v2090_v50 = vsub.f32 %v1916_v20, %v1981_v28  ;;  %v2043_v61 = vpop.f32.mrf.mxu2 }
 0x4e9   : > { %v2105_v27 = vsub.f32 %v2043_v61, %v1913_v9  ;;  %v2141_v9 = vadd.f32 %v2983_v59, %v6265_v38 }
 0x4ea   : > { %v2218_v39 = vadd.f32 %v2170_v26, %v2090_v50 }
 0x4eb   : > { %v2121_v62 = vsub.f32 %v2105_v27, %v1978_v25  ;;  %v1919_v30 = vpop.f32.mrf.mxu0  ;;  %v2173_v25 = vadd.f32 %v2157_v42, %v2141_v9  ;;  %v2986_v27 = vld [vmem:[%s3091_s7 + $0x28] sm:$0xff]  ;;  %v2990_v9 = vld [vmem:[%s3091_s7 + $0x38] sm:$0xff] }
 0x4ec   : > { %2250 = vst [vmem:[#allocation2 + $0x58] sm:$0xff] %v2218_v39  ;;  %v2205_v39 = vadd.f32 %v2986_v27, %v2189_v5  ;;  %v6278_v5 = vld [vmem:[#allocation89_spill] sm:$0xff]  ;;  %v6281_v27 = vld [vmem:[#allocation30_spill] sm:$0xff] }
 0x4ed   : > { %v2233_v60 = vadd.f32 %v2201_v4, %v2121_v62  ;;  %v2987_v4 = vld [vmem:[%s3065_s24 + $0x38] sm:$0xff] }
 0x4ef   : > { %2265 = vst [vmem:[#allocation3 + $0x68] sm:$0xff] %v2233_v60  ;;  %v1984_v57 = vpop.f32.mrf.mxu1 }
 0x4f0   : > { %v2091_v24 = vsub.f32 %v1919_v30, %v1984_v57  ;;  %v2046_v13 = vpop.f32.mrf.mxu2 }
 0x4f1   : > { %v2106_v46 = vsub.f32 %v2046_v13, %v1916_v20  ;;  %v2142_v20 = vadd.f32 %v2985_v10, %v6266_v1 }
 0x4f2   : > { %v2219_v51 = vadd.f32 %v2171_v31, %v2091_v24 }
 0x4f3   : > { %v2122_v3 = vsub.f32 %v2106_v46, %v1981_v28  ;;  %v1922_v17 = vpop.f32.mrf.mxu0  ;;  %v2174_v28 = vadd.f32 %v2158_v21, %v2142_v20  ;;  %v2991_v21 = vld [vmem:[%s3091_s7 + $0x40] sm:$0xff] }
 0x4f4   : > { %2251 = vst [vmem:[#allocation2 + $0x18] sm:$0xff] %v2219_v51 }
 0x4f5   : > { %v2234_v7 = vadd.f32 %v2202_v16, %v2122_v3  ;;  %v2988_v16 = vld [vmem:[%s3091_s7 + $0x30] sm:$0xff] }
 0x4f7   : > { %2266 = vst [vmem:[#allocation3 + $0x10] sm:$0xff] %v2234_v7  ;;  %v1987_v36 = vpop.f32.mrf.mxu1  ;;  %v2144_v7 = vadd.f32 %v2989_v6, %v6271_v23 }
 0x4f8   : > { %v2092_v43 = vsub.f32 %v1922_v17, %v1987_v36  ;;  %v2049_v18 = vpop.f32.mrf.mxu2 }
 0x4f9   : > { %v2107_v52 = vsub.f32 %v2049_v18, %v1919_v30  ;;  %v6268_v30 = vld [vmem:[#allocation86_spill] sm:$0xff] }
 0x4fa   : > { %v2220_v32 = vadd.f32 %v2172_v48, %v2092_v43  ;;  %v2143_v37 = vadd.f32 %v2987_v4, %v6268_v30  ;;  %v6273_v18 = vld [vmem:[#allocation26_spill] sm:$0xff] }
 0x4fb   : > { %v2123_v63 = vsub.f32 %v2107_v52, %v1984_v57  ;;  %v1925_v49 = vpop.f32.mrf.mxu0  ;;  %v6270_v57 = vld [vmem:[#allocation24_spill] sm:$0xff]  ;;  %v2191_v52 = vmul.f32 0.5, %v6273_v18 }
 0x4fc   : > { %2252 = vst [vmem:[#allocation2 + $0x50] sm:$0xff] %v2220_v32  ;;  %v2190_v33 = vmul.f32 0.5, %v6270_v57  ;;  %v2175_v31 = vadd.f32 %v2159_v15, %v2143_v37 }
 0x4fd   : > { %v2235_v34 = vadd.f32 %v2203_v11, %v2123_v63  ;;  %v2207_v42 = vadd.f32 %v2990_v9, %v2191_v52  ;;  %v6288_v52 = vld [vmem:[#allocation92_spill] sm:$0xff]  ;;  %v6291_v9 = vld [vmem:[#allocation34_spill] sm:$0xff] }
 0x4ff   : > { %2267 = vst [vmem:[#allocation3 + $0x40] sm:$0xff] %v2235_v34  ;;  %v1990_v55 = vpop.f32.mrf.mxu1 }
 0x500   : > { %v2093_v40 = vsub.f32 %v1925_v49, %v1990_v55  ;;  %v2052_v35 = vpop.f32.mrf.mxu2 }
 0x501   : > { %v2108_v45 = vsub.f32 %v2052_v35, %v1922_v17  ;;  %v2206_v17 = vadd.f32 %v2988_v16, %v2190_v33  ;;  %v6283_v33 = vld [vmem:[#allocation90_spill] sm:$0xff]  ;;  %v6286_v16 = vld [vmem:[#allocation32_spill] sm:$0xff] }
 0x502   : > { %v2221_v22 = vadd.f32 %v2173_v25, %v2093_v40  ;;  %v6276_v25 = vld [vmem:[#allocation21_spill] sm:$0xff] }
 0x503   : > { %v2124_v8 = vsub.f32 %v2108_v45, %v1987_v36  ;;  %v1928_v54 = vpop.f32.mrf.mxu0  ;;  %v6272_v36 = vld [vmem:[#allocation19_spill] sm:$0xff]  ;;  %v2161_v35 = vmul.f32 0.5, %v6276_v25 }
 0x504   : > { %2253 = vst [vmem:[#allocation2 + $0x68] sm:$0xff] %v2221_v22  ;;  %v2160_v58 = vmul.f32 0.5, %v6272_v36 }
 0x505   : > { %v2236_v0 = vadd.f32 %v2204_v53, %v2124_v8  ;;  %v6277_v8 = vld [vmem:[#allocation28_spill] sm:$0xff] }
 0x506   : > { %v2176_v63 = vadd.f32 %v2160_v58, %v2144_v7  ;;  %v2192_v44 = vmul.f32 0.5, %v6277_v8 }
 0x507   : > { %2268 = vst [vmem:[#allocation3 + $0x48] sm:$0xff] %v2236_v0  ;;  %v1993_v47 = vpop.f32.mrf.mxu1 }
 0x508   : > { %v2094_v56 = vsub.f32 %v1928_v54, %v1993_v47  ;;  %v2055_v14 = vpop.f32.mrf.mxu2  ;;  %v2208_v0 = vadd.f32 %v2991_v21, %v2192_v44  ;;  %v6293_v44 = vld [vmem:[#allocation94_spill] sm:$0xff]  ;;  %v6296_v21 = vld [vmem:[#allocation35_spill] sm:$0xff] }
 0x509   : > { %v2109_v50 = vsub.f32 %v2055_v14, %v1925_v49  ;;  %v6280_v14 = vld [vmem:[#allocation23_spill] sm:$0xff] }
 0x50a   : > { %v2222_v26 = vadd.f32 %v2174_v28, %v2094_v56  ;;  %v6279_v56 = vld [vmem:[#allocation163_spill] sm:$0xff] }
 0x50b   : > { %v2125_v61 = vsub.f32 %v2109_v50, %v1990_v55  ;;  %v1931_v62 = vpop.f32.mrf.mxu0  ;;  %v6274_v55 = vld [vmem:[#allocation88_spill] sm:$0xff]  ;;  %v2146_v28 = vadd.f32 %v6279_v56, %v6278_v5  ;;  %v2162_v50 = vmul.f32 0.5, %v6280_v14 }
 0x50c   : > { %2254 = vst [vmem:[#allocation2 + $0x8] sm:$0xff] %v2222_v26  ;;  %v2145_v40 = vadd.f32 %v6275_v29, %v6274_v55 }
 0x50d   : > { %v2237_v60 = vadd.f32 %v2205_v39, %v2125_v61  ;;  %v2193_v39 = vmul.f32 0.5, %v6281_v27  ;;  %v2178_v4 = vadd.f32 %v2162_v50, %v2146_v28  ;;  %v6298_v27 = vld [vmem:[#allocation102_spill] sm:$0xff] }
 0x50f   : > { %2269 = vst [vmem:[#allocation3 + $0x30] sm:$0xff] %v2237_v60  ;;  %v1996_v19 = vpop.f32.mrf.mxu1  ;;  %v6282_v60 = vld [vmem:[#allocation131_spill] sm:$0xff] }
 0x510   : > { %v2095_v24 = vsub.f32 %v1931_v62, %v1996_v19  ;;  %v2058_v13 = vpop.f32.mrf.mxu2 }
 0x511   : > { %v2110_v46 = vsub.f32 %v2058_v13, %v1928_v54  ;;  %v2177_v54 = vadd.f32 %v2161_v35, %v2145_v40  ;;  %v6285_v13 = vld [vmem:[#allocation25_spill] sm:$0xff] }
 0x512   : > { %v2223_v51 = vadd.f32 %v2175_v31, %v2095_v24  ;;  %v6284_v24 = vld [vmem:[#allocation124_spill] sm:$0xff] }
 0x513   : > { %v2126_v3 = vsub.f32 %v2110_v46, %v1993_v47  ;;  %v1934_v12 = vpop.f32.mrf.mxu0  ;;  %v2147_v31 = vadd.f32 %v6284_v24, %v6283_v33  ;;  %v2163_v46 = vmul.f32 0.5, %v6285_v13 }
 0x514   : > { %2255 = vst [vmem:[#allocation2 + $0x48] sm:$0xff] %v2223_v51 }
 0x515   : > { %v2238_v43 = vadd.f32 %v2206_v17, %v2126_v3  ;;  %v2194_v17 = vmul.f32 0.5, %v6286_v16  ;;  %v2179_v6 = vadd.f32 %v2163_v46, %v2147_v31  ;;  %v6303_v16 = vld [vmem:[#allocation99_spill] sm:$0xff] }
 0x517   : > { %2270 = vst [vmem:[#allocation3 + $0x70] sm:$0xff] %v2238_v43  ;;  %v1999_v48 = vpop.f32.mrf.mxu1  ;;  %v6287_v43 = vld [vmem:[#allocation123_spill] sm:$0xff] }
 0x518   : > { %v2096_v32 = vsub.f32 %v1934_v12, %v1999_v48  ;;  %v2061_v11 = vpop.f32.mrf.mxu2 }
 0x519   : > { %v2111_v49 = vsub.f32 %v2061_v11, %v1931_v62  ;;  %v6290_v11 = vld [vmem:[#allocation27_spill] sm:$0xff] }
 0x51a   : > { %v2224_v59 = vadd.f32 %v2176_v63, %v2096_v32  ;;  %v6289_v32 = vld [vmem:[#allocation120_spill] sm:$0xff] }
 0x51b   : > { %v2127_v38 = vsub.f32 %v2111_v49, %v1996_v19  ;;  %v1937_v34 = vpop.f32.mrf.mxu0  ;;  %v2209_v19 = vadd.f32 %v6282_v60, %v2193_v39  ;;  %v2148_v63 = vadd.f32 %v6289_v32, %v6288_v52  ;;  %v2164_v49 = vmul.f32 0.5, %v6290_v11  ;;  %v6299_v39 = vld [vmem:[#allocation155_spill] sm:$0xff]  ;;  %v6301_v60 = vld [vmem:[#allocation37_spill] sm:$0xff] }
 0x51c   : > { %2256 = vst [vmem:[#allocation2 + $0x40] sm:$0xff] %v2224_v59 }
 0x51d   : > { %v2239_v45 = vadd.f32 %v2207_v42, %v2127_v38  ;;  %v2195_v42 = vmul.f32 0.5, %v6291_v9  ;;  %v2180_v55 = vadd.f32 %v2164_v49, %v2148_v63 }
 0x51f   : > { %2271 = vst [vmem:[#allocation3 + $0x38] sm:$0xff] %v2239_v45  ;;  %v2002_v22 = vpop.f32.mrf.mxu1  ;;  %v6292_v45 = vld [vmem:[#allocation128_spill] sm:$0xff] }
 0x520   : > { %v2097_v53 = vsub.f32 %v1937_v34, %v2002_v22  ;;  %v2064_v10 = vpop.f32.mrf.mxu2 }
 0x521   : > { %v2112_v1 = vsub.f32 %v2064_v10, %v1934_v12  ;;  %v6295_v10 = vld [vmem:[#allocation29_spill] sm:$0xff] }
 0x522   : > { %v2225_v20 = vadd.f32 %v2177_v54, %v2097_v53  ;;  %v6294_v53 = vld [vmem:[#allocation121_spill] sm:$0xff] }
 0x523   : > { %v2128_v2 = vsub.f32 %v2112_v1, %v1999_v48  ;;  %v1940_v47 = vpop.f32.mrf.mxu0  ;;  %v2210_v48 = vadd.f32 %v6287_v43, %v2194_v17  ;;  %v2149_v54 = vadd.f32 %v6294_v53, %v6293_v44  ;;  %v2165_v1 = vmul.f32 0.5, %v6295_v10  ;;  %v6304_v17 = vld [vmem:[#allocation117_spill] sm:$0xff]  ;;  %v6306_v43 = vld [vmem:[#allocation39_spill] sm:$0xff] }
 0x524   : > { %2257 = vst [vmem:[#allocation2 + $0x20] sm:$0xff] %v2225_v20 }
 0x525   : > { %v2240_v26 = vadd.f32 %v2208_v0, %v2128_v2  ;;  %v2196_v0 = vmul.f32 0.5, %v6296_v21  ;;  %v2181_v5 = vadd.f32 %v2165_v1, %v2149_v54 }
 0x527   : > { %2272 = vst [vmem:[#allocation3 + $0x20] sm:$0xff] %v2240_v26  ;;  %v2005_v61 = vpop.f32.mrf.mxu1  ;;  %v6297_v26 = vld [vmem:[#allocation161_spill] sm:$0xff] }
 0x528   : > { %v2098_v62 = vsub.f32 %v1940_v47, %v2005_v61  ;;  %v2067_v30 = vpop.f32.mrf.mxu2 }
 0x529   : > { %v2113_v37 = vsub.f32 %v2067_v30, %v1937_v34 }
 0x52a   : > { %v2226_v41 = vadd.f32 %v2178_v4, %v2098_v62  ;;  %v2150_v62 = vadd.f32 %v6299_v39, %v6298_v27  ;;  %v6300_v4 = vld [vmem:[#allocation31_spill] sm:$0xff] }
 0x52b   : > { %v2129_v15 = vsub.f32 %v2113_v37, %v2002_v22  ;;  %v1943_v57 = vpop.f32.mrf.mxu0  ;;  %v2211_v22 = vadd.f32 %v6292_v45, %v2195_v42  ;;  %v2166_v30 = vmul.f32 0.5, %v6300_v4  ;;  %v6308_v42 = vld [vmem:[#allocation41_spill] sm:$0xff] }
 0x52c   : > { %2258 = vst [vmem:[#allocation2 + $0x10] sm:$0xff] %v2226_v41 }
 0x52d   : > { %v2241_v51 = vadd.f32 %v2209_v19, %v2129_v15  ;;  %v2197_v19 = vmul.f32 0.5, %v6301_v60  ;;  %v2182_v33 = vadd.f32 %v2166_v30, %v2150_v62 }
 0x52f   : > { %2273 = vst [vmem:[#allocation3 + $0x78] sm:$0xff] %v2241_v51  ;;  %v2008_v3 = vpop.f32.mrf.mxu1  ;;  %v6302_v51 = vld [vmem:[#allocation118_spill] sm:$0xff] }
 0x530   : > { %v2099_v12 = vsub.f32 %v1943_v57, %v2008_v3  ;;  %v2070_v23 = vpop.f32.mrf.mxu2 }
 0x531   : > { %v2114_v7 = vsub.f32 %v2070_v23, %v1940_v47 }
 0x532   : > { %v2227_v36 = vadd.f32 %v2179_v6, %v2099_v12  ;;  %v2151_v12 = vadd.f32 %v6304_v17, %v6303_v16  ;;  %v6305_v6 = vld [vmem:[#allocation33_spill] sm:$0xff] }
 0x533   : > { %v2130_v58 = vsub.f32 %v2114_v7, %v2005_v61  ;;  %v1946_v18 = vpop.f32.mrf.mxu0  ;;  %v2212_v61 = vadd.f32 %v6297_v26, %v2196_v0  ;;  %v2167_v23 = vmul.f32 0.5, %v6305_v6 }
 0x534   : > { %2259 = vst [vmem:[#allocation2 + $0x38] sm:$0xff] %v2227_v36 }
 0x535   : > { %v2242_v59 = vadd.f32 %v2210_v48, %v2130_v58  ;;  %v2198_v48 = vmul.f32 0.5, %v6306_v43  ;;  %v2183_v52 = vadd.f32 %v2167_v23, %v2151_v12 }
 0x537   : > { %2274 = vst [vmem:[#allocation3 + $0x18] sm:$0xff] %v2242_v59  ;;  %v2011_v38 = vpop.f32.mrf.mxu1  ;;  %v6307_v59 = vld [vmem:[#allocation122_spill] sm:$0xff] }
 0x538   : > { %v2100_v34 = vsub.f32 %v1946_v18, %v2011_v38  ;;  %v2073_v29 = vpop.f32.mrf.mxu2 }
 0x539   : > { %v2115_v40 = vsub.f32 %v2073_v29, %v1943_v57 }
 0x53a   : > { %v2228_v25 = vadd.f32 %v2180_v55, %v2100_v34  ;;  %v2199_v34 = vmul.f32 0.5, %v6308_v42 }
 0x53b   : > { %v2131_v35 = vsub.f32 %v2115_v40, %v2008_v3  ;;  %v1949_v8 = vpop.f32.mrf.mxu0  ;;  %v2213_v3 = vadd.f32 %v6302_v51, %v2197_v19 }
 0x53c   : > { %2260 = vst [vmem:[#allocation2 + $0x60] sm:$0xff] %v2228_v25  ;;  %v6309_v25 = vld [vmem:[#allocation152_spill] sm:$0xff] }
 0x53d   : > { %v2243_v20 = vadd.f32 %v2211_v22, %v2131_v35  ;;  %v2215_v35 = vadd.f32 %v6309_v25, %v2199_v34 }
 0x53f   : > { %2275 = vst [vmem:[#allocation3 + $0x58] sm:$0xff] %v2243_v20  ;;  %v2014_v2 = vpop.f32.mrf.mxu1 }
 0x540   : > { %v2101_v47 = vsub.f32 %v1949_v8, %v2014_v2  ;;  %v2076_v56 = vpop.f32.mrf.mxu2 }
 0x541   : > { %v2116_v28 = vsub.f32 %v2076_v56, %v1946_v18 }
 0x542   : > { %v2229_v14 = vadd.f32 %v2181_v5, %v2101_v47 }
 0x543   : > { %v2132_v50 = vsub.f32 %v2116_v28, %v2011_v38  ;;  %v1952_v41 = vpop.f32.mrf.mxu0  ;;  %v2214_v38 = vadd.f32 %v6307_v59, %v2198_v48 }
 0x544   : > { %2261 = vst [vmem:[#allocation2 + $0x70] sm:$0xff] %v2229_v14 }
 0x545   : > { %v2244_v37 = vadd.f32 %v2212_v61, %v2132_v50 }
 0x547   : > { %2276 = vst [vmem:[#allocation3] sm:$0xff] %v2244_v37  ;;  %v2017_v15 = vpop.f32.mrf.mxu1 }
 0x548   : > { %v2102_v57 = vsub.f32 %v1952_v41, %v2017_v15  ;;  %v2079_v24 = vpop.f32.mrf.mxu2 }
 0x549   : > { %v2117_v31 = vsub.f32 %v2079_v24, %v1949_v8 }
 0x54a   : > { %v2230_v13 = vadd.f32 %v2182_v33, %v2102_v57 }
 0x54b   : > { %v2133_v46 = vsub.f32 %v2117_v31, %v2014_v2  ;;  %v1955_v36 = vpop.f32.mrf.mxu0 }
 0x54c   : > { %2262 = vst [vmem:[#allocation2 + $0x78] sm:$0xff] %v2230_v13 }
 0x54d   : > { %v2245_v7 = vadd.f32 %v2213_v3, %v2133_v46 }
 0x54f   : > { %2277 = vst [vmem:[#allocation3 + $0x8] sm:$0xff] %v2245_v7  ;;  %v2020_v58 = vpop.f32.mrf.mxu1 }
 0x550   : > { %v2103_v18 = vsub.f32 %v1955_v36, %v2020_v58  ;;  %v2082_v32 = vpop.f32.mrf.mxu2 }
 0x551   : > { %v2118_v63 = vsub.f32 %v2082_v32, %v1952_v41 }
 0x552   : > { %v2231_v11 = vadd.f32 %v2183_v52, %v2103_v18 }
 0x553   : > { %v2134_v49 = vsub.f32 %v2118_v63, %v2017_v15 }
 0x554   : > { %2263 = vst [vmem:[#allocation2 + $0x28] sm:$0xff] %v2231_v11 }
 0x555   : > { %v2246_v9 = vadd.f32 %v2214_v38, %v2134_v49 }
 0x557   : > { %2278 = vst [vmem:[#allocation3 + $0x60] sm:$0xff] %v2246_v9 }
 0x558   : > { %v2085_v55 = vpop.f32.mrf.mxu2 }
 0x559   : > { %v2119_v29 = vsub.f32 %v2085_v55, %v1955_v36 }
 0x55b   : > { %v2135_v40 = vsub.f32 %v2119_v29, %v2020_v58  ;;  %2740 = sbr.rel (%p2807_p4) target bundleno = 1641 (0x669), region = 74 }
 0x55d   : > { %v2247_v45 = vadd.f32 %v2215_v35, %v2135_v40 }
 0x55f   : > { %2279 = vst [vmem:[#allocation3 + $0x50] sm:$0xff] %v2247_v45 }
 0x560 LB: >> { %v5106_v22 = vld [vmem:[#allocation2 + $0x28] sm:$0xff]  ;;  %v5108_v8 = vld [vmem:[#allocation2 + $0x78] sm:$0xff]  ;;  %v5117_v54 = vld [vmem:[#allocation2 + $0x70] sm:$0xff]  ;;  %s2283_s8 = sadd.s32 1, %s3020_s8   ;;  %s3020_s8 = sphi %s5101_s8, %s2283_s8  }
 0x561   : >> { %2862 = vmatpush.msra.mxu3 %v5106_v22  ;;  %v5119_v10 = vld [vmem:[#allocation3 + $0x60] sm:$0xff]  ;;  %2334 = vmatpush.msra.mxu0 %v5106_v22  ;;  %v5128_v2 = vld [vmem:[#allocation3 + $0x8] sm:$0xff]  ;;  %v5139_v47 = vld [vmem:[#allocation2 + $0x38] sm:$0xff]  ;;  %p2282_p5 = scmp.ge.s32.totalorder %s2283_s8, %s3060_s0 }
 0x562   : >> { %v5124_v1 = vadd.f32 %v5119_v10, %v5108_v8  ;;  %v5126_v20 = vld [vmem:[#allocation2 + $0x60] sm:$0xff]  ;;  %v5137_v0 = vadd.f32 %v5128_v2, %v5117_v54  ;;  %v5143_v5 = vld [vmem:[#allocation3 + $0x58] sm:$0xff]  ;;  %v5151_v28 = vld [vmem:[#allocation2 + $0x10] sm:$0xff] }
 0x563   : >> { %v5131_v21 = vld [vmem:[#allocation3] sm:$0xff]  ;;  %2863 = vmatpush.msra.mxu3 %v5108_v8  ;;  %2335 = vmatpush.msra.mxu0 %v5108_v8  ;;  %v5155_v14 = vld [vmem:[#allocation3 + $0x18] sm:$0xff]  ;;  %v5161_v50 = vadd.f32 %v5143_v5, %v5139_v47  ;;  %v5187_v30 = vld [vmem:[#allocation2 + $0x48] sm:$0xff] }
 0x564   : >> { %v5149_v56 = vadd.f32 %v5131_v21, %v5126_v20  ;;  %v5163_v26 = vld [vmem:[#allocation2 + $0x20] sm:$0xff]  ;;  %v5167_v61 = vld [vmem:[#allocation3 + $0x78] sm:$0xff]  ;;  %v5173_v27 = vadd.f32 %v5155_v14, %v5151_v28  ;;  %v5199_v15 = vld [vmem:[#allocation2 + $0x8] sm:$0xff] }
 0x565   : >> { %2864 = vmatpush.msra.mxu3 %v5117_v54  ;;  %2336 = vmatpush.msra.mxu0 %v5117_v54  ;;  %v5175_v39 = vld [vmem:[#allocation2 + $0x40] sm:$0xff]  ;;  %v5185_v4 = vadd.f32 %v5167_v61, %v5163_v26  ;;  %v5191_v37 = vld [vmem:[#allocation3 + $0x38] sm:$0xff]  ;;  %v5203_v60 = vld [vmem:[#allocation3 + $0x70] sm:$0xff] }
 0x566   : >> { %v5110_v44 = vld [vmem:[#allocation3 + $0x50] sm:$0xff]  ;;  %v5179_v62 = vld [vmem:[#allocation3 + $0x20] sm:$0xff]  ;;  %v5209_v19 = vadd.f32 %v5191_v37, %v5187_v30  ;;  %v5211_v57 = vld [vmem:[#allocation2 + $0x68] sm:$0xff]  ;;  %v5221_v24 = vadd.f32 %v5203_v60, %v5199_v15 }
 0x567   : >> { %v5115_v53 = vadd.f32 %v5110_v44, %v5106_v22  ;;  %2399 = vmatpush.msra.mxu1 %v5110_v44  ;;  %2865 = vmatpush.msra.mxu3 %v5126_v20  ;;  %v5197_v41 = vadd.f32 %v5179_v62, %v5175_v39  ;;  %v5215_v33 = vld [vmem:[#allocation3 + $0x30] sm:$0xff]  ;;  %v5227_v13 = vld [vmem:[#allocation3 + $0x48] sm:$0xff]  ;;  %v5235_v51 = vld [vmem:[#allocation2 + $0x18] sm:$0xff] }
 0x568   : >> { %2337 = vmatpush.msra.mxu0 %v5126_v20  ;;  %v5223_v31 = vld [vmem:[#allocation2 + $0x50] sm:$0xff]  ;;  %v5233_v46 = vadd.f32 %v5215_v33, %v5211_v57  ;;  %v5239_v3 = vld [vmem:[#allocation3 + $0x40] sm:$0xff]  ;;  %v2288_v17 = vld [vmem:[#allocation2 + $0x58] sm:$0xff] }
 0x569   : >> { %2464 = vmatpush.msra.mxu2 %v5115_v53  ;;  %2400 = vmatpush.msra.mxu1 %v5119_v10  ;;  %v5245_v16 = vadd.f32 %v5227_v13, %v5223_v31  ;;  %v2304_v12 = vld [vmem:[#allocation3 + $0x10] sm:$0xff]  ;;  %v5253_v6 = vadd.f32 %v5239_v3, %v5235_v51  ;;  %v2287_v23 = vld [vmem:[#allocation2] sm:$0xff]  ;;  %v2303_v7 = vld [vmem:[#allocation3 + $0x68] sm:$0xff] }
 0x56a   : >> { %2866 = vmatpush.msra.mxu3 %v5139_v47  ;;  %2338 = vmatpush.msra.mxu0 %v5139_v47  ;;  %v5259_v36 = vadd.f32 %v2304_v12, %v2288_v17  ;;  %v2286_v58 = vld [vmem:[#allocation2 + $0x30] sm:$0xff]  ;;  %v2302_v43 = vld [vmem:[#allocation3 + $0x28] sm:$0xff]  ;;  %v5264_v48 = vadd.f32 %v2303_v7, %v2287_v23 }
 0x56b   : >> { %2465 = vmatpush.msra.mxu2 %v5124_v1  ;;  %2401 = vmatpush.msra.mxu1 %v5128_v2  ;;  %v5267_v18 = vadd.f32 %v2302_v43, %v2286_v58 }
 0x56c   : >> { %2867 = vmatpush.msra.mxu3 %v5151_v28  ;;  %2339 = vmatpush.msra.mxu0 %v5151_v28 }
 0x56d   : >> { %2466 = vmatpush.msra.mxu2 %v5137_v0  ;;  %2402 = vmatpush.msra.mxu1 %v5131_v21 }
 0x56e   : >> { %2868 = vmatpush.msra.mxu3 %v5163_v26  ;;  %2340 = vmatpush.msra.mxu0 %v5163_v26 }
 0x56f   : >> { %2467 = vmatpush.msra.mxu2 %v5149_v56  ;;  %2403 = vmatpush.msra.mxu1 %v5143_v5 }
 0x570   : >> { %2869 = vmatpush.msra.mxu3 %v5175_v39  ;;  %2341 = vmatpush.msra.mxu0 %v5175_v39 }
 0x571   : >> { %2468 = vmatpush.msra.mxu2 %v5161_v50  ;;  %2404 = vmatpush.msra.mxu1 %v5155_v14 }
 0x572   : >> { %2870 = vmatpush.msra.mxu3 %v5187_v30  ;;  %2342 = vmatpush.msra.mxu0 %v5187_v30 }
 0x573   : >> { %2469 = vmatpush.msra.mxu2 %v5173_v27  ;;  %2405 = vmatpush.msra.mxu1 %v5167_v61 }
 0x574   : >> { %2871 = vmatpush.msra.mxu3 %v5199_v15  ;;  %2343 = vmatpush.msra.mxu0 %v5199_v15 }
 0x575   : >> { %2470 = vmatpush.msra.mxu2 %v5185_v4  ;;  %2406 = vmatpush.msra.mxu1 %v5179_v62 }
 0x576   : >> { %2872 = vmatpush.msra.mxu3 %v5211_v57  ;;  %2344 = vmatpush.msra.mxu0 %v5211_v57 }
 0x577   : >> { %2471 = vmatpush.msra.mxu2 %v5197_v41  ;;  %2407 = vmatpush.msra.mxu1 %v5191_v37 }
 0x578   : >> { %2873 = vmatpush.msra.mxu3 %v5223_v31  ;;  %2345 = vmatpush.msra.mxu0 %v5223_v31 }
 0x579   : >> { %2472 = vmatpush.msra.mxu2 %v5209_v19  ;;  %2408 = vmatpush.msra.mxu1 %v5203_v60 }
 0x57a   : >> { %2874 = vmatpush.msra.mxu3 %v5235_v51  ;;  %2346 = vmatpush.msra.mxu0 %v5235_v51 }
 0x57b   : >> { %2473 = vmatpush.msra.mxu2 %v5221_v24  ;;  %2409 = vmatpush.msra.mxu1 %v5215_v33 }
 0x57c   : >> { %2875 = vmatpush.msra.mxu3 %v2288_v17  ;;  %2347 = vmatpush.msra.mxu0 %v2288_v17 }
 0x57d   : >> { %2474 = vmatpush.msra.mxu2 %v5233_v46  ;;  %2410 = vmatpush.msra.mxu1 %v5227_v13 }
 0x57e   : >> { %2876 = vmatpush.msra.mxu3 %v2287_v23  ;;  %2348 = vmatpush.msra.mxu0 %v2287_v23 }
 0x57f   : >> { %2475 = vmatpush.msra.mxu2 %v5245_v16  ;;  %2411 = vmatpush.msra.mxu1 %v5239_v3 }
 0x580   : >> { %2877 = vmatpush.msra.mxu3 %v2286_v58  ;;  %2349 = vmatpush.msra.mxu0 %v2286_v58 }
 0x581   : >> { %2476 = vmatpush.msra.mxu2 %v5253_v6  ;;  %2412 = vmatpush.msra.mxu1 %v2304_v12 }
 0x582   : >> { %2386 = vmatmul.f32.vlgmr.msra.gmra.mxu3 %v5126_v20  ;;  %2350 = vmatmul.f32.vlgmr.msra.gmra.mxu0 %v2286_v58 }
 0x583   : >> { %2477 = vmatpush.msra.mxu2 %v5259_v36  ;;  %2413 = vmatpush.msra.mxu1 %v2303_v7 }
 0x584   : >> { %2878 = vmatpush.msrb.mxu3 %v5110_v44 }
 0x585   : >> { %2478 = vmatpush.msra.mxu2 %v5264_v48  ;;  %2414 = vmatpush.msra.mxu1 %v2302_v43 }
 0x586   : >> { %2879 = vmatpush.msrb.mxu3 %v5119_v10  ;;  %2415 = vmatmul.f32.vlgmr.msra.gmra.mxu1 %v2302_v43 }
 0x587   : >> { %2479 = vmatpush.msra.mxu2 %v5267_v18 }
 0x588   : >> { %2480 = vmatmul.f32.vlgmr.msra.gmra.mxu2 %v5267_v18  ;;  %2880 = vmatpush.msrb.mxu3 %v5128_v2 }
 0x58a   : >> { %2881 = vmatpush.msrb.mxu3 %v5131_v21  ;;  %2353 = vmatmul.f32.gmra.mxu0 %v2287_v23 }
 0x58b   : >> { %2389 = vmatmul.f32.gmra.mxu3 %v5117_v54 }
 0x58c   : >> { %2882 = vmatpush.msrb.mxu3 %v5143_v5 }
 0x58e   : >> { %2883 = vmatpush.msrb.mxu3 %v5155_v14  ;;  %2418 = vmatmul.f32.gmra.mxu1 %v2303_v7 }
 0x590   : >> { %2483 = vmatmul.f32.gmra.mxu2 %v5264_v48  ;;  %2884 = vmatpush.msrb.mxu3 %v5167_v61 }
 0x592   : >> { %2885 = vmatpush.msrb.mxu3 %v5179_v62  ;;  %2356 = vmatmul.f32.gmra.mxu0 %v2288_v17 }
 0x593   : >> { %2392 = vmatmul.f32.gmra.mxu3 %v5108_v8 }
 0x594   : >> { %2886 = vmatpush.msrb.mxu3 %v5191_v37 }
 0x596   : >> { %2887 = vmatpush.msrb.mxu3 %v5203_v60  ;;  %2421 = vmatmul.f32.gmra.mxu1 %v2304_v12 }
 0x598   : >> { %2486 = vmatmul.f32.gmra.mxu2 %v5259_v36  ;;  %2888 = vmatpush.msrb.mxu3 %v5215_v33 }
 0x59a   : >> { %2889 = vmatpush.msrb.mxu3 %v5227_v13  ;;  %2359 = vmatmul.f32.gmra.mxu0 %v5235_v51 }
 0x59b   : >> { %2395 = vmatmul.f32.gmra.mxu3 %v5106_v22 }
 0x59c   : >> { %2890 = vmatpush.msrb.mxu3 %v5239_v3 }
 0x59e   : >> { %2891 = vmatpush.msrb.mxu3 %v2304_v12  ;;  %2424 = vmatmul.f32.gmra.mxu1 %v5239_v3 }
 0x5a0   : >> { %2489 = vmatmul.f32.gmra.mxu2 %v5253_v6  ;;  %2892 = vmatpush.msrb.mxu3 %v2303_v7 }
 0x5a2   : >> { %2893 = vmatpush.msrb.mxu3 %v2302_v43  ;;  %2362 = vmatmul.f32.gmra.mxu0 %v5223_v31 }
 0x5a3   : >> { %2451 = vmatmul.f32.vlgmr.msrb.gmra.mxu3 %v5131_v21 }
 0x5a4   : >> { %2894 = vmatpush.msra.mxu3 %v5115_v53 }
 0x5a6   : >> { %2895 = vmatpush.msra.mxu3 %v5124_v1  ;;  %2427 = vmatmul.f32.gmra.mxu1 %v5227_v13 }
 0x5a8   : >> { %2492 = vmatmul.f32.gmra.mxu2 %v5245_v16  ;;  %2896 = vmatpush.msra.mxu3 %v5137_v0 }
 0x5aa   : >> { %2897 = vmatpush.msra.mxu3 %v5149_v56  ;;  %2365 = vmatmul.f32.gmra.mxu0 %v5211_v57 }
 0x5ab   : >> { %2454 = vmatmul.f32.gmra.mxu3 %v5128_v2 }
 0x5ac   : >> { %2898 = vmatpush.msra.mxu3 %v5161_v50 }
 0x5ae   : >> { %2899 = vmatpush.msra.mxu3 %v5173_v27  ;;  %2430 = vmatmul.f32.gmra.mxu1 %v5215_v33 }
 0x5b0   : >> { %2495 = vmatmul.f32.gmra.mxu2 %v5233_v46  ;;  %2900 = vmatpush.msra.mxu3 %v5185_v4 }
 0x5b2   : >> { %2901 = vmatpush.msra.mxu3 %v5197_v41  ;;  %2368 = vmatmul.f32.gmra.mxu0 %v5199_v15 }
 0x5b3   : >> { %2457 = vmatmul.f32.gmra.mxu3 %v5119_v10 }
 0x5b4   : >> { %2902 = vmatpush.msra.mxu3 %v5209_v19 }
 0x5b6   : >> { %2903 = vmatpush.msra.mxu3 %v5221_v24  ;;  %2433 = vmatmul.f32.gmra.mxu1 %v5203_v60 }
 0x5b8   : >> { %2498 = vmatmul.f32.gmra.mxu2 %v5221_v24  ;;  %2904 = vmatpush.msra.mxu3 %v5233_v46 }
 0x5ba   : >> { %2905 = vmatpush.msra.mxu3 %v5245_v16  ;;  %2371 = vmatmul.f32.gmra.mxu0 %v5187_v30 }
 0x5bb   : >> { %2460 = vmatmul.f32.gmra.mxu3 %v5110_v44 }
 0x5bc   : >> { %2906 = vmatpush.msra.mxu3 %v5253_v6 }
 0x5be   : >> { %2907 = vmatpush.msra.mxu3 %v5259_v36  ;;  %2436 = vmatmul.f32.gmra.mxu1 %v5191_v37 }
 0x5c0   : >> { %2501 = vmatmul.f32.gmra.mxu2 %v5209_v19  ;;  %2908 = vmatpush.msra.mxu3 %v5264_v48 }
 0x5c2   : >> { %2909 = vmatpush.msra.mxu3 %v5267_v18  ;;  %2374 = vmatmul.f32.gmra.mxu0 %v5175_v39 }
 0x5c3   : >> { %2516 = vmatmul.f32.vlgmr.msra.gmra.mxu3 %v5149_v56 }
 0x5c6   : >> { %2439 = vmatmul.f32.gmra.mxu1 %v5179_v62 }
 0x5c8   : >> { %2504 = vmatmul.f32.gmra.mxu2 %v5197_v41 }
 0x5ca   : >> { %2377 = vmatmul.f32.gmra.mxu0 %v5163_v26 }
 0x5cb   : >> { %2519 = vmatmul.f32.gmra.mxu3 %v5137_v0 }
 0x5ce   : >> { %2442 = vmatmul.f32.gmra.mxu1 %v5167_v61 }
 0x5d0   : >> { %2507 = vmatmul.f32.gmra.mxu2 %v5185_v4 }
 0x5d2   : >> { %2380 = vmatmul.f32.gmra.mxu0 %v5151_v28 }
 0x5d3   : >> { %2522 = vmatmul.f32.gmra.mxu3 %v5124_v1 }
 0x5d6   : >> { %2445 = vmatmul.f32.gmra.mxu1 %v5155_v14 }
 0x5d8   : >> { %2510 = vmatmul.f32.gmra.mxu2 %v5173_v27 }
 0x5da   : >> { %2383 = vmatmul.f32.gmra.mxu0 %v5139_v47 }
 0x5db   : >> { %2525 = vmatmul.f32.gmra.mxu3 %v5115_v53 }
 0x5de   : >> { %2448 = vmatmul.f32.gmra.mxu1 %v5143_v5 }
 0x5e0   : >> { %2513 = vmatmul.f32.gmra.mxu2 %v5161_v50 }
 0x5ff   : >> { %v2351_v52 = vpop.f32.mrf.mxu0 }
 0x603   : >> { %v2416_v32 = vpop.f32.mrf.mxu1 }
 0x604   : >> { %v2529_v63 = vsub.f32 %v2351_v52, %v2416_v32 }
 0x605   : >> { %v5342_v11 = vpop.f32.mrf.mxu3 }
 0x606   : >> { %2577 = vst [vmem:[#allocation2 + $0x30] sm:$0xff] %v2529_v63 }
 0x607   : >> { %v2354_v9 = vpop.f32.mrf.mxu0 }
 0x60b   : >> { %v2481_v49 = vpop.f32.mrf.mxu2  ;;  %v2419_v42 = vpop.f32.mrf.mxu1 }
 0x60c   : >> { %v2545_v59 = vsub.f32 %v2481_v49, %v2351_v52  ;;  %v2530_v34 = vsub.f32 %v2354_v9, %v2419_v42 }
 0x60e   : >> { %v2561_v38 = vsub.f32 %v2545_v59, %v2416_v32  ;;  %v5344_v55 = vpop.f32.mrf.mxu3  ;;  %2578 = vst [vmem:[#allocation2] sm:$0xff] %v2530_v34 }
 0x60f   : >> { %v2357_v35 = vpop.f32.mrf.mxu0 }
 0x610   : >> { %2593 = vst [vmem:[#allocation3 + $0x28] sm:$0xff] %v2561_v38 }
 0x613   : >> { %v2484_v29 = vpop.f32.mrf.mxu2  ;;  %v2422_v45 = vpop.f32.mrf.mxu1 }
 0x614   : >> { %v2546_v40 = vsub.f32 %v2484_v29, %v2354_v9  ;;  %v2531_v22 = vsub.f32 %v2357_v35, %v2422_v45 }
 0x616   : >> { %v2562_v25 = vsub.f32 %v2546_v40, %v2419_v42  ;;  %v5346_v8 = vpop.f32.mrf.mxu3  ;;  %2579 = vst [vmem:[#allocation2 + $0x58] sm:$0xff] %v2531_v22 }
 0x617   : >> { %v2360_v10 = vpop.f32.mrf.mxu0 }
 0x618   : >> { %2594 = vst [vmem:[#allocation3 + $0x68] sm:$0xff] %v2562_v25 }
 0x61b   : >> { %v2487_v44 = vpop.f32.mrf.mxu2  ;;  %v2425_v1 = vpop.f32.mrf.mxu1 }
 0x61c   : >> { %v2547_v53 = vsub.f32 %v2487_v44, %v2357_v35  ;;  %v2532_v20 = vsub.f32 %v2360_v10, %v2425_v1 }
 0x61e   : >> { %v2563_v54 = vsub.f32 %v2547_v53, %v2422_v45  ;;  %v5348_v2 = vpop.f32.mrf.mxu3  ;;  %2580 = vst [vmem:[#allocation2 + $0x18] sm:$0xff] %v2532_v20 }
 0x61f   : >> { %v2363_v5 = vpop.f32.mrf.mxu0 }
 0x620   : >> { %2595 = vst [vmem:[#allocation3 + $0x10] sm:$0xff] %v2563_v54 }
 0x623   : >> { %v2490_v21 = vpop.f32.mrf.mxu2  ;;  %v2428_v56 = vpop.f32.mrf.mxu1 }
 0x624   : >> { %v2548_v0 = vsub.f32 %v2490_v21, %v2360_v10  ;;  %v2533_v28 = vsub.f32 %v2363_v5, %v2428_v56 }
 0x626   : >> { %v2564_v47 = vsub.f32 %v2548_v0, %v2425_v1  ;;  %v2452_v14 = vpop.f32.mrf.mxu3  ;;  %2581 = vst [vmem:[#allocation2 + $0x50] sm:$0xff] %v2533_v28 }
 0x627   : >> { %v2541_v50 = vsub.f32 %v5342_v11, %v2452_v14  ;;  %v2366_v39 = vpop.f32.mrf.mxu0 }
 0x628   : >> { %2596 = vst [vmem:[#allocation3 + $0x40] sm:$0xff] %v2564_v47 }
 0x629   : >> { %2589 = vst [vmem:[#allocation2 + $0x60] sm:$0xff] %v2541_v50 }
 0x62b   : >> { %v2493_v26 = vpop.f32.mrf.mxu2  ;;  %v2431_v62 = vpop.f32.mrf.mxu1 }
 0x62c   : >> { %v2549_v61 = vsub.f32 %v2493_v26, %v2363_v5  ;;  %v2534_v4 = vsub.f32 %v2366_v39, %v2431_v62 }
 0x62e   : >> { %v2565_v27 = vsub.f32 %v2549_v61, %v2428_v56  ;;  %v2455_v30 = vpop.f32.mrf.mxu3  ;;  %2582 = vst [vmem:[#allocation2 + $0x68] sm:$0xff] %v2534_v4 }
 0x62f   : >> { %v2542_v37 = vsub.f32 %v5344_v55, %v2455_v30  ;;  %v2369_v19 = vpop.f32.mrf.mxu0 }
 0x630   : >> { %2597 = vst [vmem:[#allocation3 + $0x48] sm:$0xff] %v2565_v27 }
 0x631   : >> { %2590 = vst [vmem:[#allocation2 + $0x70] sm:$0xff] %v2542_v37 }
 0x633   : >> { %v2496_v41 = vpop.f32.mrf.mxu2  ;;  %v2434_v57 = vpop.f32.mrf.mxu1 }
 0x634   : >> { %v2550_v15 = vsub.f32 %v2496_v41, %v2366_v39  ;;  %v2535_v33 = vsub.f32 %v2369_v19, %v2434_v57 }
 0x636   : >> { %v2566_v60 = vsub.f32 %v2550_v15, %v2431_v62  ;;  %v2458_v24 = vpop.f32.mrf.mxu3  ;;  %2583 = vst [vmem:[#allocation2 + $0x8] sm:$0xff] %v2535_v33 }
 0x637   : >> { %v2543_v31 = vsub.f32 %v5346_v8, %v2458_v24  ;;  %v2372_v3 = vpop.f32.mrf.mxu0 }
 0x638   : >> { %2598 = vst [vmem:[#allocation3 + $0x30] sm:$0xff] %v2566_v60 }
 0x639   : >> { %2591 = vst [vmem:[#allocation2 + $0x78] sm:$0xff] %v2543_v31 }
 0x63b   : >> { %v2499_v13 = vpop.f32.mrf.mxu2  ;;  %v2437_v16 = vpop.f32.mrf.mxu1 }
 0x63c   : >> { %v2551_v46 = vsub.f32 %v2499_v13, %v2369_v19  ;;  %v2536_v17 = vsub.f32 %v2372_v3, %v2437_v16 }
 0x63e   : >> { %v2567_v51 = vsub.f32 %v2551_v46, %v2434_v57  ;;  %v2461_v12 = vpop.f32.mrf.mxu3  ;;  %2584 = vst [vmem:[#allocation2 + $0x48] sm:$0xff] %v2536_v17 }
 0x63f   : >> { %v2544_v6 = vsub.f32 %v5348_v2, %v2461_v12  ;;  %v2375_v58 = vpop.f32.mrf.mxu0 }
 0x640   : >> { %2599 = vst [vmem:[#allocation3 + $0x70] sm:$0xff] %v2567_v51 }
 0x641   : >> { %2592 = vst [vmem:[#allocation2 + $0x28] sm:$0xff] %v2544_v6 }
 0x643   : >> { %v2502_v23 = vpop.f32.mrf.mxu2  ;;  %v2440_v43 = vpop.f32.mrf.mxu1 }
 0x644   : >> { %v2552_v7 = vsub.f32 %v2502_v23, %v2372_v3  ;;  %v2537_v48 = vsub.f32 %v2375_v58, %v2440_v43 }
 0x646   : >> { %v2568_v36 = vsub.f32 %v2552_v7, %v2437_v16  ;;  %v2517_v18 = vpop.f32.mrf.mxu3  ;;  %2585 = vst [vmem:[#allocation2 + $0x40] sm:$0xff] %v2537_v48 }
 0x647   : >> { %v2557_v52 = vsub.f32 %v2517_v18, %v5342_v11  ;;  %v2378_v38 = vpop.f32.mrf.mxu0 }
 0x648   : >> { %2600 = vst [vmem:[#allocation3 + $0x38] sm:$0xff] %v2568_v36 }
 0x649   : >> { %v2573_v63 = vsub.f32 %v2557_v52, %v2452_v14 }
 0x64b   : >> { %v2505_v32 = vpop.f32.mrf.mxu2  ;;  %2605 = vst [vmem:[#allocation3] sm:$0xff] %v2573_v63  ;;  %v2443_v9 = vpop.f32.mrf.mxu1 }
 0x64c   : >> { %v2553_v49 = vsub.f32 %v2505_v32, %v2375_v58  ;;  %v2538_v42 = vsub.f32 %v2378_v38, %v2443_v9 }
 0x64e   : >> { %v2569_v59 = vsub.f32 %v2553_v49, %v2440_v43  ;;  %v2520_v34 = vpop.f32.mrf.mxu3  ;;  %2586 = vst [vmem:[#allocation2 + $0x20] sm:$0xff] %v2538_v42 }
 0x64f   : >> { %v2558_v29 = vsub.f32 %v2520_v34, %v5344_v55  ;;  %v2381_v11 = vpop.f32.mrf.mxu0 }
 0x650   : >> { %2601 = vst [vmem:[#allocation3 + $0x20] sm:$0xff] %v2569_v59 }
 0x651   : >> { %v2574_v25 = vsub.f32 %v2558_v29, %v2455_v30 }
 0x653   : >> { %v2508_v40 = vpop.f32.mrf.mxu2  ;;  %2606 = vst [vmem:[#allocation3 + $0x8] sm:$0xff] %v2574_v25  ;;  %v2446_v22 = vpop.f32.mrf.mxu1 }
 0x654   : >> { %v2554_v35 = vsub.f32 %v2508_v40, %v2378_v38  ;;  %v2539_v44 = vsub.f32 %v2381_v11, %v2446_v22 }
 0x656   : >> { %v2570_v45 = vsub.f32 %v2554_v35, %v2443_v9  ;;  %v2523_v53 = vpop.f32.mrf.mxu3  ;;  %2587 = vst [vmem:[#allocation2 + $0x10] sm:$0xff] %v2539_v44 }
 0x657   : >> { %v2559_v54 = vsub.f32 %v2523_v53, %v5346_v8  ;;  %v2384_v55 = vpop.f32.mrf.mxu0 }
 0x658   : >> { %2602 = vst [vmem:[#allocation3 + $0x78] sm:$0xff] %v2570_v45 }
 0x659   : >> { %v2575_v1 = vsub.f32 %v2559_v54, %v2458_v24 }
 0x65b   : >> { %v2511_v10 = vpop.f32.mrf.mxu2  ;;  %2607 = vst [vmem:[#allocation3 + $0x60] sm:$0xff] %v2575_v1  ;;  %v2449_v0 = vpop.f32.mrf.mxu1 }
 0x65c   : >> { %v2555_v20 = vsub.f32 %v2511_v10, %v2381_v11  ;;  %v2540_v47 = vsub.f32 %v2384_v55, %v2449_v0 }
 0x65e   : >> { %v2571_v21 = vsub.f32 %v2555_v20, %v2446_v22  ;;  %v2526_v5 = vpop.f32.mrf.mxu3  ;;  %2588 = vst [vmem:[#allocation2 + $0x38] sm:$0xff] %v2540_v47 }
 0x65f   : >> { %v2560_v56 = vsub.f32 %v2526_v5, %v5348_v2 }
 0x660   : >> { %2603 = vst [vmem:[#allocation3 + $0x18] sm:$0xff] %v2571_v21 }
 0x661   : >> { %v2576_v14 = vsub.f32 %v2560_v56, %v2461_v12 }
 0x663   : >> { %v2514_v28 = vpop.f32.mrf.mxu2  ;;  %2608 = vst [vmem:[#allocation3 + $0x50] sm:$0xff] %v2576_v14 }
 0x664   : >> { %v2556_v50 = vsub.f32 %v2514_v28, %v2384_v55  ;;  %2285 = sbr.rel (!%p2282_p5) target bundleno = 1376 (0x560), region = 80 }
 0x666   : >> { %v2572_v26 = vsub.f32 %v2556_v50, %v2449_v0 }
 0x668   : >> { %2604 = vst [vmem:[#allocation3 + $0x58] sm:$0xff] %v2572_v26 }
 0x669 PF: > { %v2609_v8 = vld [vmem:[#allocation2 + $0x30] sm:$0xff]  ;;  %v2610_v2 = vld [vmem:[#allocation2] sm:$0xff]  ;;  %v2611_v61 = vld [vmem:[#allocation2 + $0x58] sm:$0xff] }
 0x66a   : > { %2625 = vst [vmem:[%s3070_s27] sm:$0xff] %v2609_v8  ;;  %v2612_v27 = vld [vmem:[#allocation2 + $0x18] sm:$0xff]  ;;  %v2613_v39 = vld [vmem:[#allocation2 + $0x50] sm:$0xff]  ;;  %v2614_v62 = vld [vmem:[#allocation2 + $0x68] sm:$0xff] }
 0x66b   : > { %2626 = vst [vmem:[%s3070_s27 + $0x8] sm:$0xff] %v2610_v2  ;;  %v2615_v4 = vld [vmem:[#allocation2 + $0x8] sm:$0xff]  ;;  %v2617_v37 = vld [vmem:[#allocation2 + $0x40] sm:$0xff]  ;;  %v2619_v15 = vld [vmem:[#allocation2 + $0x10] sm:$0xff] }
 0x66c   : > { %2627 = vst [vmem:[%s3070_s27 + $0x10] sm:$0xff] %v2611_v61  ;;  %v2616_v30 = vld [vmem:[#allocation2 + $0x48] sm:$0xff]  ;;  %v2618_v41 = vld [vmem:[#allocation2 + $0x20] sm:$0xff]  ;;  %v2620_v60 = vld [vmem:[#allocation2 + $0x38] sm:$0xff] }
 0x66d   : > { %2628 = vst [vmem:[%s3070_s27 + $0x18] sm:$0xff] %v2612_v27  ;;  %v2621_v19 = vld [vmem:[#allocation2 + $0x60] sm:$0xff]  ;;  %v2622_v57 = vld [vmem:[#allocation2 + $0x70] sm:$0xff]  ;;  %v2623_v33 = vld [vmem:[#allocation2 + $0x78] sm:$0xff] }
 0x66e   : > { %2629 = vst [vmem:[%s3070_s27 + $0x20] sm:$0xff] %v2613_v39  ;;  %v2624_v24 = vld [vmem:[#allocation2 + $0x28] sm:$0xff]  ;;  %v2643_v46 = vld [vmem:[#allocation3 + $0x10] sm:$0xff]  ;;  %v2644_v51 = vld [vmem:[#allocation3 + $0x40] sm:$0xff] }
 0x66f   : > { %2630 = vst [vmem:[%s3070_s27 + $0x28] sm:$0xff] %v2614_v62  ;;  %v2641_v31 = vld [vmem:[#allocation3 + $0x28] sm:$0xff]  ;;  %v2646_v16 = vld [vmem:[#allocation3 + $0x30] sm:$0xff]  ;;  %v2648_v12 = vld [vmem:[#allocation3 + $0x38] sm:$0xff] }
 0x670   : > { %2631 = vst [vmem:[%s3070_s27 + $0x30] sm:$0xff] %v2615_v4  ;;  %v2642_v13 = vld [vmem:[#allocation3 + $0x68] sm:$0xff]  ;;  %v2647_v17 = vld [vmem:[#allocation3 + $0x70] sm:$0xff]  ;;  %v2649_v6 = vld [vmem:[#allocation3 + $0x20] sm:$0xff] }
 0x671   : > { %2632 = vst [vmem:[%s3070_s27 + $0x38] sm:$0xff] %v2616_v30  ;;  %v2645_v3 = vld [vmem:[#allocation3 + $0x48] sm:$0xff]  ;;  %v2650_v23 = vld [vmem:[#allocation3 + $0x78] sm:$0xff]  ;;  %v2653_v58 = vld [vmem:[#allocation3] sm:$0xff] }
 0x672   : > { %2633 = vst [vmem:[%s3070_s27 + $0x40] sm:$0xff] %v2617_v37  ;;  %v2651_v7 = vld [vmem:[#allocation3 + $0x18] sm:$0xff]  ;;  %v2654_v43 = vld [vmem:[#allocation3 + $0x8] sm:$0xff]  ;;  %v2655_v48 = vld [vmem:[#allocation3 + $0x60] sm:$0xff] }
 0x673   : > { %2634 = vst [vmem:[%s3070_s27 + $0x48] sm:$0xff] %v2618_v41  ;;  %v2652_v36 = vld [vmem:[#allocation3 + $0x58] sm:$0xff]  ;;  %v2656_v18 = vld [vmem:[#allocation3 + $0x50] sm:$0xff] }
 0x674   : > { %2635 = vst [vmem:[%s3070_s27 + $0x50] sm:$0xff] %v2619_v15 }
 0x675   : > { %2636 = vst [vmem:[%s3070_s27 + $0x58] sm:$0xff] %v2620_v60 }
 0x676   : > { %2637 = vst [vmem:[%s3070_s27 + $0x60] sm:$0xff] %v2621_v19 }
 0x677   : > { %2638 = vst [vmem:[%s3070_s27 + $0x68] sm:$0xff] %v2622_v57 }
 0x678   : > { %2639 = vst [vmem:[%s3070_s27 + $0x70] sm:$0xff] %v2623_v33 }
 0x679   : > { %2640 = vst [vmem:[%s3070_s27 + $0x78] sm:$0xff] %v2624_v24 }
 0x67a   : > { %2657 = vst [vmem:[%s3075_s30] sm:$0xff] %v2641_v31 }
 0x67b   : > { %2658 = vst [vmem:[%s3075_s30 + $0x8] sm:$0xff] %v2642_v13 }
 0x67c   : > { %2659 = vst [vmem:[%s3075_s30 + $0x10] sm:$0xff] %v2643_v46 }
 0x67d   : > { %2660 = vst [vmem:[%s3075_s30 + $0x18] sm:$0xff] %v2644_v51 }
 0x67e   : > { %2661 = vst [vmem:[%s3075_s30 + $0x20] sm:$0xff] %v2645_v3 }
 0x67f   : > { %2662 = vst [vmem:[%s3075_s30 + $0x28] sm:$0xff] %v2646_v16 }
 0x680   : > { %2663 = vst [vmem:[%s3075_s30 + $0x30] sm:$0xff] %v2647_v17 }
 0x681   : > { %2664 = vst [vmem:[%s3075_s30 + $0x38] sm:$0xff] %v2648_v12 }
 0x682   : > { %2665 = vst [vmem:[%s3075_s30 + $0x40] sm:$0xff] %v2649_v6 }
 0x683   : > { %2666 = vst [vmem:[%s3075_s30 + $0x48] sm:$0xff] %v2650_v23 }
 0x684   : > { %2667 = vst [vmem:[%s3075_s30 + $0x50] sm:$0xff] %v2651_v7 }
 0x685   : > { %2668 = vst [vmem:[%s3075_s30 + $0x58] sm:$0xff] %v2652_v36 }
 0x686   : > { %2669 = vst [vmem:[%s3075_s30 + $0x60] sm:$0xff] %v2653_v58 }
 0x687   : > { %2670 = vst [vmem:[%s3075_s30 + $0x68] sm:$0xff] %v2654_v43 }
 0x688   : > { %2671 = vst [vmem:[%s3075_s30 + $0x70] sm:$0xff] %v2655_v48 }
 0x689   : > { %2672 = vst [vmem:[%s3075_s30 + $0x78] sm:$0xff] %v2656_v18 }
 0x68a PF: > { %s23_s19 = sadd.s32 1, %s3016_s19  }
 0x68b   : > { %p20_p6 = scmp.ge.s32.totalorder %s23_s19, 4  }
 0x68d   :  { %22 = sbr.rel (!%p20_p6) target bundleno = 7 (0x7), region = 91 }

</bundles_post_ra>
